<compile_context>
chip_gen: v6e
topology: v6e:2x2x1
jax: 0.10.0
libtpu: 0.0.40
codegen_flags: <defaults>
</compile_context>

<pallas_src>
import functools
import math

import jax
import jax.numpy as jnp
from jax.experimental import pallas as pl
from jax.experimental.pallas import tpu as pltpu  # noqa: F401

D_FEAT = 6
D_MODEL = 8
NHEAD = 4
HEAD_DIM = D_MODEL // NHEAD
NUM_LAYERS = 2
DIM_FF = 2048          # nn.TransformerEncoderLayer default dim_feedforward
FF_CHUNK = 512         # FFN hidden-dim tile kept on-chip
LN_EPS = 1e-5          # nn.LayerNorm default eps
NEG_INF = -1e30

# ---------------- packed parameter-slab layouts (static row offsets) ----------------
# w24 slab [NUM_LAYERS*27, 3*D]: per layer -> attn in-proj (w,b) + GRU (wi,bi,wh,bh)
W24_IN_W, W24_IN_B = 0, 8
W24_GWI, W24_GBI = 9, 17
W24_GWH, W24_GBH = 18, 26
W24_LAYER_ROWS = 27

# w8 slab [86, D]: feat_w, per layer -> conv_w(24) conv_b out_w(8) out_b ln1_g ln1_b
#                  ln2_g ln2_b ff2_b, then decoder row + bias row
W8_FEAT = 0
W8_LAYER0 = D_FEAT
W8_CONV_W, W8_CONV_B = 0, 24
W8_OUT_W, W8_OUT_B = 25, 33
W8_LN1_G, W8_LN1_B, W8_LN2_G, W8_LN2_B = 34, 35, 36, 37
W8_FF2_B = 38
W8_LAYER_ROWS = 39
W8_DEC_W = W8_LAYER0 + NUM_LAYERS * W8_LAYER_ROWS
W8_DEC_B = W8_DEC_W + 1
W8_ROWS = W8_DEC_B + 1

# ff slab [NUM_LAYERS, 24, DIM_FF]: rows 0-7 ff1_w, row 8 ff1_b, rows 9-15 pad,
#                                   rows 16-23 ff2_w (torch [out,in] -> used as x @ W.T)
FF_W1, FF_B1, FF_W2 = 0, 8, 16
FF_ROWS = 24


# ------------------------------ fused kernel ------------------------------

def _forward_kernel(x_ref, pefb_ref, w24_ref, w8_ref, ff_ref, o_ref, *, seq_len, batch):
    T, N = seq_len, batch
    D, hd = D_MODEL, HEAD_DIM
    TN = T * N
    f32 = jnp.float32
    scale = 1.0 / math.sqrt(hd)

    def mm(a, b):                       # a @ b
        return jnp.dot(a, b, preferred_element_type=f32)

    def mm_t(a, b):                     # a @ b.T (contract both minor dims)
        return jax.lax.dot_general(a, b, (((1,), (1,)), ((), ())),
                                   preferred_element_type=f32)

    def layer_norm(v, g, b):
        mu = jnp.mean(v, axis=-1, keepdims=True)
        c = v - mu
        var = jnp.mean(c * c, axis=-1, keepdims=True)
        return c * jax.lax.rsqrt(var + LN_EPS) * g + b

    def w8_base(i):
        return W8_LAYER0 + i * W8_LAYER_ROWS

    def w24_base(i):
        return i * W24_LAYER_ROWS

    # -------- feature layer + (pre-folded) positional encoding + bias --------
    feat_w = w8_ref[W8_FEAT:W8_FEAT + D_FEAT, :]                    # [F, D]
    x = mm(x_ref[...], feat_w) + pefb_ref[...]                      # [TN, D]

    # additive attention mask (built in-kernel): different batches never attend.
    r_idx = jax.lax.broadcasted_iota(jnp.int32, (TN, TN), 0)
    c_idx = jax.lax.broadcasted_iota(jnp.int32, (TN, TN), 1)
    amask = jnp.where((r_idx % N) == (c_idx % N), 0.0, NEG_INF).astype(f32)

    zrows = jnp.zeros((N, D), f32)

    # -------- LocalformerEncoder building blocks --------
    def conv1d(v, i):
        # Conv1d(D, D, k=3, stride=1, pad=1) over time, per batch: the +-1 time
        # shifts are register slice+concat (zero padding at sequence ends), and
        # the 3 taps are folded into one [TN, 3D] @ [3D, D] matmul.
        b = w8_base(i)
        vp = jnp.concatenate([zrows, v[:TN - N, :]], axis=0)        # x[t-1]
        vn = jnp.concatenate([v[N:, :], zrows], axis=0)             # x[t+1]
        conv_in = jnp.concatenate([vp, v, vn], axis=-1)             # [TN, 3D]
        w = w8_ref[b + W8_CONV_W:b + W8_CONV_W + 3 * D, :]          # [3D, D]
        cb = w8_ref[b + W8_CONV_B:b + W8_CONV_B + 1, :]             # [1, D]
        return mm(conv_in, w) + cb

    def encoder_layer(v, i):
        b8 = w8_base(i)
        b24 = w24_base(i)

        # --- multi-head self-attention (post-norm TransformerEncoderLayer) ---
        in_w = w24_ref[b24 + W24_IN_W:b24 + W24_IN_W + D, :]        # [D, 3D]
        in_b = w24_ref[b24 + W24_IN_B:b24 + W24_IN_B + 1, :]        # [1, 3D]
        qkv = mm(v, in_w) + in_b                                    # [TN, 3D] q|k|v
        heads = []
        for h in range(NHEAD):
            c = h * hd
            q = qkv[:, c:c + hd]
            k = qkv[:, D + c:D + c + hd]
            vv = qkv[:, 2 * D + c:2 * D + c + hd]
            s = mm_t(q, k) * scale + amask                          # [TN, TN]
            m = jnp.max(s, axis=-1, keepdims=True)
            p = jnp.exp(s - m)
            denom = jnp.sum(p, axis=-1, keepdims=True)
            heads.append(mm(p, vv) * pl.reciprocal(denom, approx=True))
        attn = jnp.concatenate(heads, axis=-1)                      # [TN, D], regs only
        out_w = w8_ref[b8 + W8_OUT_W:b8 + W8_OUT_W + D, :]
        out_b = w8_ref[b8 + W8_OUT_B:b8 + W8_OUT_B + 1, :]
        attn = mm(attn, out_w) + out_b
        y = layer_norm(v + attn,
                       w8_ref[b8 + W8_LN1_G:b8 + W8_LN1_G + 1, :],
                       w8_ref[b8 + W8_LN1_B:b8 + W8_LN1_B + 1, :])

        # --- feed-forward (relu), tiled over DIM_FF; intermediate stays on-chip ---
        acc = jnp.zeros((TN, D), f32)
        for kb in range(DIM_FF // FF_CHUNK):
            c0 = kb * FF_CHUNK
            w1 = ff_ref[i, FF_W1:FF_W1 + D, c0:c0 + FF_CHUNK]       # [D, FF_CHUNK]
            b1 = ff_ref[i, FF_B1:FF_B1 + 1, c0:c0 + FF_CHUNK]       # [1, FF_CHUNK]
            hblk = jnp.maximum(mm(y, w1) + b1, 0.0)
            w2 = ff_ref[i, FF_W2:FF_W2 + D, c0:c0 + FF_CHUNK]       # [D, FF_CHUNK]
            acc = acc + mm_t(hblk, w2)
        ff = acc + w8_ref[b8 + W8_FF2_B:b8 + W8_FF2_B + 1, :]
        return layer_norm(y + ff,
                          w8_ref[b8 + W8_LN2_G:b8 + W8_LN2_G + 1, :],
                          w8_ref[b8 + W8_LN2_B:b8 + W8_LN2_B + 1, :])

    # -------- LocalformerEncoder --------
    output = x
    out = x
    for i in range(NUM_LAYERS):
        out = conv1d(output, i)
        output = encoder_layer(output + out, i)
    output = output + out

    # -------- fused 2-layer GRU (h0 = 0), unrolled over time --------
    b0, b1 = w24_base(0), w24_base(1)
    gwi0 = w24_ref[b0 + W24_GWI:b0 + W24_GWI + D, :]
    gbi0 = w24_ref[b0 + W24_GBI:b0 + W24_GBI + 1, :]
    gwh0 = w24_ref[b0 + W24_GWH:b0 + W24_GWH + D, :]
    gbh0 = w24_ref[b0 + W24_GBH:b0 + W24_GBH + 1, :]
    gwi1 = w24_ref[b1 + W24_GWI:b1 + W24_GWI + D, :]
    gbi1 = w24_ref[b1 + W24_GBI:b1 + W24_GBI + 1, :]
    gwh1 = w24_ref[b1 + W24_GWH:b1 + W24_GWH + D, :]
    gbh1 = w24_ref[b1 + W24_GBH:b1 + W24_GBH + 1, :]

    # layer-1 input projection for EVERY timestep in one matmul, kept in registers.
    gi1 = mm(output, gwi0) + gbi0                                   # [TN, 3D] (r|z|n)

    h1 = jnp.zeros((N, D), f32)
    h2 = jnp.zeros((N, D), f32)
    for t in range(T):
        r0 = t * N
        gx = gi1[r0:r0 + N, :]                                      # [N, 3D]
        gh = mm(h1, gwh0) + gbh0                                    # [N, 3D]
        r = jax.nn.sigmoid(gx[:, 0:D] + gh[:, 0:D])
        z = jax.nn.sigmoid(gx[:, D:2 * D] + gh[:, D:2 * D])
        n = jnp.tanh(gx[:, 2 * D:3 * D] + r * gh[:, 2 * D:3 * D])
        h1 = (1.0 - z) * n + z * h1

        gx2 = mm(h1, gwi1) + gbi1                                   # [N, 3D]
        gh2 = mm(h2, gwh1) + gbh1                                   # [N, 3D]
        r2 = jax.nn.sigmoid(gx2[:, 0:D] + gh2[:, 0:D])
        z2 = jax.nn.sigmoid(gx2[:, D:2 * D] + gh2[:, D:2 * D])
        n2 = jnp.tanh(gx2[:, 2 * D:3 * D] + r2 * gh2[:, 2 * D:3 * D])
        h2 = (1.0 - z2) * n2 + z2 * h2

    # -------- decoder on the last time step --------
    dec_w = w8_ref[W8_DEC_W:W8_DEC_W + 1, :]                        # [1, D] (dec_w.T)
    dec_b = w8_ref[W8_DEC_B:W8_DEC_B + 1, 0:1]                      # [1, 1]
    o_ref[...] = jnp.sum(h2 * dec_w, axis=-1, keepdims=True) + dec_b


# ------------------------------ model wrapper ------------------------------

def transformer_forward(src, params):
    """src: [N, T, d_feat] -> [N]  (matches PyTorch Transformer.forward, eval)."""
    N, T, F = src.shape
    TN = T * N

    # seq-major [T*N, F] activations (row = t*N + n), matching torch [T, N, *].
    x_sm = jnp.transpose(src, (1, 0, 2)).reshape(TN, F)
    # positional-encoding rows + feature-layer bias, pre-folded into one tensor.
    pefb = jnp.repeat(params["pe"][:T], N, axis=0) + params["feat_b"]   # [TN, D]

    kern = functools.partial(_forward_kernel, seq_len=T, batch=N)
    out = pl.pallas_call(
        kern,
        out_shape=jax.ShapeDtypeStruct((N, 1), jnp.float32),
    )(x_sm, pefb, params["w24"], params["w8"], params["ff"])
    return out[:, 0]


# ------------------------------ parameters ------------------------------

def init_params(key):
    keys = iter(jax.random.split(key, 64))

    def nrm(shape, s=0.1):
        return jax.random.normal(next(keys), shape, jnp.float32) * s

    p = {}
    feat_w = nrm((D_FEAT, D_MODEL))
    p["feat_b"] = nrm((1, D_MODEL))

    # PositionalEncoding buffer (max_len=1000), identical to the torch module.
    max_len = 1000
    position = jnp.arange(max_len, dtype=jnp.float32)[:, None]
    div_term = jnp.exp(jnp.arange(0, D_MODEL, 2, dtype=jnp.float32)
                       * (-math.log(10000.0) / D_MODEL))
    pe = jnp.zeros((max_len, D_MODEL), jnp.float32)
    pe = pe.at[:, 0::2].set(jnp.sin(position * div_term))
    pe = pe.at[:, 1::2].set(jnp.cos(position * div_term))
    p["pe"] = pe                                                      # [max_len, D]

    w24_rows = []
    w8_rows = [feat_w]
    ff_layers = []
    for _ in range(NUM_LAYERS):
        # ---- 24-lane slab: attention in-proj (packed q|k|v, x @ W form) + GRU ----
        in_w = nrm((D_MODEL, 3 * D_MODEL))
        in_b = nrm((1, 3 * D_MODEL))
        gwi = nrm((D_MODEL, 3 * D_MODEL))     # columns: [r | z | n]
        gbi = nrm((1, 3 * D_MODEL))
        gwh = nrm((D_MODEL, 3 * D_MODEL))
        gbh = nrm((1, 3 * D_MODEL))
        w24_rows += [in_w, in_b, gwi, gbi, gwh, gbh]

        # ---- 8-lane slab: conv (3 taps stacked), out-proj, LN, ff2 bias ----
        w = nrm((D_MODEL, D_MODEL, 3))        # torch Conv1d layout [out, in, k]
        conv_stacked = jnp.concatenate(
            [w[:, :, 0].T, w[:, :, 1].T, w[:, :, 2].T], axis=0)       # [3D, D]
        conv_b = nrm((1, D_MODEL))
        out_w = nrm((D_MODEL, D_MODEL))
        out_b = nrm((1, D_MODEL))
        ln1_g = jnp.ones((1, D_MODEL), jnp.float32)
        ln1_b = jnp.zeros((1, D_MODEL), jnp.float32)
        ln2_g = jnp.ones((1, D_MODEL), jnp.float32)
        ln2_b = jnp.zeros((1, D_MODEL), jnp.float32)
        ff2_b = nrm((1, D_MODEL))
        w8_rows += [conv_stacked, conv_b, out_w, out_b,
                    ln1_g, ln1_b, ln2_g, ln2_b, ff2_b]

        # ---- lane-dense FFN slab: ff1_w | ff1_b | pad | ff2_w ----
        ff1_w = nrm((D_MODEL, DIM_FF))
        ff1_b = nrm((1, DIM_FF))
        ff2_w = nrm((D_MODEL, DIM_FF), s=0.02)   # torch [out, in]; used as x @ W.T
        ff_layers.append(jnp.concatenate(
            [ff1_w, ff1_b, jnp.zeros((7, DIM_FF), jnp.float32), ff2_w], axis=0))

    dec_w = nrm((D_MODEL, 1))
    dec_b = nrm((1, 1))
    w8_rows += [dec_w.T, jnp.pad(dec_b, ((0, 0), (0, D_MODEL - 1)))]

    p["w24"] = jnp.concatenate(w24_rows, axis=0)        # [L*27, 3D]
    p["w8"] = jnp.concatenate(w8_rows, axis=0)          # [86, D]
    p["ff"] = jnp.stack(ff_layers)                      # [L, 24, DIM_FF]
    assert p["w24"].shape == (NUM_LAYERS * W24_LAYER_ROWS, 3 * D_MODEL)
    assert p["w8"].shape == (W8_ROWS, D_MODEL)
    assert p["ff"].shape == (NUM_LAYERS, FF_ROWS, DIM_FF)
    return p


# --------------------------------- main ---------------------------------

if __name__ == "__main__":
    key = jax.random.PRNGKey(0)
    pkey, xkey = jax.random.split(key)

    params = init_params(pkey)

    N_BATCH, T_SEQ = 2, 8
    x = jax.random.normal(xkey, (N_BATCH, T_SEQ, D_FEAT), jnp.float32)

    fwd = jax.jit(transformer_forward)
    y = jax.block_until_ready(fwd(x, params))

    assert y.shape == (N_BATCH,), y.shape
    assert bool(jnp.all(jnp.isfinite(y)))
    print("KERNEL_OK")
</pallas_src>

<mosaic_0001>
module attributes {stable_mosaic.version = 11 : i64} {
  func.func @_forward_kernel(%arg0: memref<16x6xf32, #tpu.memory_space<vmem>>, %arg1: memref<16x8xf32, #tpu.memory_space<vmem>>, %arg2: memref<54x24xf32, #tpu.memory_space<vmem>>, %arg3: memref<86x8xf32, #tpu.memory_space<vmem>>, %arg4: memref<2x24x2048xf32, #tpu.memory_space<vmem>>, %arg5: memref<2x1xf32, #tpu.memory_space<vmem>>) attributes {dimension_semantics = [], scalar_prefetch = 0 : i64, scratch_operands = 0 : i64, tpu.core_type = #tpu.core_type<tc>} {
    %c0 = arith.constant 0 : index
    %c0_0 = arith.constant 0 : index
    %0 = vector.load %arg3[%c0, %c0_0] : memref<86x8xf32, #tpu.memory_space<vmem>>, vector<6x8xf32>
    %c0_1 = arith.constant 0 : index
    %c0_2 = arith.constant 0 : index
    %1 = vector.load %arg0[%c0_1, %c0_2] : memref<16x6xf32, #tpu.memory_space<vmem>>, vector<16x6xf32>
    %cst = arith.constant dense<0.000000e+00> : vector<16x8xf32>
    %2 = tpu.matmul %1, %0, %cst {dimension_numbers = #tpu.dot_dimension_numbers<[1], [0], [0], [1], [0, 0, 1, 1], [], []>} : vector<16x6xf32>, vector<6x8xf32>, vector<16x8xf32> -> vector<16x8xf32>
    %c0_3 = arith.constant 0 : index
    %c0_4 = arith.constant 0 : index
    %3 = vector.load %arg1[%c0_3, %c0_4] : memref<16x8xf32, #tpu.memory_space<vmem>>, vector<16x8xf32>
    %4 = arith.addf %2, %3 : vector<16x8xf32>
    %5 = tpu.iota {dimensions = array<i32: 0>} : vector<16x16xi32>
    %6 = tpu.iota {dimensions = array<i32: 1>} : vector<16x16xi32>
    %c2_i32 = arith.constant 2 : i32
    %c0_i32 = arith.constant 0 : i32
    %7 = arith.cmpi eq, %c2_i32, %c0_i32 : i32
    %c1_i32 = arith.constant 1 : i32
    %8 = arith.select %7, %c1_i32, %c2_i32 : i32
    %9 = vector.broadcast %8 : i32 to vector<16x16xi32>
    %10 = arith.remsi %5, %9 : vector<16x16xi32>
    %c0_i32_5 = arith.constant 0 : i32
    %11 = vector.broadcast %c0_i32_5 : i32 to vector<16x16xi32>
    %12 = arith.cmpi ne, %10, %11 : vector<16x16xi32>
    %c0_i32_6 = arith.constant 0 : i32
    %13 = vector.broadcast %c0_i32_6 : i32 to vector<16x16xi32>
    %14 = arith.cmpi slt, %10, %13 : vector<16x16xi32>
    %c0_i32_7 = arith.constant 0 : i32
    %15 = arith.cmpi slt, %8, %c0_i32_7 : i32
    %16 = vector.broadcast %15 : i1 to vector<16x16xi1>
    %17 = vector.broadcast %16 : vector<16x16xi1> to vector<16x16xi1>
    %18 = arith.xori %14, %17 : vector<16x16xi1>
    %19 = arith.andi %18, %12 : vector<16x16xi1>
    %20 = vector.broadcast %8 : i32 to vector<16x16xi32>
    %21 = arith.addi %10, %20 : vector<16x16xi32>
    %22 = arith.select %19, %21, %10 : vector<16x16xi1>, vector<16x16xi32>
    %c2_i32_8 = arith.constant 2 : i32
    %c0_i32_9 = arith.constant 0 : i32
    %23 = arith.cmpi eq, %c2_i32_8, %c0_i32_9 : i32
    %c1_i32_10 = arith.constant 1 : i32
    %24 = arith.select %23, %c1_i32_10, %c2_i32_8 : i32
    %25 = vector.broadcast %24 : i32 to vector<16x16xi32>
    %26 = arith.remsi %6, %25 : vector<16x16xi32>
    %c0_i32_11 = arith.constant 0 : i32
    %27 = vector.broadcast %c0_i32_11 : i32 to vector<16x16xi32>
    %28 = arith.cmpi ne, %26, %27 : vector<16x16xi32>
    %c0_i32_12 = arith.constant 0 : i32
    %29 = vector.broadcast %c0_i32_12 : i32 to vector<16x16xi32>
    %30 = arith.cmpi slt, %26, %29 : vector<16x16xi32>
    %c0_i32_13 = arith.constant 0 : i32
    %31 = arith.cmpi slt, %24, %c0_i32_13 : i32
    %32 = vector.broadcast %31 : i1 to vector<16x16xi1>
    %33 = vector.broadcast %32 : vector<16x16xi1> to vector<16x16xi1>
    %34 = arith.xori %30, %33 : vector<16x16xi1>
    %35 = arith.andi %34, %28 : vector<16x16xi1>
    %36 = vector.broadcast %24 : i32 to vector<16x16xi32>
    %37 = arith.addi %26, %36 : vector<16x16xi32>
    %38 = arith.select %35, %37, %26 : vector<16x16xi1>, vector<16x16xi32>
    %39 = arith.cmpi eq, %22, %38 : vector<16x16xi32>
    %cst_14 = arith.constant 0.000000e+00 : f32
    %cst_15 = arith.constant -1.000000e+30 : f32
    %40 = vector.broadcast %cst_14 : f32 to vector<16x16xf32>
    %41 = vector.broadcast %cst_15 : f32 to vector<16x16xf32>
    %42 = arith.select %39, %40, %41 : vector<16x16xi1>, vector<16x16xf32>
    %cst_16 = arith.constant 0.000000e+00 : f32
    %43 = vector.broadcast %cst_16 : f32 to vector<2x8xf32>
    %44 = vector.extract_strided_slice %4 {offsets = [0, 0], sizes = [14, 8], strides = [1, 1]} : vector<16x8xf32> to vector<14x8xf32>
    %45 = tpu.concatenate %43, %44 in 0 : vector<2x8xf32>, vector<14x8xf32> -> vector<16x8xf32>
    %46 = vector.extract_strided_slice %4 {offsets = [2, 0], sizes = [14, 8], strides = [1, 1]} : vector<16x8xf32> to vector<14x8xf32>
    %47 = tpu.concatenate %46, %43 in 0 : vector<14x8xf32>, vector<2x8xf32> -> vector<16x8xf32>
    %48 = tpu.concatenate %45, %4, %47 in 1 : vector<16x8xf32>, vector<16x8xf32>, vector<16x8xf32> -> vector<16x24xf32>
    %c6 = arith.constant 6 : index
    %c0_17 = arith.constant 0 : index
    %49 = vector.load %arg3[%c6, %c0_17] : memref<86x8xf32, #tpu.memory_space<vmem>>, vector<24x8xf32>
    %c30 = arith.constant 30 : index
    %c0_18 = arith.constant 0 : index
    %50 = vector.load %arg3[%c30, %c0_18] : memref<86x8xf32, #tpu.memory_space<vmem>>, vector<1x8xf32>
    %cst_19 = arith.constant dense<0.000000e+00> : vector<16x8xf32>
    %51 = tpu.matmul %48, %49, %cst_19 {dimension_numbers = #tpu.dot_dimension_numbers<[1], [0], [0], [1], [0, 0, 1, 1], [], []>} : vector<16x24xf32>, vector<24x8xf32>, vector<16x8xf32> -> vector<16x8xf32>
    %52 = vector.broadcast %50 : vector<1x8xf32> to vector<16x8xf32>
    %53 = arith.addf %51, %52 : vector<16x8xf32>
    %54 = arith.addf %4, %53 : vector<16x8xf32>
    %c0_20 = arith.constant 0 : index
    %c0_21 = arith.constant 0 : index
    %55 = vector.load %arg2[%c0_20, %c0_21] : memref<54x24xf32, #tpu.memory_space<vmem>>, vector<8x24xf32>
    %c8 = arith.constant 8 : index
    %c0_22 = arith.constant 0 : index
    %56 = vector.load %arg2[%c8, %c0_22] : memref<54x24xf32, #tpu.memory_space<vmem>>, vector<1x24xf32>
    %cst_23 = arith.constant dense<0.000000e+00> : vector<16x24xf32>
    %57 = tpu.matmul %54, %55, %cst_23 {dimension_numbers = #tpu.dot_dimension_numbers<[1], [0], [0], [1], [0, 0, 1, 1], [], []>} : vector<16x8xf32>, vector<8x24xf32>, vector<16x24xf32> -> vector<16x24xf32>
    %58 = vector.broadcast %56 : vector<1x24xf32> to vector<16x24xf32>
    %59 = arith.addf %57, %58 : vector<16x24xf32>
    %60 = vector.extract_strided_slice %59 {offsets = [0, 0], sizes = [16, 2], strides = [1, 1]} : vector<16x24xf32> to vector<16x2xf32>
    %61 = vector.extract_strided_slice %59 {offsets = [0, 8], sizes = [16, 2], strides = [1, 1]} : vector<16x24xf32> to vector<16x2xf32>
    %62 = vector.extract_strided_slice %59 {offsets = [0, 16], sizes = [16, 2], strides = [1, 1]} : vector<16x24xf32> to vector<16x2xf32>
    %cst_24 = arith.constant dense<0.000000e+00> : vector<16x16xf32>
    %63 = tpu.matmul %60, %61, %cst_24 {dimension_numbers = #tpu.dot_dimension_numbers<[1], [1], [0], [0], [0, 0, 1, 0], [], []>} : vector<16x2xf32>, vector<16x2xf32>, vector<16x16xf32> -> vector<16x16xf32>
    %cst_25 = arith.constant 0.707106769 : f32
    %64 = vector.broadcast %cst_25 : f32 to vector<16x16xf32>
    %65 = arith.mulf %63, %64 : vector<16x16xf32>
    %66 = arith.addf %65, %42 : vector<16x16xf32>
    %cst_26 = arith.constant dense<0xFF800000> : vector<16xf32>
    %67 = vector.multi_reduction <maximumf>, %66, %cst_26 [1] : vector<16x16xf32> to vector<16xf32>
    %68 = vector.shape_cast %67 : vector<16xf32> to vector<16x1xf32>
    %69 = vector.broadcast %68 : vector<16x1xf32> to vector<16x16xf32>
    %70 = arith.subf %66, %69 : vector<16x16xf32>
    %71 = math.exp %70 : vector<16x16xf32>
    %cst_27 = arith.constant dense<0.000000e+00> : vector<16xf32>
    %72 = vector.multi_reduction <add>, %71, %cst_27 [1] : vector<16x16xf32> to vector<16xf32>
    %73 = vector.shape_cast %72 : vector<16xf32> to vector<16x1xf32>
    %cst_28 = arith.constant dense<0.000000e+00> : vector<16x2xf32>
    %74 = tpu.matmul %71, %62, %cst_28 {dimension_numbers = #tpu.dot_dimension_numbers<[1], [0], [0], [1], [0, 0, 1, 1], [], []>} : vector<16x16xf32>, vector<16x2xf32>, vector<16x2xf32> -> vector<16x2xf32>
    %75 = tpu.reciprocal %73 {approx = true} : vector<16x1xf32> -> vector<16x1xf32>
    %76 = vector.broadcast %75 : vector<16x1xf32> to vector<16x2xf32>
    %77 = arith.mulf %74, %76 : vector<16x2xf32>
    %78 = vector.extract_strided_slice %59 {offsets = [0, 2], sizes = [16, 2], strides = [1, 1]} : vector<16x24xf32> to vector<16x2xf32>
    %79 = vector.extract_strided_slice %59 {offsets = [0, 10], sizes = [16, 2], strides = [1, 1]} : vector<16x24xf32> to vector<16x2xf32>
    %80 = vector.extract_strided_slice %59 {offsets = [0, 18], sizes = [16, 2], strides = [1, 1]} : vector<16x24xf32> to vector<16x2xf32>
    %cst_29 = arith.constant dense<0.000000e+00> : vector<16x16xf32>
    %81 = tpu.matmul %78, %79, %cst_29 {dimension_numbers = #tpu.dot_dimension_numbers<[1], [1], [0], [0], [0, 0, 1, 0], [], []>} : vector<16x2xf32>, vector<16x2xf32>, vector<16x16xf32> -> vector<16x16xf32>
    %cst_30 = arith.constant 0.707106769 : f32
    %82 = vector.broadcast %cst_30 : f32 to vector<16x16xf32>
    %83 = arith.mulf %81, %82 : vector<16x16xf32>
    %84 = arith.addf %83, %42 : vector<16x16xf32>
    %cst_31 = arith.constant dense<0xFF800000> : vector<16xf32>
    %85 = vector.multi_reduction <maximumf>, %84, %cst_31 [1] : vector<16x16xf32> to vector<16xf32>
    %86 = vector.shape_cast %85 : vector<16xf32> to vector<16x1xf32>
    %87 = vector.broadcast %86 : vector<16x1xf32> to vector<16x16xf32>
    %88 = arith.subf %84, %87 : vector<16x16xf32>
    %89 = math.exp %88 : vector<16x16xf32>
    %cst_32 = arith.constant dense<0.000000e+00> : vector<16xf32>
    %90 = vector.multi_reduction <add>, %89, %cst_32 [1] : vector<16x16xf32> to vector<16xf32>
    %91 = vector.shape_cast %90 : vector<16xf32> to vector<16x1xf32>
    %cst_33 = arith.constant dense<0.000000e+00> : vector<16x2xf32>
    %92 = tpu.matmul %89, %80, %cst_33 {dimension_numbers = #tpu.dot_dimension_numbers<[1], [0], [0], [1], [0, 0, 1, 1], [], []>} : vector<16x16xf32>, vector<16x2xf32>, vector<16x2xf32> -> vector<16x2xf32>
    %93 = tpu.reciprocal %91 {approx = true} : vector<16x1xf32> -> vector<16x1xf32>
    %94 = vector.broadcast %93 : vector<16x1xf32> to vector<16x2xf32>
    %95 = arith.mulf %92, %94 : vector<16x2xf32>
    %96 = vector.extract_strided_slice %59 {offsets = [0, 4], sizes = [16, 2], strides = [1, 1]} : vector<16x24xf32> to vector<16x2xf32>
    %97 = vector.extract_strided_slice %59 {offsets = [0, 12], sizes = [16, 2], strides = [1, 1]} : vector<16x24xf32> to vector<16x2xf32>
    %98 = vector.extract_strided_slice %59 {offsets = [0, 20], sizes = [16, 2], strides = [1, 1]} : vector<16x24xf32> to vector<16x2xf32>
    %cst_34 = arith.constant dense<0.000000e+00> : vector<16x16xf32>
    %99 = tpu.matmul %96, %97, %cst_34 {dimension_numbers = #tpu.dot_dimension_numbers<[1], [1], [0], [0], [0, 0, 1, 0], [], []>} : vector<16x2xf32>, vector<16x2xf32>, vector<16x16xf32> -> vector<16x16xf32>
    %cst_35 = arith.constant 0.707106769 : f32
    %100 = vector.broadcast %cst_35 : f32 to vector<16x16xf32>
    %101 = arith.mulf %99, %100 : vector<16x16xf32>
    %102 = arith.addf %101, %42 : vector<16x16xf32>
    %cst_36 = arith.constant dense<0xFF800000> : vector<16xf32>
    %103 = vector.multi_reduction <maximumf>, %102, %cst_36 [1] : vector<16x16xf32> to vector<16xf32>
    %104 = vector.shape_cast %103 : vector<16xf32> to vector<16x1xf32>
    %105 = vector.broadcast %104 : vector<16x1xf32> to vector<16x16xf32>
    %106 = arith.subf %102, %105 : vector<16x16xf32>
    %107 = math.exp %106 : vector<16x16xf32>
    %cst_37 = arith.constant dense<0.000000e+00> : vector<16xf32>
    %108 = vector.multi_reduction <add>, %107, %cst_37 [1] : vector<16x16xf32> to vector<16xf32>
    %109 = vector.shape_cast %108 : vector<16xf32> to vector<16x1xf32>
    %cst_38 = arith.constant dense<0.000000e+00> : vector<16x2xf32>
    %110 = tpu.matmul %107, %98, %cst_38 {dimension_numbers = #tpu.dot_dimension_numbers<[1], [0], [0], [1], [0, 0, 1, 1], [], []>} : vector<16x16xf32>, vector<16x2xf32>, vector<16x2xf32> -> vector<16x2xf32>
    %111 = tpu.reciprocal %109 {approx = true} : vector<16x1xf32> -> vector<16x1xf32>
    %112 = vector.broadcast %111 : vector<16x1xf32> to vector<16x2xf32>
    %113 = arith.mulf %110, %112 : vector<16x2xf32>
    %114 = vector.extract_strided_slice %59 {offsets = [0, 6], sizes = [16, 2], strides = [1, 1]} : vector<16x24xf32> to vector<16x2xf32>
    %115 = vector.extract_strided_slice %59 {offsets = [0, 14], sizes = [16, 2], strides = [1, 1]} : vector<16x24xf32> to vector<16x2xf32>
    %116 = vector.extract_strided_slice %59 {offsets = [0, 22], sizes = [16, 2], strides = [1, 1]} : vector<16x24xf32> to vector<16x2xf32>
    %cst_39 = arith.constant dense<0.000000e+00> : vector<16x16xf32>
    %117 = tpu.matmul %114, %115, %cst_39 {dimension_numbers = #tpu.dot_dimension_numbers<[1], [1], [0], [0], [0, 0, 1, 0], [], []>} : vector<16x2xf32>, vector<16x2xf32>, vector<16x16xf32> -> vector<16x16xf32>
    %cst_40 = arith.constant 0.707106769 : f32
    %118 = vector.broadcast %cst_40 : f32 to vector<16x16xf32>
    %119 = arith.mulf %117, %118 : vector<16x16xf32>
    %120 = arith.addf %119, %42 : vector<16x16xf32>
    %cst_41 = arith.constant dense<0xFF800000> : vector<16xf32>
    %121 = vector.multi_reduction <maximumf>, %120, %cst_41 [1] : vector<16x16xf32> to vector<16xf32>
    %122 = vector.shape_cast %121 : vector<16xf32> to vector<16x1xf32>
    %123 = vector.broadcast %122 : vector<16x1xf32> to vector<16x16xf32>
    %124 = arith.subf %120, %123 : vector<16x16xf32>
    %125 = math.exp %124 : vector<16x16xf32>
    %cst_42 = arith.constant dense<0.000000e+00> : vector<16xf32>
    %126 = vector.multi_reduction <add>, %125, %cst_42 [1] : vector<16x16xf32> to vector<16xf32>
    %127 = vector.shape_cast %126 : vector<16xf32> to vector<16x1xf32>
    %cst_43 = arith.constant dense<0.000000e+00> : vector<16x2xf32>
    %128 = tpu.matmul %125, %116, %cst_43 {dimension_numbers = #tpu.dot_dimension_numbers<[1], [0], [0], [1], [0, 0, 1, 1], [], []>} : vector<16x16xf32>, vector<16x2xf32>, vector<16x2xf32> -> vector<16x2xf32>
    %129 = tpu.reciprocal %127 {approx = true} : vector<16x1xf32> -> vector<16x1xf32>
    %130 = vector.broadcast %129 : vector<16x1xf32> to vector<16x2xf32>
    %131 = arith.mulf %128, %130 : vector<16x2xf32>
    %132 = tpu.concatenate %77, %95, %113, %131 in 1 : vector<16x2xf32>, vector<16x2xf32>, vector<16x2xf32>, vector<16x2xf32> -> vector<16x8xf32>
    %c31 = arith.constant 31 : index
    %c0_44 = arith.constant 0 : index
    %133 = vector.load %arg3[%c31, %c0_44] : memref<86x8xf32, #tpu.memory_space<vmem>>, vector<8x8xf32>
    %c39 = arith.constant 39 : index
    %c0_45 = arith.constant 0 : index
    %134 = vector.load %arg3[%c39, %c0_45] : memref<86x8xf32, #tpu.memory_space<vmem>>, vector<1x8xf32>
    %cst_46 = arith.constant dense<0.000000e+00> : vector<16x8xf32>
    %135 = tpu.matmul %132, %133, %cst_46 {dimension_numbers = #tpu.dot_dimension_numbers<[1], [0], [0], [1], [0, 0, 1, 1], [], []>} : vector<16x8xf32>, vector<8x8xf32>, vector<16x8xf32> -> vector<16x8xf32>
    %136 = vector.broadcast %134 : vector<1x8xf32> to vector<16x8xf32>
    %137 = arith.addf %135, %136 : vector<16x8xf32>
    %138 = arith.addf %54, %137 : vector<16x8xf32>
    %c40 = arith.constant 40 : index
    %c0_47 = arith.constant 0 : index
    %139 = vector.load %arg3[%c40, %c0_47] : memref<86x8xf32, #tpu.memory_space<vmem>>, vector<1x8xf32>
    %c41 = arith.constant 41 : index
    %c0_48 = arith.constant 0 : index
    %140 = vector.load %arg3[%c41, %c0_48] : memref<86x8xf32, #tpu.memory_space<vmem>>, vector<1x8xf32>
    %cst_49 = arith.constant dense<0.000000e+00> : vector<16xf32>
    %141 = vector.multi_reduction <add>, %138, %cst_49 [1] : vector<16x8xf32> to vector<16xf32>
    %142 = vector.shape_cast %141 : vector<16xf32> to vector<16x1xf32>
    %cst_50 = arith.constant 8.000000e+00 : f32
    %143 = vector.broadcast %cst_50 : f32 to vector<16x1xf32>
    %144 = arith.divf %142, %143 : vector<16x1xf32>
    %145 = vector.broadcast %144 : vector<16x1xf32> to vector<16x8xf32>
    %146 = arith.subf %138, %145 : vector<16x8xf32>
    %147 = arith.mulf %146, %146 : vector<16x8xf32>
    %cst_51 = arith.constant dense<0.000000e+00> : vector<16xf32>
    %148 = vector.multi_reduction <add>, %147, %cst_51 [1] : vector<16x8xf32> to vector<16xf32>
    %149 = vector.shape_cast %148 : vector<16xf32> to vector<16x1xf32>
    %cst_52 = arith.constant 8.000000e+00 : f32
    %150 = vector.broadcast %cst_52 : f32 to vector<16x1xf32>
    %151 = arith.divf %149, %150 : vector<16x1xf32>
    %cst_53 = arith.constant 9.99999974E-6 : f32
    %152 = vector.broadcast %cst_53 : f32 to vector<16x1xf32>
    %153 = arith.addf %151, %152 : vector<16x1xf32>
    %154 = math.rsqrt %153 : vector<16x1xf32>
    %155 = vector.broadcast %154 : vector<16x1xf32> to vector<16x8xf32>
    %156 = arith.mulf %146, %155 : vector<16x8xf32>
    %157 = vector.broadcast %139 : vector<1x8xf32> to vector<16x8xf32>
    %158 = arith.mulf %156, %157 : vector<16x8xf32>
    %159 = vector.broadcast %140 : vector<1x8xf32> to vector<16x8xf32>
    %160 = arith.addf %158, %159 : vector<16x8xf32>
    %cst_54 = arith.constant 0.000000e+00 : f32
    %161 = vector.broadcast %cst_54 : f32 to vector<16x8xf32>
    %c0_55 = arith.constant 0 : index
    %c0_56 = arith.constant 0 : index
    %c0_57 = arith.constant 0 : index
    %162 = vector.load %arg4[%c0_55, %c0_56, %c0_57] : memref<2x24x2048xf32, #tpu.memory_space<vmem>>, vector<1x8x512xf32>
    %163 = vector.shape_cast %162 : vector<1x8x512xf32> to vector<8x512xf32>
    %c0_58 = arith.constant 0 : index
    %c8_59 = arith.constant 8 : index
    %c0_60 = arith.constant 0 : index
    %164 = vector.load %arg4[%c0_58, %c8_59, %c0_60] : memref<2x24x2048xf32, #tpu.memory_space<vmem>>, vector<1x1x512xf32>
    %165 = vector.shape_cast %164 : vector<1x1x512xf32> to vector<1x512xf32>
    %cst_61 = arith.constant dense<0.000000e+00> : vector<16x512xf32>
    %166 = tpu.matmul %160, %163, %cst_61 {dimension_numbers = #tpu.dot_dimension_numbers<[1], [0], [0], [1], [0, 0, 1, 1], [], []>} : vector<16x8xf32>, vector<8x512xf32>, vector<16x512xf32> -> vector<16x512xf32>
    %167 = vector.broadcast %165 : vector<1x512xf32> to vector<16x512xf32>
    %168 = arith.addf %166, %167 : vector<16x512xf32>
    %cst_62 = arith.constant 0.000000e+00 : f32
    %169 = vector.broadcast %cst_62 : f32 to vector<16x512xf32>
    %170 = arith.maximumf %168, %169 : vector<16x512xf32>
    %c0_63 = arith.constant 0 : index
    %c16 = arith.constant 16 : index
    %c0_64 = arith.constant 0 : index
    %171 = vector.load %arg4[%c0_63, %c16, %c0_64] : memref<2x24x2048xf32, #tpu.memory_space<vmem>>, vector<1x8x512xf32>
    %172 = vector.shape_cast %171 : vector<1x8x512xf32> to vector<8x512xf32>
    %cst_65 = arith.constant dense<0.000000e+00> : vector<16x8xf32>
    %173 = tpu.matmul %170, %172, %cst_65 {dimension_numbers = #tpu.dot_dimension_numbers<[1], [1], [0], [0], [0, 0, 1, 0], [], []>} : vector<16x512xf32>, vector<8x512xf32>, vector<16x8xf32> -> vector<16x8xf32>
    %174 = arith.addf %161, %173 : vector<16x8xf32>
    %c0_66 = arith.constant 0 : index
    %c0_67 = arith.constant 0 : index
    %c512 = arith.constant 512 : index
    %175 = vector.load %arg4[%c0_66, %c0_67, %c512] : memref<2x24x2048xf32, #tpu.memory_space<vmem>>, vector<1x8x512xf32>
    %176 = vector.shape_cast %175 : vector<1x8x512xf32> to vector<8x512xf32>
    %c0_68 = arith.constant 0 : index
    %c8_69 = arith.constant 8 : index
    %c512_70 = arith.constant 512 : index
    %177 = vector.load %arg4[%c0_68, %c8_69, %c512_70] : memref<2x24x2048xf32, #tpu.memory_space<vmem>>, vector<1x1x512xf32>
    %178 = vector.shape_cast %177 : vector<1x1x512xf32> to vector<1x512xf32>
    %cst_71 = arith.constant dense<0.000000e+00> : vector<16x512xf32>
    %179 = tpu.matmul %160, %176, %cst_71 {dimension_numbers = #tpu.dot_dimension_numbers<[1], [0], [0], [1], [0, 0, 1, 1], [], []>} : vector<16x8xf32>, vector<8x512xf32>, vector<16x512xf32> -> vector<16x512xf32>
    %180 = vector.broadcast %178 : vector<1x512xf32> to vector<16x512xf32>
    %181 = arith.addf %179, %180 : vector<16x512xf32>
    %cst_72 = arith.constant 0.000000e+00 : f32
    %182 = vector.broadcast %cst_72 : f32 to vector<16x512xf32>
    %183 = arith.maximumf %181, %182 : vector<16x512xf32>
    %c0_73 = arith.constant 0 : index
    %c16_74 = arith.constant 16 : index
    %c512_75 = arith.constant 512 : index
    %184 = vector.load %arg4[%c0_73, %c16_74, %c512_75] : memref<2x24x2048xf32, #tpu.memory_space<vmem>>, vector<1x8x512xf32>
    %185 = vector.shape_cast %184 : vector<1x8x512xf32> to vector<8x512xf32>
    %cst_76 = arith.constant dense<0.000000e+00> : vector<16x8xf32>
    %186 = tpu.matmul %183, %185, %cst_76 {dimension_numbers = #tpu.dot_dimension_numbers<[1], [1], [0], [0], [0, 0, 1, 0], [], []>} : vector<16x512xf32>, vector<8x512xf32>, vector<16x8xf32> -> vector<16x8xf32>
    %187 = arith.addf %174, %186 : vector<16x8xf32>
    %c0_77 = arith.constant 0 : index
    %c0_78 = arith.constant 0 : index
    %c1024 = arith.constant 1024 : index
    %188 = vector.load %arg4[%c0_77, %c0_78, %c1024] : memref<2x24x2048xf32, #tpu.memory_space<vmem>>, vector<1x8x512xf32>
    %189 = vector.shape_cast %188 : vector<1x8x512xf32> to vector<8x512xf32>
    %c0_79 = arith.constant 0 : index
    %c8_80 = arith.constant 8 : index
    %c1024_81 = arith.constant 1024 : index
    %190 = vector.load %arg4[%c0_79, %c8_80, %c1024_81] : memref<2x24x2048xf32, #tpu.memory_space<vmem>>, vector<1x1x512xf32>
    %191 = vector.shape_cast %190 : vector<1x1x512xf32> to vector<1x512xf32>
    %cst_82 = arith.constant dense<0.000000e+00> : vector<16x512xf32>
    %192 = tpu.matmul %160, %189, %cst_82 {dimension_numbers = #tpu.dot_dimension_numbers<[1], [0], [0], [1], [0, 0, 1, 1], [], []>} : vector<16x8xf32>, vector<8x512xf32>, vector<16x512xf32> -> vector<16x512xf32>
    %193 = vector.broadcast %191 : vector<1x512xf32> to vector<16x512xf32>
    %194 = arith.addf %192, %193 : vector<16x512xf32>
    %cst_83 = arith.constant 0.000000e+00 : f32
    %195 = vector.broadcast %cst_83 : f32 to vector<16x512xf32>
    %196 = arith.maximumf %194, %195 : vector<16x512xf32>
    %c0_84 = arith.constant 0 : index
    %c16_85 = arith.constant 16 : index
    %c1024_86 = arith.constant 1024 : index
    %197 = vector.load %arg4[%c0_84, %c16_85, %c1024_86] : memref<2x24x2048xf32, #tpu.memory_space<vmem>>, vector<1x8x512xf32>
    %198 = vector.shape_cast %197 : vector<1x8x512xf32> to vector<8x512xf32>
    %cst_87 = arith.constant dense<0.000000e+00> : vector<16x8xf32>
    %199 = tpu.matmul %196, %198, %cst_87 {dimension_numbers = #tpu.dot_dimension_numbers<[1], [1], [0], [0], [0, 0, 1, 0], [], []>} : vector<16x512xf32>, vector<8x512xf32>, vector<16x8xf32> -> vector<16x8xf32>
    %200 = arith.addf %187, %199 : vector<16x8xf32>
    %c0_88 = arith.constant 0 : index
    %c0_89 = arith.constant 0 : index
    %c1536 = arith.constant 1536 : index
    %201 = vector.load %arg4[%c0_88, %c0_89, %c1536] : memref<2x24x2048xf32, #tpu.memory_space<vmem>>, vector<1x8x512xf32>
    %202 = vector.shape_cast %201 : vector<1x8x512xf32> to vector<8x512xf32>
    %c0_90 = arith.constant 0 : index
    %c8_91 = arith.constant 8 : index
    %c1536_92 = arith.constant 1536 : index
    %203 = vector.load %arg4[%c0_90, %c8_91, %c1536_92] : memref<2x24x2048xf32, #tpu.memory_space<vmem>>, vector<1x1x512xf32>
    %204 = vector.shape_cast %203 : vector<1x1x512xf32> to vector<1x512xf32>
    %cst_93 = arith.constant dense<0.000000e+00> : vector<16x512xf32>
    %205 = tpu.matmul %160, %202, %cst_93 {dimension_numbers = #tpu.dot_dimension_numbers<[1], [0], [0], [1], [0, 0, 1, 1], [], []>} : vector<16x8xf32>, vector<8x512xf32>, vector<16x512xf32> -> vector<16x512xf32>
    %206 = vector.broadcast %204 : vector<1x512xf32> to vector<16x512xf32>
    %207 = arith.addf %205, %206 : vector<16x512xf32>
    %cst_94 = arith.constant 0.000000e+00 : f32
    %208 = vector.broadcast %cst_94 : f32 to vector<16x512xf32>
    %209 = arith.maximumf %207, %208 : vector<16x512xf32>
    %c0_95 = arith.constant 0 : index
    %c16_96 = arith.constant 16 : index
    %c1536_97 = arith.constant 1536 : index
    %210 = vector.load %arg4[%c0_95, %c16_96, %c1536_97] : memref<2x24x2048xf32, #tpu.memory_space<vmem>>, vector<1x8x512xf32>
    %211 = vector.shape_cast %210 : vector<1x8x512xf32> to vector<8x512xf32>
    %cst_98 = arith.constant dense<0.000000e+00> : vector<16x8xf32>
    %212 = tpu.matmul %209, %211, %cst_98 {dimension_numbers = #tpu.dot_dimension_numbers<[1], [1], [0], [0], [0, 0, 1, 0], [], []>} : vector<16x512xf32>, vector<8x512xf32>, vector<16x8xf32> -> vector<16x8xf32>
    %213 = arith.addf %200, %212 : vector<16x8xf32>
    %c44 = arith.constant 44 : index
    %c0_99 = arith.constant 0 : index
    %214 = vector.load %arg3[%c44, %c0_99] : memref<86x8xf32, #tpu.memory_space<vmem>>, vector<1x8xf32>
    %215 = vector.broadcast %214 : vector<1x8xf32> to vector<16x8xf32>
    %216 = arith.addf %213, %215 : vector<16x8xf32>
    %217 = arith.addf %160, %216 : vector<16x8xf32>
    %c42 = arith.constant 42 : index
    %c0_100 = arith.constant 0 : index
    %218 = vector.load %arg3[%c42, %c0_100] : memref<86x8xf32, #tpu.memory_space<vmem>>, vector<1x8xf32>
    %c43 = arith.constant 43 : index
    %c0_101 = arith.constant 0 : index
    %219 = vector.load %arg3[%c43, %c0_101] : memref<86x8xf32, #tpu.memory_space<vmem>>, vector<1x8xf32>
    %cst_102 = arith.constant dense<0.000000e+00> : vector<16xf32>
    %220 = vector.multi_reduction <add>, %217, %cst_102 [1] : vector<16x8xf32> to vector<16xf32>
    %221 = vector.shape_cast %220 : vector<16xf32> to vector<16x1xf32>
    %cst_103 = arith.constant 8.000000e+00 : f32
    %222 = vector.broadcast %cst_103 : f32 to vector<16x1xf32>
    %223 = arith.divf %221, %222 : vector<16x1xf32>
    %224 = vector.broadcast %223 : vector<16x1xf32> to vector<16x8xf32>
    %225 = arith.subf %217, %224 : vector<16x8xf32>
    %226 = arith.mulf %225, %225 : vector<16x8xf32>
    %cst_104 = arith.constant dense<0.000000e+00> : vector<16xf32>
    %227 = vector.multi_reduction <add>, %226, %cst_104 [1] : vector<16x8xf32> to vector<16xf32>
    %228 = vector.shape_cast %227 : vector<16xf32> to vector<16x1xf32>
    %cst_105 = arith.constant 8.000000e+00 : f32
    %229 = vector.broadcast %cst_105 : f32 to vector<16x1xf32>
    %230 = arith.divf %228, %229 : vector<16x1xf32>
    %cst_106 = arith.constant 9.99999974E-6 : f32
    %231 = vector.broadcast %cst_106 : f32 to vector<16x1xf32>
    %232 = arith.addf %230, %231 : vector<16x1xf32>
    %233 = math.rsqrt %232 : vector<16x1xf32>
    %234 = vector.broadcast %233 : vector<16x1xf32> to vector<16x8xf32>
    %235 = arith.mulf %225, %234 : vector<16x8xf32>
    %236 = vector.broadcast %218 : vector<1x8xf32> to vector<16x8xf32>
    %237 = arith.mulf %235, %236 : vector<16x8xf32>
    %238 = vector.broadcast %219 : vector<1x8xf32> to vector<16x8xf32>
    %239 = arith.addf %237, %238 : vector<16x8xf32>
    %240 = vector.extract_strided_slice %239 {offsets = [0, 0], sizes = [14, 8], strides = [1, 1]} : vector<16x8xf32> to vector<14x8xf32>
    %241 = tpu.concatenate %43, %240 in 0 : vector<2x8xf32>, vector<14x8xf32> -> vector<16x8xf32>
    %242 = vector.extract_strided_slice %239 {offsets = [2, 0], sizes = [14, 8], strides = [1, 1]} : vector<16x8xf32> to vector<14x8xf32>
    %243 = tpu.concatenate %242, %43 in 0 : vector<14x8xf32>, vector<2x8xf32> -> vector<16x8xf32>
    %244 = tpu.concatenate %241, %239, %243 in 1 : vector<16x8xf32>, vector<16x8xf32>, vector<16x8xf32> -> vector<16x24xf32>
    %c45 = arith.constant 45 : index
    %c0_107 = arith.constant 0 : index
    %245 = vector.load %arg3[%c45, %c0_107] : memref<86x8xf32, #tpu.memory_space<vmem>>, vector<24x8xf32>
    %c69 = arith.constant 69 : index
    %c0_108 = arith.constant 0 : index
    %246 = vector.load %arg3[%c69, %c0_108] : memref<86x8xf32, #tpu.memory_space<vmem>>, vector<1x8xf32>
    %cst_109 = arith.constant dense<0.000000e+00> : vector<16x8xf32>
    %247 = tpu.matmul %244, %245, %cst_109 {dimension_numbers = #tpu.dot_dimension_numbers<[1], [0], [0], [1], [0, 0, 1, 1], [], []>} : vector<16x24xf32>, vector<24x8xf32>, vector<16x8xf32> -> vector<16x8xf32>
    %248 = vector.broadcast %246 : vector<1x8xf32> to vector<16x8xf32>
    %249 = arith.addf %247, %248 : vector<16x8xf32>
    %250 = arith.addf %239, %249 : vector<16x8xf32>
    %c27 = arith.constant 27 : index
    %c0_110 = arith.constant 0 : index
    %251 = vector.load %arg2[%c27, %c0_110] : memref<54x24xf32, #tpu.memory_space<vmem>>, vector<8x24xf32>
    %c35 = arith.constant 35 : index
    %c0_111 = arith.constant 0 : index
    %252 = vector.load %arg2[%c35, %c0_111] : memref<54x24xf32, #tpu.memory_space<vmem>>, vector<1x24xf32>
    %cst_112 = arith.constant dense<0.000000e+00> : vector<16x24xf32>
    %253 = tpu.matmul %250, %251, %cst_112 {dimension_numbers = #tpu.dot_dimension_numbers<[1], [0], [0], [1], [0, 0, 1, 1], [], []>} : vector<16x8xf32>, vector<8x24xf32>, vector<16x24xf32> -> vector<16x24xf32>
    %254 = vector.broadcast %252 : vector<1x24xf32> to vector<16x24xf32>
    %255 = arith.addf %253, %254 : vector<16x24xf32>
    %256 = vector.extract_strided_slice %255 {offsets = [0, 0], sizes = [16, 2], strides = [1, 1]} : vector<16x24xf32> to vector<16x2xf32>
    %257 = vector.extract_strided_slice %255 {offsets = [0, 8], sizes = [16, 2], strides = [1, 1]} : vector<16x24xf32> to vector<16x2xf32>
    %258 = vector.extract_strided_slice %255 {offsets = [0, 16], sizes = [16, 2], strides = [1, 1]} : vector<16x24xf32> to vector<16x2xf32>
    %cst_113 = arith.constant dense<0.000000e+00> : vector<16x16xf32>
    %259 = tpu.matmul %256, %257, %cst_113 {dimension_numbers = #tpu.dot_dimension_numbers<[1], [1], [0], [0], [0, 0, 1, 0], [], []>} : vector<16x2xf32>, vector<16x2xf32>, vector<16x16xf32> -> vector<16x16xf32>
    %cst_114 = arith.constant 0.707106769 : f32
    %260 = vector.broadcast %cst_114 : f32 to vector<16x16xf32>
    %261 = arith.mulf %259, %260 : vector<16x16xf32>
    %262 = arith.addf %261, %42 : vector<16x16xf32>
    %cst_115 = arith.constant dense<0xFF800000> : vector<16xf32>
    %263 = vector.multi_reduction <maximumf>, %262, %cst_115 [1] : vector<16x16xf32> to vector<16xf32>
    %264 = vector.shape_cast %263 : vector<16xf32> to vector<16x1xf32>
    %265 = vector.broadcast %264 : vector<16x1xf32> to vector<16x16xf32>
    %266 = arith.subf %262, %265 : vector<16x16xf32>
    %267 = math.exp %266 : vector<16x16xf32>
    %cst_116 = arith.constant dense<0.000000e+00> : vector<16xf32>
    %268 = vector.multi_reduction <add>, %267, %cst_116 [1] : vector<16x16xf32> to vector<16xf32>
    %269 = vector.shape_cast %268 : vector<16xf32> to vector<16x1xf32>
    %cst_117 = arith.constant dense<0.000000e+00> : vector<16x2xf32>
    %270 = tpu.matmul %267, %258, %cst_117 {dimension_numbers = #tpu.dot_dimension_numbers<[1], [0], [0], [1], [0, 0, 1, 1], [], []>} : vector<16x16xf32>, vector<16x2xf32>, vector<16x2xf32> -> vector<16x2xf32>
    %271 = tpu.reciprocal %269 {approx = true} : vector<16x1xf32> -> vector<16x1xf32>
    %272 = vector.broadcast %271 : vector<16x1xf32> to vector<16x2xf32>
    %273 = arith.mulf %270, %272 : vector<16x2xf32>
    %274 = vector.extract_strided_slice %255 {offsets = [0, 2], sizes = [16, 2], strides = [1, 1]} : vector<16x24xf32> to vector<16x2xf32>
    %275 = vector.extract_strided_slice %255 {offsets = [0, 10], sizes = [16, 2], strides = [1, 1]} : vector<16x24xf32> to vector<16x2xf32>
    %276 = vector.extract_strided_slice %255 {offsets = [0, 18], sizes = [16, 2], strides = [1, 1]} : vector<16x24xf32> to vector<16x2xf32>
    %cst_118 = arith.constant dense<0.000000e+00> : vector<16x16xf32>
    %277 = tpu.matmul %274, %275, %cst_118 {dimension_numbers = #tpu.dot_dimension_numbers<[1], [1], [0], [0], [0, 0, 1, 0], [], []>} : vector<16x2xf32>, vector<16x2xf32>, vector<16x16xf32> -> vector<16x16xf32>
    %cst_119 = arith.constant 0.707106769 : f32
    %278 = vector.broadcast %cst_119 : f32 to vector<16x16xf32>
    %279 = arith.mulf %277, %278 : vector<16x16xf32>
    %280 = arith.addf %279, %42 : vector<16x16xf32>
    %cst_120 = arith.constant dense<0xFF800000> : vector<16xf32>
    %281 = vector.multi_reduction <maximumf>, %280, %cst_120 [1] : vector<16x16xf32> to vector<16xf32>
    %282 = vector.shape_cast %281 : vector<16xf32> to vector<16x1xf32>
    %283 = vector.broadcast %282 : vector<16x1xf32> to vector<16x16xf32>
    %284 = arith.subf %280, %283 : vector<16x16xf32>
    %285 = math.exp %284 : vector<16x16xf32>
    %cst_121 = arith.constant dense<0.000000e+00> : vector<16xf32>
    %286 = vector.multi_reduction <add>, %285, %cst_121 [1] : vector<16x16xf32> to vector<16xf32>
    %287 = vector.shape_cast %286 : vector<16xf32> to vector<16x1xf32>
    %cst_122 = arith.constant dense<0.000000e+00> : vector<16x2xf32>
    %288 = tpu.matmul %285, %276, %cst_122 {dimension_numbers = #tpu.dot_dimension_numbers<[1], [0], [0], [1], [0, 0, 1, 1], [], []>} : vector<16x16xf32>, vector<16x2xf32>, vector<16x2xf32> -> vector<16x2xf32>
    %289 = tpu.reciprocal %287 {approx = true} : vector<16x1xf32> -> vector<16x1xf32>
    %290 = vector.broadcast %289 : vector<16x1xf32> to vector<16x2xf32>
    %291 = arith.mulf %288, %290 : vector<16x2xf32>
    %292 = vector.extract_strided_slice %255 {offsets = [0, 4], sizes = [16, 2], strides = [1, 1]} : vector<16x24xf32> to vector<16x2xf32>
    %293 = vector.extract_strided_slice %255 {offsets = [0, 12], sizes = [16, 2], strides = [1, 1]} : vector<16x24xf32> to vector<16x2xf32>
    %294 = vector.extract_strided_slice %255 {offsets = [0, 20], sizes = [16, 2], strides = [1, 1]} : vector<16x24xf32> to vector<16x2xf32>
    %cst_123 = arith.constant dense<0.000000e+00> : vector<16x16xf32>
    %295 = tpu.matmul %292, %293, %cst_123 {dimension_numbers = #tpu.dot_dimension_numbers<[1], [1], [0], [0], [0, 0, 1, 0], [], []>} : vector<16x2xf32>, vector<16x2xf32>, vector<16x16xf32> -> vector<16x16xf32>
    %cst_124 = arith.constant 0.707106769 : f32
    %296 = vector.broadcast %cst_124 : f32 to vector<16x16xf32>
    %297 = arith.mulf %295, %296 : vector<16x16xf32>
    %298 = arith.addf %297, %42 : vector<16x16xf32>
    %cst_125 = arith.constant dense<0xFF800000> : vector<16xf32>
    %299 = vector.multi_reduction <maximumf>, %298, %cst_125 [1] : vector<16x16xf32> to vector<16xf32>
    %300 = vector.shape_cast %299 : vector<16xf32> to vector<16x1xf32>
    %301 = vector.broadcast %300 : vector<16x1xf32> to vector<16x16xf32>
    %302 = arith.subf %298, %301 : vector<16x16xf32>
    %303 = math.exp %302 : vector<16x16xf32>
    %cst_126 = arith.constant dense<0.000000e+00> : vector<16xf32>
    %304 = vector.multi_reduction <add>, %303, %cst_126 [1] : vector<16x16xf32> to vector<16xf32>
    %305 = vector.shape_cast %304 : vector<16xf32> to vector<16x1xf32>
    %cst_127 = arith.constant dense<0.000000e+00> : vector<16x2xf32>
    %306 = tpu.matmul %303, %294, %cst_127 {dimension_numbers = #tpu.dot_dimension_numbers<[1], [0], [0], [1], [0, 0, 1, 1], [], []>} : vector<16x16xf32>, vector<16x2xf32>, vector<16x2xf32> -> vector<16x2xf32>
    %307 = tpu.reciprocal %305 {approx = true} : vector<16x1xf32> -> vector<16x1xf32>
    %308 = vector.broadcast %307 : vector<16x1xf32> to vector<16x2xf32>
    %309 = arith.mulf %306, %308 : vector<16x2xf32>
    %310 = vector.extract_strided_slice %255 {offsets = [0, 6], sizes = [16, 2], strides = [1, 1]} : vector<16x24xf32> to vector<16x2xf32>
    %311 = vector.extract_strided_slice %255 {offsets = [0, 14], sizes = [16, 2], strides = [1, 1]} : vector<16x24xf32> to vector<16x2xf32>
    %312 = vector.extract_strided_slice %255 {offsets = [0, 22], sizes = [16, 2], strides = [1, 1]} : vector<16x24xf32> to vector<16x2xf32>
    %cst_128 = arith.constant dense<0.000000e+00> : vector<16x16xf32>
    %313 = tpu.matmul %310, %311, %cst_128 {dimension_numbers = #tpu.dot_dimension_numbers<[1], [1], [0], [0], [0, 0, 1, 0], [], []>} : vector<16x2xf32>, vector<16x2xf32>, vector<16x16xf32> -> vector<16x16xf32>
    %cst_129 = arith.constant 0.707106769 : f32
    %314 = vector.broadcast %cst_129 : f32 to vector<16x16xf32>
    %315 = arith.mulf %313, %314 : vector<16x16xf32>
    %316 = arith.addf %315, %42 : vector<16x16xf32>
    %cst_130 = arith.constant dense<0xFF800000> : vector<16xf32>
    %317 = vector.multi_reduction <maximumf>, %316, %cst_130 [1] : vector<16x16xf32> to vector<16xf32>
    %318 = vector.shape_cast %317 : vector<16xf32> to vector<16x1xf32>
    %319 = vector.broadcast %318 : vector<16x1xf32> to vector<16x16xf32>
    %320 = arith.subf %316, %319 : vector<16x16xf32>
    %321 = math.exp %320 : vector<16x16xf32>
    %cst_131 = arith.constant dense<0.000000e+00> : vector<16xf32>
    %322 = vector.multi_reduction <add>, %321, %cst_131 [1] : vector<16x16xf32> to vector<16xf32>
    %323 = vector.shape_cast %322 : vector<16xf32> to vector<16x1xf32>
    %cst_132 = arith.constant dense<0.000000e+00> : vector<16x2xf32>
    %324 = tpu.matmul %321, %312, %cst_132 {dimension_numbers = #tpu.dot_dimension_numbers<[1], [0], [0], [1], [0, 0, 1, 1], [], []>} : vector<16x16xf32>, vector<16x2xf32>, vector<16x2xf32> -> vector<16x2xf32>
    %325 = tpu.reciprocal %323 {approx = true} : vector<16x1xf32> -> vector<16x1xf32>
    %326 = vector.broadcast %325 : vector<16x1xf32> to vector<16x2xf32>
    %327 = arith.mulf %324, %326 : vector<16x2xf32>
    %328 = tpu.concatenate %273, %291, %309, %327 in 1 : vector<16x2xf32>, vector<16x2xf32>, vector<16x2xf32>, vector<16x2xf32> -> vector<16x8xf32>
    %c70 = arith.constant 70 : index
    %c0_133 = arith.constant 0 : index
    %329 = vector.load %arg3[%c70, %c0_133] : memref<86x8xf32, #tpu.memory_space<vmem>>, vector<8x8xf32>
    %c78 = arith.constant 78 : index
    %c0_134 = arith.constant 0 : index
    %330 = vector.load %arg3[%c78, %c0_134] : memref<86x8xf32, #tpu.memory_space<vmem>>, vector<1x8xf32>
    %cst_135 = arith.constant dense<0.000000e+00> : vector<16x8xf32>
    %331 = tpu.matmul %328, %329, %cst_135 {dimension_numbers = #tpu.dot_dimension_numbers<[1], [0], [0], [1], [0, 0, 1, 1], [], []>} : vector<16x8xf32>, vector<8x8xf32>, vector<16x8xf32> -> vector<16x8xf32>
    %332 = vector.broadcast %330 : vector<1x8xf32> to vector<16x8xf32>
    %333 = arith.addf %331, %332 : vector<16x8xf32>
    %334 = arith.addf %250, %333 : vector<16x8xf32>
    %c79 = arith.constant 79 : index
    %c0_136 = arith.constant 0 : index
    %335 = vector.load %arg3[%c79, %c0_136] : memref<86x8xf32, #tpu.memory_space<vmem>>, vector<1x8xf32>
    %c80 = arith.constant 80 : index
    %c0_137 = arith.constant 0 : index
    %336 = vector.load %arg3[%c80, %c0_137] : memref<86x8xf32, #tpu.memory_space<vmem>>, vector<1x8xf32>
    %cst_138 = arith.constant dense<0.000000e+00> : vector<16xf32>
    %337 = vector.multi_reduction <add>, %334, %cst_138 [1] : vector<16x8xf32> to vector<16xf32>
    %338 = vector.shape_cast %337 : vector<16xf32> to vector<16x1xf32>
    %cst_139 = arith.constant 8.000000e+00 : f32
    %339 = vector.broadcast %cst_139 : f32 to vector<16x1xf32>
    %340 = arith.divf %338, %339 : vector<16x1xf32>
    %341 = vector.broadcast %340 : vector<16x1xf32> to vector<16x8xf32>
    %342 = arith.subf %334, %341 : vector<16x8xf32>
    %343 = arith.mulf %342, %342 : vector<16x8xf32>
    %cst_140 = arith.constant dense<0.000000e+00> : vector<16xf32>
    %344 = vector.multi_reduction <add>, %343, %cst_140 [1] : vector<16x8xf32> to vector<16xf32>
    %345 = vector.shape_cast %344 : vector<16xf32> to vector<16x1xf32>
    %cst_141 = arith.constant 8.000000e+00 : f32
    %346 = vector.broadcast %cst_141 : f32 to vector<16x1xf32>
    %347 = arith.divf %345, %346 : vector<16x1xf32>
    %cst_142 = arith.constant 9.99999974E-6 : f32
    %348 = vector.broadcast %cst_142 : f32 to vector<16x1xf32>
    %349 = arith.addf %347, %348 : vector<16x1xf32>
    %350 = math.rsqrt %349 : vector<16x1xf32>
    %351 = vector.broadcast %350 : vector<16x1xf32> to vector<16x8xf32>
    %352 = arith.mulf %342, %351 : vector<16x8xf32>
    %353 = vector.broadcast %335 : vector<1x8xf32> to vector<16x8xf32>
    %354 = arith.mulf %352, %353 : vector<16x8xf32>
    %355 = vector.broadcast %336 : vector<1x8xf32> to vector<16x8xf32>
    %356 = arith.addf %354, %355 : vector<16x8xf32>
    %cst_143 = arith.constant 0.000000e+00 : f32
    %357 = vector.broadcast %cst_143 : f32 to vector<16x8xf32>
    %c1 = arith.constant 1 : index
    %c0_144 = arith.constant 0 : index
    %c0_145 = arith.constant 0 : index
    %358 = vector.load %arg4[%c1, %c0_144, %c0_145] : memref<2x24x2048xf32, #tpu.memory_space<vmem>>, vector<1x8x512xf32>
    %359 = vector.shape_cast %358 : vector<1x8x512xf32> to vector<8x512xf32>
    %c1_146 = arith.constant 1 : index
    %c8_147 = arith.constant 8 : index
    %c0_148 = arith.constant 0 : index
    %360 = vector.load %arg4[%c1_146, %c8_147, %c0_148] : memref<2x24x2048xf32, #tpu.memory_space<vmem>>, vector<1x1x512xf32>
    %361 = vector.shape_cast %360 : vector<1x1x512xf32> to vector<1x512xf32>
    %cst_149 = arith.constant dense<0.000000e+00> : vector<16x512xf32>
    %362 = tpu.matmul %356, %359, %cst_149 {dimension_numbers = #tpu.dot_dimension_numbers<[1], [0], [0], [1], [0, 0, 1, 1], [], []>} : vector<16x8xf32>, vector<8x512xf32>, vector<16x512xf32> -> vector<16x512xf32>
    %363 = vector.broadcast %361 : vector<1x512xf32> to vector<16x512xf32>
    %364 = arith.addf %362, %363 : vector<16x512xf32>
    %cst_150 = arith.constant 0.000000e+00 : f32
    %365 = vector.broadcast %cst_150 : f32 to vector<16x512xf32>
    %366 = arith.maximumf %364, %365 : vector<16x512xf32>
    %c1_151 = arith.constant 1 : index
    %c16_152 = arith.constant 16 : index
    %c0_153 = arith.constant 0 : index
    %367 = vector.load %arg4[%c1_151, %c16_152, %c0_153] : memref<2x24x2048xf32, #tpu.memory_space<vmem>>, vector<1x8x512xf32>
    %368 = vector.shape_cast %367 : vector<1x8x512xf32> to vector<8x512xf32>
    %cst_154 = arith.constant dense<0.000000e+00> : vector<16x8xf32>
    %369 = tpu.matmul %366, %368, %cst_154 {dimension_numbers = #tpu.dot_dimension_numbers<[1], [1], [0], [0], [0, 0, 1, 0], [], []>} : vector<16x512xf32>, vector<8x512xf32>, vector<16x8xf32> -> vector<16x8xf32>
    %370 = arith.addf %357, %369 : vector<16x8xf32>
    %c1_155 = arith.constant 1 : index
    %c0_156 = arith.constant 0 : index
    %c512_157 = arith.constant 512 : index
    %371 = vector.load %arg4[%c1_155, %c0_156, %c512_157] : memref<2x24x2048xf32, #tpu.memory_space<vmem>>, vector<1x8x512xf32>
    %372 = vector.shape_cast %371 : vector<1x8x512xf32> to vector<8x512xf32>
    %c1_158 = arith.constant 1 : index
    %c8_159 = arith.constant 8 : index
    %c512_160 = arith.constant 512 : index
    %373 = vector.load %arg4[%c1_158, %c8_159, %c512_160] : memref<2x24x2048xf32, #tpu.memory_space<vmem>>, vector<1x1x512xf32>
    %374 = vector.shape_cast %373 : vector<1x1x512xf32> to vector<1x512xf32>
    %cst_161 = arith.constant dense<0.000000e+00> : vector<16x512xf32>
    %375 = tpu.matmul %356, %372, %cst_161 {dimension_numbers = #tpu.dot_dimension_numbers<[1], [0], [0], [1], [0, 0, 1, 1], [], []>} : vector<16x8xf32>, vector<8x512xf32>, vector<16x512xf32> -> vector<16x512xf32>
    %376 = vector.broadcast %374 : vector<1x512xf32> to vector<16x512xf32>
    %377 = arith.addf %375, %376 : vector<16x512xf32>
    %cst_162 = arith.constant 0.000000e+00 : f32
    %378 = vector.broadcast %cst_162 : f32 to vector<16x512xf32>
    %379 = arith.maximumf %377, %378 : vector<16x512xf32>
    %c1_163 = arith.constant 1 : index
    %c16_164 = arith.constant 16 : index
    %c512_165 = arith.constant 512 : index
    %380 = vector.load %arg4[%c1_163, %c16_164, %c512_165] : memref<2x24x2048xf32, #tpu.memory_space<vmem>>, vector<1x8x512xf32>
    %381 = vector.shape_cast %380 : vector<1x8x512xf32> to vector<8x512xf32>
    %cst_166 = arith.constant dense<0.000000e+00> : vector<16x8xf32>
    %382 = tpu.matmul %379, %381, %cst_166 {dimension_numbers = #tpu.dot_dimension_numbers<[1], [1], [0], [0], [0, 0, 1, 0], [], []>} : vector<16x512xf32>, vector<8x512xf32>, vector<16x8xf32> -> vector<16x8xf32>
    %383 = arith.addf %370, %382 : vector<16x8xf32>
    %c1_167 = arith.constant 1 : index
    %c0_168 = arith.constant 0 : index
    %c1024_169 = arith.constant 1024 : index
    %384 = vector.load %arg4[%c1_167, %c0_168, %c1024_169] : memref<2x24x2048xf32, #tpu.memory_space<vmem>>, vector<1x8x512xf32>
    %385 = vector.shape_cast %384 : vector<1x8x512xf32> to vector<8x512xf32>
    %c1_170 = arith.constant 1 : index
    %c8_171 = arith.constant 8 : index
    %c1024_172 = arith.constant 1024 : index
    %386 = vector.load %arg4[%c1_170, %c8_171, %c1024_172] : memref<2x24x2048xf32, #tpu.memory_space<vmem>>, vector<1x1x512xf32>
    %387 = vector.shape_cast %386 : vector<1x1x512xf32> to vector<1x512xf32>
    %cst_173 = arith.constant dense<0.000000e+00> : vector<16x512xf32>
    %388 = tpu.matmul %356, %385, %cst_173 {dimension_numbers = #tpu.dot_dimension_numbers<[1], [0], [0], [1], [0, 0, 1, 1], [], []>} : vector<16x8xf32>, vector<8x512xf32>, vector<16x512xf32> -> vector<16x512xf32>
    %389 = vector.broadcast %387 : vector<1x512xf32> to vector<16x512xf32>
    %390 = arith.addf %388, %389 : vector<16x512xf32>
    %cst_174 = arith.constant 0.000000e+00 : f32
    %391 = vector.broadcast %cst_174 : f32 to vector<16x512xf32>
    %392 = arith.maximumf %390, %391 : vector<16x512xf32>
    %c1_175 = arith.constant 1 : index
    %c16_176 = arith.constant 16 : index
    %c1024_177 = arith.constant 1024 : index
    %393 = vector.load %arg4[%c1_175, %c16_176, %c1024_177] : memref<2x24x2048xf32, #tpu.memory_space<vmem>>, vector<1x8x512xf32>
    %394 = vector.shape_cast %393 : vector<1x8x512xf32> to vector<8x512xf32>
    %cst_178 = arith.constant dense<0.000000e+00> : vector<16x8xf32>
    %395 = tpu.matmul %392, %394, %cst_178 {dimension_numbers = #tpu.dot_dimension_numbers<[1], [1], [0], [0], [0, 0, 1, 0], [], []>} : vector<16x512xf32>, vector<8x512xf32>, vector<16x8xf32> -> vector<16x8xf32>
    %396 = arith.addf %383, %395 : vector<16x8xf32>
    %c1_179 = arith.constant 1 : index
    %c0_180 = arith.constant 0 : index
    %c1536_181 = arith.constant 1536 : index
    %397 = vector.load %arg4[%c1_179, %c0_180, %c1536_181] : memref<2x24x2048xf32, #tpu.memory_space<vmem>>, vector<1x8x512xf32>
    %398 = vector.shape_cast %397 : vector<1x8x512xf32> to vector<8x512xf32>
    %c1_182 = arith.constant 1 : index
    %c8_183 = arith.constant 8 : index
    %c1536_184 = arith.constant 1536 : index
    %399 = vector.load %arg4[%c1_182, %c8_183, %c1536_184] : memref<2x24x2048xf32, #tpu.memory_space<vmem>>, vector<1x1x512xf32>
    %400 = vector.shape_cast %399 : vector<1x1x512xf32> to vector<1x512xf32>
    %cst_185 = arith.constant dense<0.000000e+00> : vector<16x512xf32>
    %401 = tpu.matmul %356, %398, %cst_185 {dimension_numbers = #tpu.dot_dimension_numbers<[1], [0], [0], [1], [0, 0, 1, 1], [], []>} : vector<16x8xf32>, vector<8x512xf32>, vector<16x512xf32> -> vector<16x512xf32>
    %402 = vector.broadcast %400 : vector<1x512xf32> to vector<16x512xf32>
    %403 = arith.addf %401, %402 : vector<16x512xf32>
    %cst_186 = arith.constant 0.000000e+00 : f32
    %404 = vector.broadcast %cst_186 : f32 to vector<16x512xf32>
    %405 = arith.maximumf %403, %404 : vector<16x512xf32>
    %c1_187 = arith.constant 1 : index
    %c16_188 = arith.constant 16 : index
    %c1536_189 = arith.constant 1536 : index
    %406 = vector.load %arg4[%c1_187, %c16_188, %c1536_189] : memref<2x24x2048xf32, #tpu.memory_space<vmem>>, vector<1x8x512xf32>
    %407 = vector.shape_cast %406 : vector<1x8x512xf32> to vector<8x512xf32>
    %cst_190 = arith.constant dense<0.000000e+00> : vector<16x8xf32>
    %408 = tpu.matmul %405, %407, %cst_190 {dimension_numbers = #tpu.dot_dimension_numbers<[1], [1], [0], [0], [0, 0, 1, 0], [], []>} : vector<16x512xf32>, vector<8x512xf32>, vector<16x8xf32> -> vector<16x8xf32>
    %409 = arith.addf %396, %408 : vector<16x8xf32>
    %c83 = arith.constant 83 : index
    %c0_191 = arith.constant 0 : index
    %410 = vector.load %arg3[%c83, %c0_191] : memref<86x8xf32, #tpu.memory_space<vmem>>, vector<1x8xf32>
    %411 = vector.broadcast %410 : vector<1x8xf32> to vector<16x8xf32>
    %412 = arith.addf %409, %411 : vector<16x8xf32>
    %413 = arith.addf %356, %412 : vector<16x8xf32>
    %c81 = arith.constant 81 : index
    %c0_192 = arith.constant 0 : index
    %414 = vector.load %arg3[%c81, %c0_192] : memref<86x8xf32, #tpu.memory_space<vmem>>, vector<1x8xf32>
    %c82 = arith.constant 82 : index
    %c0_193 = arith.constant 0 : index
    %415 = vector.load %arg3[%c82, %c0_193] : memref<86x8xf32, #tpu.memory_space<vmem>>, vector<1x8xf32>
    %cst_194 = arith.constant dense<0.000000e+00> : vector<16xf32>
    %416 = vector.multi_reduction <add>, %413, %cst_194 [1] : vector<16x8xf32> to vector<16xf32>
    %417 = vector.shape_cast %416 : vector<16xf32> to vector<16x1xf32>
    %cst_195 = arith.constant 8.000000e+00 : f32
    %418 = vector.broadcast %cst_195 : f32 to vector<16x1xf32>
    %419 = arith.divf %417, %418 : vector<16x1xf32>
    %420 = vector.broadcast %419 : vector<16x1xf32> to vector<16x8xf32>
    %421 = arith.subf %413, %420 : vector<16x8xf32>
    %422 = arith.mulf %421, %421 : vector<16x8xf32>
    %cst_196 = arith.constant dense<0.000000e+00> : vector<16xf32>
    %423 = vector.multi_reduction <add>, %422, %cst_196 [1] : vector<16x8xf32> to vector<16xf32>
    %424 = vector.shape_cast %423 : vector<16xf32> to vector<16x1xf32>
    %cst_197 = arith.constant 8.000000e+00 : f32
    %425 = vector.broadcast %cst_197 : f32 to vector<16x1xf32>
    %426 = arith.divf %424, %425 : vector<16x1xf32>
    %cst_198 = arith.constant 9.99999974E-6 : f32
    %427 = vector.broadcast %cst_198 : f32 to vector<16x1xf32>
    %428 = arith.addf %426, %427 : vector<16x1xf32>
    %429 = math.rsqrt %428 : vector<16x1xf32>
    %430 = vector.broadcast %429 : vector<16x1xf32> to vector<16x8xf32>
    %431 = arith.mulf %421, %430 : vector<16x8xf32>
    %432 = vector.broadcast %414 : vector<1x8xf32> to vector<16x8xf32>
    %433 = arith.mulf %431, %432 : vector<16x8xf32>
    %434 = vector.broadcast %415 : vector<1x8xf32> to vector<16x8xf32>
    %435 = arith.addf %433, %434 : vector<16x8xf32>
    %436 = arith.addf %435, %249 : vector<16x8xf32>
    %c9 = arith.constant 9 : index
    %c0_199 = arith.constant 0 : index
    %437 = vector.load %arg2[%c9, %c0_199] : memref<54x24xf32, #tpu.memory_space<vmem>>, vector<8x24xf32>
    %c17 = arith.constant 17 : index
    %c0_200 = arith.constant 0 : index
    %438 = vector.load %arg2[%c17, %c0_200] : memref<54x24xf32, #tpu.memory_space<vmem>>, vector<1x24xf32>
    %c18 = arith.constant 18 : index
    %c0_201 = arith.constant 0 : index
    %439 = vector.load %arg2[%c18, %c0_201] : memref<54x24xf32, #tpu.memory_space<vmem>>, vector<8x24xf32>
    %c26 = arith.constant 26 : index
    %c0_202 = arith.constant 0 : index
    %440 = vector.load %arg2[%c26, %c0_202] : memref<54x24xf32, #tpu.memory_space<vmem>>, vector<1x24xf32>
    %c36 = arith.constant 36 : index
    %c0_203 = arith.constant 0 : index
    %441 = vector.load %arg2[%c36, %c0_203] : memref<54x24xf32, #tpu.memory_space<vmem>>, vector<8x24xf32>
    %c44_204 = arith.constant 44 : index
    %c0_205 = arith.constant 0 : index
    %442 = vector.load %arg2[%c44_204, %c0_205] : memref<54x24xf32, #tpu.memory_space<vmem>>, vector<1x24xf32>
    %c45_206 = arith.constant 45 : index
    %c0_207 = arith.constant 0 : index
    %443 = vector.load %arg2[%c45_206, %c0_207] : memref<54x24xf32, #tpu.memory_space<vmem>>, vector<8x24xf32>
    %c53 = arith.constant 53 : index
    %c0_208 = arith.constant 0 : index
    %444 = vector.load %arg2[%c53, %c0_208] : memref<54x24xf32, #tpu.memory_space<vmem>>, vector<1x24xf32>
    %cst_209 = arith.constant dense<0.000000e+00> : vector<16x24xf32>
    %445 = tpu.matmul %436, %437, %cst_209 {dimension_numbers = #tpu.dot_dimension_numbers<[1], [0], [0], [1], [0, 0, 1, 1], [], []>} : vector<16x8xf32>, vector<8x24xf32>, vector<16x24xf32> -> vector<16x24xf32>
    %446 = vector.broadcast %438 : vector<1x24xf32> to vector<16x24xf32>
    %447 = arith.addf %445, %446 : vector<16x24xf32>
    %cst_210 = arith.constant 0.000000e+00 : f32
    %448 = vector.broadcast %cst_210 : f32 to vector<2x8xf32>
    %cst_211 = arith.constant 0.000000e+00 : f32
    %449 = vector.broadcast %cst_211 : f32 to vector<2x8xf32>
    %450 = vector.extract_strided_slice %447 {offsets = [0, 0], sizes = [2, 24], strides = [1, 1]} : vector<16x24xf32> to vector<2x24xf32>
    %cst_212 = arith.constant dense<0.000000e+00> : vector<2x24xf32>
    %451 = tpu.matmul %448, %439, %cst_212 {dimension_numbers = #tpu.dot_dimension_numbers<[1], [0], [0], [1], [0, 0, 1, 1], [], []>} : vector<2x8xf32>, vector<8x24xf32>, vector<2x24xf32> -> vector<2x24xf32>
    %452 = vector.broadcast %440 : vector<1x24xf32> to vector<2x24xf32>
    %453 = arith.addf %451, %452 : vector<2x24xf32>
    %454 = vector.extract_strided_slice %450 {offsets = [0, 0], sizes = [2, 8], strides = [1, 1]} : vector<2x24xf32> to vector<2x8xf32>
    %455 = vector.extract_strided_slice %453 {offsets = [0, 0], sizes = [2, 8], strides = [1, 1]} : vector<2x24xf32> to vector<2x8xf32>
    %456 = arith.addf %454, %455 : vector<2x8xf32>
    %457 = arith.negf %456 : vector<2x8xf32>
    %458 = math.exp %457 : vector<2x8xf32>
    %cst_213 = arith.constant 1.000000e+00 : f32
    %459 = vector.broadcast %cst_213 : f32 to vector<2x8xf32>
    %460 = arith.addf %459, %458 : vector<2x8xf32>
    %461 = arith.divf %459, %460 : vector<2x8xf32>
    %462 = vector.extract_strided_slice %450 {offsets = [0, 8], sizes = [2, 8], strides = [1, 1]} : vector<2x24xf32> to vector<2x8xf32>
    %463 = vector.extract_strided_slice %453 {offsets = [0, 8], sizes = [2, 8], strides = [1, 1]} : vector<2x24xf32> to vector<2x8xf32>
    %464 = arith.addf %462, %463 : vector<2x8xf32>
    %465 = arith.negf %464 : vector<2x8xf32>
    %466 = math.exp %465 : vector<2x8xf32>
    %cst_214 = arith.constant 1.000000e+00 : f32
    %467 = vector.broadcast %cst_214 : f32 to vector<2x8xf32>
    %468 = arith.addf %467, %466 : vector<2x8xf32>
    %469 = arith.divf %467, %468 : vector<2x8xf32>
    %470 = vector.extract_strided_slice %450 {offsets = [0, 16], sizes = [2, 8], strides = [1, 1]} : vector<2x24xf32> to vector<2x8xf32>
    %471 = vector.extract_strided_slice %453 {offsets = [0, 16], sizes = [2, 8], strides = [1, 1]} : vector<2x24xf32> to vector<2x8xf32>
    %472 = arith.mulf %461, %471 : vector<2x8xf32>
    %473 = arith.addf %470, %472 : vector<2x8xf32>
    %474 = math.tanh %473 : vector<2x8xf32>
    %cst_215 = arith.constant 1.000000e+00 : f32
    %475 = vector.broadcast %cst_215 : f32 to vector<2x8xf32>
    %476 = arith.subf %475, %469 : vector<2x8xf32>
    %477 = arith.mulf %476, %474 : vector<2x8xf32>
    %478 = arith.mulf %469, %448 : vector<2x8xf32>
    %479 = arith.addf %477, %478 : vector<2x8xf32>
    %cst_216 = arith.constant dense<0.000000e+00> : vector<2x24xf32>
    %480 = tpu.matmul %479, %441, %cst_216 {dimension_numbers = #tpu.dot_dimension_numbers<[1], [0], [0], [1], [0, 0, 1, 1], [], []>} : vector<2x8xf32>, vector<8x24xf32>, vector<2x24xf32> -> vector<2x24xf32>
    %481 = vector.broadcast %442 : vector<1x24xf32> to vector<2x24xf32>
    %482 = arith.addf %480, %481 : vector<2x24xf32>
    %cst_217 = arith.constant dense<0.000000e+00> : vector<2x24xf32>
    %483 = tpu.matmul %449, %443, %cst_217 {dimension_numbers = #tpu.dot_dimension_numbers<[1], [0], [0], [1], [0, 0, 1, 1], [], []>} : vector<2x8xf32>, vector<8x24xf32>, vector<2x24xf32> -> vector<2x24xf32>
    %484 = vector.broadcast %444 : vector<1x24xf32> to vector<2x24xf32>
    %485 = arith.addf %483, %484 : vector<2x24xf32>
    %486 = vector.extract_strided_slice %482 {offsets = [0, 0], sizes = [2, 8], strides = [1, 1]} : vector<2x24xf32> to vector<2x8xf32>
    %487 = vector.extract_strided_slice %485 {offsets = [0, 0], sizes = [2, 8], strides = [1, 1]} : vector<2x24xf32> to vector<2x8xf32>
    %488 = arith.addf %486, %487 : vector<2x8xf32>
    %489 = arith.negf %488 : vector<2x8xf32>
    %490 = math.exp %489 : vector<2x8xf32>
    %cst_218 = arith.constant 1.000000e+00 : f32
    %491 = vector.broadcast %cst_218 : f32 to vector<2x8xf32>
    %492 = arith.addf %491, %490 : vector<2x8xf32>
    %493 = arith.divf %491, %492 : vector<2x8xf32>
    %494 = vector.extract_strided_slice %482 {offsets = [0, 8], sizes = [2, 8], strides = [1, 1]} : vector<2x24xf32> to vector<2x8xf32>
    %495 = vector.extract_strided_slice %485 {offsets = [0, 8], sizes = [2, 8], strides = [1, 1]} : vector<2x24xf32> to vector<2x8xf32>
    %496 = arith.addf %494, %495 : vector<2x8xf32>
    %497 = arith.negf %496 : vector<2x8xf32>
    %498 = math.exp %497 : vector<2x8xf32>
    %cst_219 = arith.constant 1.000000e+00 : f32
    %499 = vector.broadcast %cst_219 : f32 to vector<2x8xf32>
    %500 = arith.addf %499, %498 : vector<2x8xf32>
    %501 = arith.divf %499, %500 : vector<2x8xf32>
    %502 = vector.extract_strided_slice %482 {offsets = [0, 16], sizes = [2, 8], strides = [1, 1]} : vector<2x24xf32> to vector<2x8xf32>
    %503 = vector.extract_strided_slice %485 {offsets = [0, 16], sizes = [2, 8], strides = [1, 1]} : vector<2x24xf32> to vector<2x8xf32>
    %504 = arith.mulf %493, %503 : vector<2x8xf32>
    %505 = arith.addf %502, %504 : vector<2x8xf32>
    %506 = math.tanh %505 : vector<2x8xf32>
    %cst_220 = arith.constant 1.000000e+00 : f32
    %507 = vector.broadcast %cst_220 : f32 to vector<2x8xf32>
    %508 = arith.subf %507, %501 : vector<2x8xf32>
    %509 = arith.mulf %508, %506 : vector<2x8xf32>
    %510 = arith.mulf %501, %449 : vector<2x8xf32>
    %511 = arith.addf %509, %510 : vector<2x8xf32>
    %512 = vector.extract_strided_slice %447 {offsets = [2, 0], sizes = [2, 24], strides = [1, 1]} : vector<16x24xf32> to vector<2x24xf32>
    %cst_221 = arith.constant dense<0.000000e+00> : vector<2x24xf32>
    %513 = tpu.matmul %479, %439, %cst_221 {dimension_numbers = #tpu.dot_dimension_numbers<[1], [0], [0], [1], [0, 0, 1, 1], [], []>} : vector<2x8xf32>, vector<8x24xf32>, vector<2x24xf32> -> vector<2x24xf32>
    %514 = vector.broadcast %440 : vector<1x24xf32> to vector<2x24xf32>
    %515 = arith.addf %513, %514 : vector<2x24xf32>
    %516 = vector.extract_strided_slice %512 {offsets = [0, 0], sizes = [2, 8], strides = [1, 1]} : vector<2x24xf32> to vector<2x8xf32>
    %517 = vector.extract_strided_slice %515 {offsets = [0, 0], sizes = [2, 8], strides = [1, 1]} : vector<2x24xf32> to vector<2x8xf32>
    %518 = arith.addf %516, %517 : vector<2x8xf32>
    %519 = arith.negf %518 : vector<2x8xf32>
    %520 = math.exp %519 : vector<2x8xf32>
    %cst_222 = arith.constant 1.000000e+00 : f32
    %521 = vector.broadcast %cst_222 : f32 to vector<2x8xf32>
    %522 = arith.addf %521, %520 : vector<2x8xf32>
    %523 = arith.divf %521, %522 : vector<2x8xf32>
    %524 = vector.extract_strided_slice %512 {offsets = [0, 8], sizes = [2, 8], strides = [1, 1]} : vector<2x24xf32> to vector<2x8xf32>
    %525 = vector.extract_strided_slice %515 {offsets = [0, 8], sizes = [2, 8], strides = [1, 1]} : vector<2x24xf32> to vector<2x8xf32>
    %526 = arith.addf %524, %525 : vector<2x8xf32>
    %527 = arith.negf %526 : vector<2x8xf32>
    %528 = math.exp %527 : vector<2x8xf32>
    %cst_223 = arith.constant 1.000000e+00 : f32
    %529 = vector.broadcast %cst_223 : f32 to vector<2x8xf32>
    %530 = arith.addf %529, %528 : vector<2x8xf32>
    %531 = arith.divf %529, %530 : vector<2x8xf32>
    %532 = vector.extract_strided_slice %512 {offsets = [0, 16], sizes = [2, 8], strides = [1, 1]} : vector<2x24xf32> to vector<2x8xf32>
    %533 = vector.extract_strided_slice %515 {offsets = [0, 16], sizes = [2, 8], strides = [1, 1]} : vector<2x24xf32> to vector<2x8xf32>
    %534 = arith.mulf %523, %533 : vector<2x8xf32>
    %535 = arith.addf %532, %534 : vector<2x8xf32>
    %536 = math.tanh %535 : vector<2x8xf32>
    %cst_224 = arith.constant 1.000000e+00 : f32
    %537 = vector.broadcast %cst_224 : f32 to vector<2x8xf32>
    %538 = arith.subf %537, %531 : vector<2x8xf32>
    %539 = arith.mulf %538, %536 : vector<2x8xf32>
    %540 = arith.mulf %531, %479 : vector<2x8xf32>
    %541 = arith.addf %539, %540 : vector<2x8xf32>
    %cst_225 = arith.constant dense<0.000000e+00> : vector<2x24xf32>
    %542 = tpu.matmul %541, %441, %cst_225 {dimension_numbers = #tpu.dot_dimension_numbers<[1], [0], [0], [1], [0, 0, 1, 1], [], []>} : vector<2x8xf32>, vector<8x24xf32>, vector<2x24xf32> -> vector<2x24xf32>
    %543 = vector.broadcast %442 : vector<1x24xf32> to vector<2x24xf32>
    %544 = arith.addf %542, %543 : vector<2x24xf32>
    %cst_226 = arith.constant dense<0.000000e+00> : vector<2x24xf32>
    %545 = tpu.matmul %511, %443, %cst_226 {dimension_numbers = #tpu.dot_dimension_numbers<[1], [0], [0], [1], [0, 0, 1, 1], [], []>} : vector<2x8xf32>, vector<8x24xf32>, vector<2x24xf32> -> vector<2x24xf32>
    %546 = vector.broadcast %444 : vector<1x24xf32> to vector<2x24xf32>
    %547 = arith.addf %545, %546 : vector<2x24xf32>
    %548 = vector.extract_strided_slice %544 {offsets = [0, 0], sizes = [2, 8], strides = [1, 1]} : vector<2x24xf32> to vector<2x8xf32>
    %549 = vector.extract_strided_slice %547 {offsets = [0, 0], sizes = [2, 8], strides = [1, 1]} : vector<2x24xf32> to vector<2x8xf32>
    %550 = arith.addf %548, %549 : vector<2x8xf32>
    %551 = arith.negf %550 : vector<2x8xf32>
    %552 = math.exp %551 : vector<2x8xf32>
    %cst_227 = arith.constant 1.000000e+00 : f32
    %553 = vector.broadcast %cst_227 : f32 to vector<2x8xf32>
    %554 = arith.addf %553, %552 : vector<2x8xf32>
    %555 = arith.divf %553, %554 : vector<2x8xf32>
    %556 = vector.extract_strided_slice %544 {offsets = [0, 8], sizes = [2, 8], strides = [1, 1]} : vector<2x24xf32> to vector<2x8xf32>
    %557 = vector.extract_strided_slice %547 {offsets = [0, 8], sizes = [2, 8], strides = [1, 1]} : vector<2x24xf32> to vector<2x8xf32>
    %558 = arith.addf %556, %557 : vector<2x8xf32>
    %559 = arith.negf %558 : vector<2x8xf32>
    %560 = math.exp %559 : vector<2x8xf32>
    %cst_228 = arith.constant 1.000000e+00 : f32
    %561 = vector.broadcast %cst_228 : f32 to vector<2x8xf32>
    %562 = arith.addf %561, %560 : vector<2x8xf32>
    %563 = arith.divf %561, %562 : vector<2x8xf32>
    %564 = vector.extract_strided_slice %544 {offsets = [0, 16], sizes = [2, 8], strides = [1, 1]} : vector<2x24xf32> to vector<2x8xf32>
    %565 = vector.extract_strided_slice %547 {offsets = [0, 16], sizes = [2, 8], strides = [1, 1]} : vector<2x24xf32> to vector<2x8xf32>
    %566 = arith.mulf %555, %565 : vector<2x8xf32>
    %567 = arith.addf %564, %566 : vector<2x8xf32>
    %568 = math.tanh %567 : vector<2x8xf32>
    %cst_229 = arith.constant 1.000000e+00 : f32
    %569 = vector.broadcast %cst_229 : f32 to vector<2x8xf32>
    %570 = arith.subf %569, %563 : vector<2x8xf32>
    %571 = arith.mulf %570, %568 : vector<2x8xf32>
    %572 = arith.mulf %563, %511 : vector<2x8xf32>
    %573 = arith.addf %571, %572 : vector<2x8xf32>
    %574 = vector.extract_strided_slice %447 {offsets = [4, 0], sizes = [2, 24], strides = [1, 1]} : vector<16x24xf32> to vector<2x24xf32>
    %cst_230 = arith.constant dense<0.000000e+00> : vector<2x24xf32>
    %575 = tpu.matmul %541, %439, %cst_230 {dimension_numbers = #tpu.dot_dimension_numbers<[1], [0], [0], [1], [0, 0, 1, 1], [], []>} : vector<2x8xf32>, vector<8x24xf32>, vector<2x24xf32> -> vector<2x24xf32>
    %576 = vector.broadcast %440 : vector<1x24xf32> to vector<2x24xf32>
    %577 = arith.addf %575, %576 : vector<2x24xf32>
    %578 = vector.extract_strided_slice %574 {offsets = [0, 0], sizes = [2, 8], strides = [1, 1]} : vector<2x24xf32> to vector<2x8xf32>
    %579 = vector.extract_strided_slice %577 {offsets = [0, 0], sizes = [2, 8], strides = [1, 1]} : vector<2x24xf32> to vector<2x8xf32>
    %580 = arith.addf %578, %579 : vector<2x8xf32>
    %581 = arith.negf %580 : vector<2x8xf32>
    %582 = math.exp %581 : vector<2x8xf32>
    %cst_231 = arith.constant 1.000000e+00 : f32
    %583 = vector.broadcast %cst_231 : f32 to vector<2x8xf32>
    %584 = arith.addf %583, %582 : vector<2x8xf32>
    %585 = arith.divf %583, %584 : vector<2x8xf32>
    %586 = vector.extract_strided_slice %574 {offsets = [0, 8], sizes = [2, 8], strides = [1, 1]} : vector<2x24xf32> to vector<2x8xf32>
    %587 = vector.extract_strided_slice %577 {offsets = [0, 8], sizes = [2, 8], strides = [1, 1]} : vector<2x24xf32> to vector<2x8xf32>
    %588 = arith.addf %586, %587 : vector<2x8xf32>
    %589 = arith.negf %588 : vector<2x8xf32>
    %590 = math.exp %589 : vector<2x8xf32>
    %cst_232 = arith.constant 1.000000e+00 : f32
    %591 = vector.broadcast %cst_232 : f32 to vector<2x8xf32>
    %592 = arith.addf %591, %590 : vector<2x8xf32>
    %593 = arith.divf %591, %592 : vector<2x8xf32>
    %594 = vector.extract_strided_slice %574 {offsets = [0, 16], sizes = [2, 8], strides = [1, 1]} : vector<2x24xf32> to vector<2x8xf32>
    %595 = vector.extract_strided_slice %577 {offsets = [0, 16], sizes = [2, 8], strides = [1, 1]} : vector<2x24xf32> to vector<2x8xf32>
    %596 = arith.mulf %585, %595 : vector<2x8xf32>
    %597 = arith.addf %594, %596 : vector<2x8xf32>
    %598 = math.tanh %597 : vector<2x8xf32>
    %cst_233 = arith.constant 1.000000e+00 : f32
    %599 = vector.broadcast %cst_233 : f32 to vector<2x8xf32>
    %600 = arith.subf %599, %593 : vector<2x8xf32>
    %601 = arith.mulf %600, %598 : vector<2x8xf32>
    %602 = arith.mulf %593, %541 : vector<2x8xf32>
    %603 = arith.addf %601, %602 : vector<2x8xf32>
    %cst_234 = arith.constant dense<0.000000e+00> : vector<2x24xf32>
    %604 = tpu.matmul %603, %441, %cst_234 {dimension_numbers = #tpu.dot_dimension_numbers<[1], [0], [0], [1], [0, 0, 1, 1], [], []>} : vector<2x8xf32>, vector<8x24xf32>, vector<2x24xf32> -> vector<2x24xf32>
    %605 = vector.broadcast %442 : vector<1x24xf32> to vector<2x24xf32>
    %606 = arith.addf %604, %605 : vector<2x24xf32>
    %cst_235 = arith.constant dense<0.000000e+00> : vector<2x24xf32>
    %607 = tpu.matmul %573, %443, %cst_235 {dimension_numbers = #tpu.dot_dimension_numbers<[1], [0], [0], [1], [0, 0, 1, 1], [], []>} : vector<2x8xf32>, vector<8x24xf32>, vector<2x24xf32> -> vector<2x24xf32>
    %608 = vector.broadcast %444 : vector<1x24xf32> to vector<2x24xf32>
    %609 = arith.addf %607, %608 : vector<2x24xf32>
    %610 = vector.extract_strided_slice %606 {offsets = [0, 0], sizes = [2, 8], strides = [1, 1]} : vector<2x24xf32> to vector<2x8xf32>
    %611 = vector.extract_strided_slice %609 {offsets = [0, 0], sizes = [2, 8], strides = [1, 1]} : vector<2x24xf32> to vector<2x8xf32>
    %612 = arith.addf %610, %611 : vector<2x8xf32>
    %613 = arith.negf %612 : vector<2x8xf32>
    %614 = math.exp %613 : vector<2x8xf32>
    %cst_236 = arith.constant 1.000000e+00 : f32
    %615 = vector.broadcast %cst_236 : f32 to vector<2x8xf32>
    %616 = arith.addf %615, %614 : vector<2x8xf32>
    %617 = arith.divf %615, %616 : vector<2x8xf32>
    %618 = vector.extract_strided_slice %606 {offsets = [0, 8], sizes = [2, 8], strides = [1, 1]} : vector<2x24xf32> to vector<2x8xf32>
    %619 = vector.extract_strided_slice %609 {offsets = [0, 8], sizes = [2, 8], strides = [1, 1]} : vector<2x24xf32> to vector<2x8xf32>
    %620 = arith.addf %618, %619 : vector<2x8xf32>
    %621 = arith.negf %620 : vector<2x8xf32>
    %622 = math.exp %621 : vector<2x8xf32>
    %cst_237 = arith.constant 1.000000e+00 : f32
    %623 = vector.broadcast %cst_237 : f32 to vector<2x8xf32>
    %624 = arith.addf %623, %622 : vector<2x8xf32>
    %625 = arith.divf %623, %624 : vector<2x8xf32>
    %626 = vector.extract_strided_slice %606 {offsets = [0, 16], sizes = [2, 8], strides = [1, 1]} : vector<2x24xf32> to vector<2x8xf32>
    %627 = vector.extract_strided_slice %609 {offsets = [0, 16], sizes = [2, 8], strides = [1, 1]} : vector<2x24xf32> to vector<2x8xf32>
    %628 = arith.mulf %617, %627 : vector<2x8xf32>
    %629 = arith.addf %626, %628 : vector<2x8xf32>
    %630 = math.tanh %629 : vector<2x8xf32>
    %cst_238 = arith.constant 1.000000e+00 : f32
    %631 = vector.broadcast %cst_238 : f32 to vector<2x8xf32>
    %632 = arith.subf %631, %625 : vector<2x8xf32>
    %633 = arith.mulf %632, %630 : vector<2x8xf32>
    %634 = arith.mulf %625, %573 : vector<2x8xf32>
    %635 = arith.addf %633, %634 : vector<2x8xf32>
    %636 = vector.extract_strided_slice %447 {offsets = [6, 0], sizes = [2, 24], strides = [1, 1]} : vector<16x24xf32> to vector<2x24xf32>
    %cst_239 = arith.constant dense<0.000000e+00> : vector<2x24xf32>
    %637 = tpu.matmul %603, %439, %cst_239 {dimension_numbers = #tpu.dot_dimension_numbers<[1], [0], [0], [1], [0, 0, 1, 1], [], []>} : vector<2x8xf32>, vector<8x24xf32>, vector<2x24xf32> -> vector<2x24xf32>
    %638 = vector.broadcast %440 : vector<1x24xf32> to vector<2x24xf32>
    %639 = arith.addf %637, %638 : vector<2x24xf32>
    %640 = vector.extract_strided_slice %636 {offsets = [0, 0], sizes = [2, 8], strides = [1, 1]} : vector<2x24xf32> to vector<2x8xf32>
    %641 = vector.extract_strided_slice %639 {offsets = [0, 0], sizes = [2, 8], strides = [1, 1]} : vector<2x24xf32> to vector<2x8xf32>
    %642 = arith.addf %640, %641 : vector<2x8xf32>
    %643 = arith.negf %642 : vector<2x8xf32>
    %644 = math.exp %643 : vector<2x8xf32>
    %cst_240 = arith.constant 1.000000e+00 : f32
    %645 = vector.broadcast %cst_240 : f32 to vector<2x8xf32>
    %646 = arith.addf %645, %644 : vector<2x8xf32>
    %647 = arith.divf %645, %646 : vector<2x8xf32>
    %648 = vector.extract_strided_slice %636 {offsets = [0, 8], sizes = [2, 8], strides = [1, 1]} : vector<2x24xf32> to vector<2x8xf32>
    %649 = vector.extract_strided_slice %639 {offsets = [0, 8], sizes = [2, 8], strides = [1, 1]} : vector<2x24xf32> to vector<2x8xf32>
    %650 = arith.addf %648, %649 : vector<2x8xf32>
    %651 = arith.negf %650 : vector<2x8xf32>
    %652 = math.exp %651 : vector<2x8xf32>
    %cst_241 = arith.constant 1.000000e+00 : f32
    %653 = vector.broadcast %cst_241 : f32 to vector<2x8xf32>
    %654 = arith.addf %653, %652 : vector<2x8xf32>
    %655 = arith.divf %653, %654 : vector<2x8xf32>
    %656 = vector.extract_strided_slice %636 {offsets = [0, 16], sizes = [2, 8], strides = [1, 1]} : vector<2x24xf32> to vector<2x8xf32>
    %657 = vector.extract_strided_slice %639 {offsets = [0, 16], sizes = [2, 8], strides = [1, 1]} : vector<2x24xf32> to vector<2x8xf32>
    %658 = arith.mulf %647, %657 : vector<2x8xf32>
    %659 = arith.addf %656, %658 : vector<2x8xf32>
    %660 = math.tanh %659 : vector<2x8xf32>
    %cst_242 = arith.constant 1.000000e+00 : f32
    %661 = vector.broadcast %cst_242 : f32 to vector<2x8xf32>
    %662 = arith.subf %661, %655 : vector<2x8xf32>
    %663 = arith.mulf %662, %660 : vector<2x8xf32>
    %664 = arith.mulf %655, %603 : vector<2x8xf32>
    %665 = arith.addf %663, %664 : vector<2x8xf32>
    %cst_243 = arith.constant dense<0.000000e+00> : vector<2x24xf32>
    %666 = tpu.matmul %665, %441, %cst_243 {dimension_numbers = #tpu.dot_dimension_numbers<[1], [0], [0], [1], [0, 0, 1, 1], [], []>} : vector<2x8xf32>, vector<8x24xf32>, vector<2x24xf32> -> vector<2x24xf32>
    %667 = vector.broadcast %442 : vector<1x24xf32> to vector<2x24xf32>
    %668 = arith.addf %666, %667 : vector<2x24xf32>
    %cst_244 = arith.constant dense<0.000000e+00> : vector<2x24xf32>
    %669 = tpu.matmul %635, %443, %cst_244 {dimension_numbers = #tpu.dot_dimension_numbers<[1], [0], [0], [1], [0, 0, 1, 1], [], []>} : vector<2x8xf32>, vector<8x24xf32>, vector<2x24xf32> -> vector<2x24xf32>
    %670 = vector.broadcast %444 : vector<1x24xf32> to vector<2x24xf32>
    %671 = arith.addf %669, %670 : vector<2x24xf32>
    %672 = vector.extract_strided_slice %668 {offsets = [0, 0], sizes = [2, 8], strides = [1, 1]} : vector<2x24xf32> to vector<2x8xf32>
    %673 = vector.extract_strided_slice %671 {offsets = [0, 0], sizes = [2, 8], strides = [1, 1]} : vector<2x24xf32> to vector<2x8xf32>
    %674 = arith.addf %672, %673 : vector<2x8xf32>
    %675 = arith.negf %674 : vector<2x8xf32>
    %676 = math.exp %675 : vector<2x8xf32>
    %cst_245 = arith.constant 1.000000e+00 : f32
    %677 = vector.broadcast %cst_245 : f32 to vector<2x8xf32>
    %678 = arith.addf %677, %676 : vector<2x8xf32>
    %679 = arith.divf %677, %678 : vector<2x8xf32>
    %680 = vector.extract_strided_slice %668 {offsets = [0, 8], sizes = [2, 8], strides = [1, 1]} : vector<2x24xf32> to vector<2x8xf32>
    %681 = vector.extract_strided_slice %671 {offsets = [0, 8], sizes = [2, 8], strides = [1, 1]} : vector<2x24xf32> to vector<2x8xf32>
    %682 = arith.addf %680, %681 : vector<2x8xf32>
    %683 = arith.negf %682 : vector<2x8xf32>
    %684 = math.exp %683 : vector<2x8xf32>
    %cst_246 = arith.constant 1.000000e+00 : f32
    %685 = vector.broadcast %cst_246 : f32 to vector<2x8xf32>
    %686 = arith.addf %685, %684 : vector<2x8xf32>
    %687 = arith.divf %685, %686 : vector<2x8xf32>
    %688 = vector.extract_strided_slice %668 {offsets = [0, 16], sizes = [2, 8], strides = [1, 1]} : vector<2x24xf32> to vector<2x8xf32>
    %689 = vector.extract_strided_slice %671 {offsets = [0, 16], sizes = [2, 8], strides = [1, 1]} : vector<2x24xf32> to vector<2x8xf32>
    %690 = arith.mulf %679, %689 : vector<2x8xf32>
    %691 = arith.addf %688, %690 : vector<2x8xf32>
    %692 = math.tanh %691 : vector<2x8xf32>
    %cst_247 = arith.constant 1.000000e+00 : f32
    %693 = vector.broadcast %cst_247 : f32 to vector<2x8xf32>
    %694 = arith.subf %693, %687 : vector<2x8xf32>
    %695 = arith.mulf %694, %692 : vector<2x8xf32>
    %696 = arith.mulf %687, %635 : vector<2x8xf32>
    %697 = arith.addf %695, %696 : vector<2x8xf32>
    %698 = vector.extract_strided_slice %447 {offsets = [8, 0], sizes = [2, 24], strides = [1, 1]} : vector<16x24xf32> to vector<2x24xf32>
    %cst_248 = arith.constant dense<0.000000e+00> : vector<2x24xf32>
    %699 = tpu.matmul %665, %439, %cst_248 {dimension_numbers = #tpu.dot_dimension_numbers<[1], [0], [0], [1], [0, 0, 1, 1], [], []>} : vector<2x8xf32>, vector<8x24xf32>, vector<2x24xf32> -> vector<2x24xf32>
    %700 = vector.broadcast %440 : vector<1x24xf32> to vector<2x24xf32>
    %701 = arith.addf %699, %700 : vector<2x24xf32>
    %702 = vector.extract_strided_slice %698 {offsets = [0, 0], sizes = [2, 8], strides = [1, 1]} : vector<2x24xf32> to vector<2x8xf32>
    %703 = vector.extract_strided_slice %701 {offsets = [0, 0], sizes = [2, 8], strides = [1, 1]} : vector<2x24xf32> to vector<2x8xf32>
    %704 = arith.addf %702, %703 : vector<2x8xf32>
    %705 = arith.negf %704 : vector<2x8xf32>
    %706 = math.exp %705 : vector<2x8xf32>
    %cst_249 = arith.constant 1.000000e+00 : f32
    %707 = vector.broadcast %cst_249 : f32 to vector<2x8xf32>
    %708 = arith.addf %707, %706 : vector<2x8xf32>
    %709 = arith.divf %707, %708 : vector<2x8xf32>
    %710 = vector.extract_strided_slice %698 {offsets = [0, 8], sizes = [2, 8], strides = [1, 1]} : vector<2x24xf32> to vector<2x8xf32>
    %711 = vector.extract_strided_slice %701 {offsets = [0, 8], sizes = [2, 8], strides = [1, 1]} : vector<2x24xf32> to vector<2x8xf32>
    %712 = arith.addf %710, %711 : vector<2x8xf32>
    %713 = arith.negf %712 : vector<2x8xf32>
    %714 = math.exp %713 : vector<2x8xf32>
    %cst_250 = arith.constant 1.000000e+00 : f32
    %715 = vector.broadcast %cst_250 : f32 to vector<2x8xf32>
    %716 = arith.addf %715, %714 : vector<2x8xf32>
    %717 = arith.divf %715, %716 : vector<2x8xf32>
    %718 = vector.extract_strided_slice %698 {offsets = [0, 16], sizes = [2, 8], strides = [1, 1]} : vector<2x24xf32> to vector<2x8xf32>
    %719 = vector.extract_strided_slice %701 {offsets = [0, 16], sizes = [2, 8], strides = [1, 1]} : vector<2x24xf32> to vector<2x8xf32>
    %720 = arith.mulf %709, %719 : vector<2x8xf32>
    %721 = arith.addf %718, %720 : vector<2x8xf32>
    %722 = math.tanh %721 : vector<2x8xf32>
    %cst_251 = arith.constant 1.000000e+00 : f32
    %723 = vector.broadcast %cst_251 : f32 to vector<2x8xf32>
    %724 = arith.subf %723, %717 : vector<2x8xf32>
    %725 = arith.mulf %724, %722 : vector<2x8xf32>
    %726 = arith.mulf %717, %665 : vector<2x8xf32>
    %727 = arith.addf %725, %726 : vector<2x8xf32>
    %cst_252 = arith.constant dense<0.000000e+00> : vector<2x24xf32>
    %728 = tpu.matmul %727, %441, %cst_252 {dimension_numbers = #tpu.dot_dimension_numbers<[1], [0], [0], [1], [0, 0, 1, 1], [], []>} : vector<2x8xf32>, vector<8x24xf32>, vector<2x24xf32> -> vector<2x24xf32>
    %729 = vector.broadcast %442 : vector<1x24xf32> to vector<2x24xf32>
    %730 = arith.addf %728, %729 : vector<2x24xf32>
    %cst_253 = arith.constant dense<0.000000e+00> : vector<2x24xf32>
    %731 = tpu.matmul %697, %443, %cst_253 {dimension_numbers = #tpu.dot_dimension_numbers<[1], [0], [0], [1], [0, 0, 1, 1], [], []>} : vector<2x8xf32>, vector<8x24xf32>, vector<2x24xf32> -> vector<2x24xf32>
    %732 = vector.broadcast %444 : vector<1x24xf32> to vector<2x24xf32>
    %733 = arith.addf %731, %732 : vector<2x24xf32>
    %734 = vector.extract_strided_slice %730 {offsets = [0, 0], sizes = [2, 8], strides = [1, 1]} : vector<2x24xf32> to vector<2x8xf32>
    %735 = vector.extract_strided_slice %733 {offsets = [0, 0], sizes = [2, 8], strides = [1, 1]} : vector<2x24xf32> to vector<2x8xf32>
    %736 = arith.addf %734, %735 : vector<2x8xf32>
    %737 = arith.negf %736 : vector<2x8xf32>
    %738 = math.exp %737 : vector<2x8xf32>
    %cst_254 = arith.constant 1.000000e+00 : f32
    %739 = vector.broadcast %cst_254 : f32 to vector<2x8xf32>
    %740 = arith.addf %739, %738 : vector<2x8xf32>
    %741 = arith.divf %739, %740 : vector<2x8xf32>
    %742 = vector.extract_strided_slice %730 {offsets = [0, 8], sizes = [2, 8], strides = [1, 1]} : vector<2x24xf32> to vector<2x8xf32>
    %743 = vector.extract_strided_slice %733 {offsets = [0, 8], sizes = [2, 8], strides = [1, 1]} : vector<2x24xf32> to vector<2x8xf32>
    %744 = arith.addf %742, %743 : vector<2x8xf32>
    %745 = arith.negf %744 : vector<2x8xf32>
    %746 = math.exp %745 : vector<2x8xf32>
    %cst_255 = arith.constant 1.000000e+00 : f32
    %747 = vector.broadcast %cst_255 : f32 to vector<2x8xf32>
    %748 = arith.addf %747, %746 : vector<2x8xf32>
    %749 = arith.divf %747, %748 : vector<2x8xf32>
    %750 = vector.extract_strided_slice %730 {offsets = [0, 16], sizes = [2, 8], strides = [1, 1]} : vector<2x24xf32> to vector<2x8xf32>
    %751 = vector.extract_strided_slice %733 {offsets = [0, 16], sizes = [2, 8], strides = [1, 1]} : vector<2x24xf32> to vector<2x8xf32>
    %752 = arith.mulf %741, %751 : vector<2x8xf32>
    %753 = arith.addf %750, %752 : vector<2x8xf32>
    %754 = math.tanh %753 : vector<2x8xf32>
    %cst_256 = arith.constant 1.000000e+00 : f32
    %755 = vector.broadcast %cst_256 : f32 to vector<2x8xf32>
    %756 = arith.subf %755, %749 : vector<2x8xf32>
    %757 = arith.mulf %756, %754 : vector<2x8xf32>
    %758 = arith.mulf %749, %697 : vector<2x8xf32>
    %759 = arith.addf %757, %758 : vector<2x8xf32>
    %760 = vector.extract_strided_slice %447 {offsets = [10, 0], sizes = [2, 24], strides = [1, 1]} : vector<16x24xf32> to vector<2x24xf32>
    %cst_257 = arith.constant dense<0.000000e+00> : vector<2x24xf32>
    %761 = tpu.matmul %727, %439, %cst_257 {dimension_numbers = #tpu.dot_dimension_numbers<[1], [0], [0], [1], [0, 0, 1, 1], [], []>} : vector<2x8xf32>, vector<8x24xf32>, vector<2x24xf32> -> vector<2x24xf32>
    %762 = vector.broadcast %440 : vector<1x24xf32> to vector<2x24xf32>
    %763 = arith.addf %761, %762 : vector<2x24xf32>
    %764 = vector.extract_strided_slice %760 {offsets = [0, 0], sizes = [2, 8], strides = [1, 1]} : vector<2x24xf32> to vector<2x8xf32>
    %765 = vector.extract_strided_slice %763 {offsets = [0, 0], sizes = [2, 8], strides = [1, 1]} : vector<2x24xf32> to vector<2x8xf32>
    %766 = arith.addf %764, %765 : vector<2x8xf32>
    %767 = arith.negf %766 : vector<2x8xf32>
    %768 = math.exp %767 : vector<2x8xf32>
    %cst_258 = arith.constant 1.000000e+00 : f32
    %769 = vector.broadcast %cst_258 : f32 to vector<2x8xf32>
    %770 = arith.addf %769, %768 : vector<2x8xf32>
    %771 = arith.divf %769, %770 : vector<2x8xf32>
    %772 = vector.extract_strided_slice %760 {offsets = [0, 8], sizes = [2, 8], strides = [1, 1]} : vector<2x24xf32> to vector<2x8xf32>
    %773 = vector.extract_strided_slice %763 {offsets = [0, 8], sizes = [2, 8], strides = [1, 1]} : vector<2x24xf32> to vector<2x8xf32>
    %774 = arith.addf %772, %773 : vector<2x8xf32>
    %775 = arith.negf %774 : vector<2x8xf32>
    %776 = math.exp %775 : vector<2x8xf32>
    %cst_259 = arith.constant 1.000000e+00 : f32
    %777 = vector.broadcast %cst_259 : f32 to vector<2x8xf32>
    %778 = arith.addf %777, %776 : vector<2x8xf32>
    %779 = arith.divf %777, %778 : vector<2x8xf32>
    %780 = vector.extract_strided_slice %760 {offsets = [0, 16], sizes = [2, 8], strides = [1, 1]} : vector<2x24xf32> to vector<2x8xf32>
    %781 = vector.extract_strided_slice %763 {offsets = [0, 16], sizes = [2, 8], strides = [1, 1]} : vector<2x24xf32> to vector<2x8xf32>
    %782 = arith.mulf %771, %781 : vector<2x8xf32>
    %783 = arith.addf %780, %782 : vector<2x8xf32>
    %784 = math.tanh %783 : vector<2x8xf32>
    %cst_260 = arith.constant 1.000000e+00 : f32
    %785 = vector.broadcast %cst_260 : f32 to vector<2x8xf32>
    %786 = arith.subf %785, %779 : vector<2x8xf32>
    %787 = arith.mulf %786, %784 : vector<2x8xf32>
    %788 = arith.mulf %779, %727 : vector<2x8xf32>
    %789 = arith.addf %787, %788 : vector<2x8xf32>
    %cst_261 = arith.constant dense<0.000000e+00> : vector<2x24xf32>
    %790 = tpu.matmul %789, %441, %cst_261 {dimension_numbers = #tpu.dot_dimension_numbers<[1], [0], [0], [1], [0, 0, 1, 1], [], []>} : vector<2x8xf32>, vector<8x24xf32>, vector<2x24xf32> -> vector<2x24xf32>
    %791 = vector.broadcast %442 : vector<1x24xf32> to vector<2x24xf32>
    %792 = arith.addf %790, %791 : vector<2x24xf32>
    %cst_262 = arith.constant dense<0.000000e+00> : vector<2x24xf32>
    %793 = tpu.matmul %759, %443, %cst_262 {dimension_numbers = #tpu.dot_dimension_numbers<[1], [0], [0], [1], [0, 0, 1, 1], [], []>} : vector<2x8xf32>, vector<8x24xf32>, vector<2x24xf32> -> vector<2x24xf32>
    %794 = vector.broadcast %444 : vector<1x24xf32> to vector<2x24xf32>
    %795 = arith.addf %793, %794 : vector<2x24xf32>
    %796 = vector.extract_strided_slice %792 {offsets = [0, 0], sizes = [2, 8], strides = [1, 1]} : vector<2x24xf32> to vector<2x8xf32>
    %797 = vector.extract_strided_slice %795 {offsets = [0, 0], sizes = [2, 8], strides = [1, 1]} : vector<2x24xf32> to vector<2x8xf32>
    %798 = arith.addf %796, %797 : vector<2x8xf32>
    %799 = arith.negf %798 : vector<2x8xf32>
    %800 = math.exp %799 : vector<2x8xf32>
    %cst_263 = arith.constant 1.000000e+00 : f32
    %801 = vector.broadcast %cst_263 : f32 to vector<2x8xf32>
    %802 = arith.addf %801, %800 : vector<2x8xf32>
    %803 = arith.divf %801, %802 : vector<2x8xf32>
    %804 = vector.extract_strided_slice %792 {offsets = [0, 8], sizes = [2, 8], strides = [1, 1]} : vector<2x24xf32> to vector<2x8xf32>
    %805 = vector.extract_strided_slice %795 {offsets = [0, 8], sizes = [2, 8], strides = [1, 1]} : vector<2x24xf32> to vector<2x8xf32>
    %806 = arith.addf %804, %805 : vector<2x8xf32>
    %807 = arith.negf %806 : vector<2x8xf32>
    %808 = math.exp %807 : vector<2x8xf32>
    %cst_264 = arith.constant 1.000000e+00 : f32
    %809 = vector.broadcast %cst_264 : f32 to vector<2x8xf32>
    %810 = arith.addf %809, %808 : vector<2x8xf32>
    %811 = arith.divf %809, %810 : vector<2x8xf32>
    %812 = vector.extract_strided_slice %792 {offsets = [0, 16], sizes = [2, 8], strides = [1, 1]} : vector<2x24xf32> to vector<2x8xf32>
    %813 = vector.extract_strided_slice %795 {offsets = [0, 16], sizes = [2, 8], strides = [1, 1]} : vector<2x24xf32> to vector<2x8xf32>
    %814 = arith.mulf %803, %813 : vector<2x8xf32>
    %815 = arith.addf %812, %814 : vector<2x8xf32>
    %816 = math.tanh %815 : vector<2x8xf32>
    %cst_265 = arith.constant 1.000000e+00 : f32
    %817 = vector.broadcast %cst_265 : f32 to vector<2x8xf32>
    %818 = arith.subf %817, %811 : vector<2x8xf32>
    %819 = arith.mulf %818, %816 : vector<2x8xf32>
    %820 = arith.mulf %811, %759 : vector<2x8xf32>
    %821 = arith.addf %819, %820 : vector<2x8xf32>
    %822 = vector.extract_strided_slice %447 {offsets = [12, 0], sizes = [2, 24], strides = [1, 1]} : vector<16x24xf32> to vector<2x24xf32>
    %cst_266 = arith.constant dense<0.000000e+00> : vector<2x24xf32>
    %823 = tpu.matmul %789, %439, %cst_266 {dimension_numbers = #tpu.dot_dimension_numbers<[1], [0], [0], [1], [0, 0, 1, 1], [], []>} : vector<2x8xf32>, vector<8x24xf32>, vector<2x24xf32> -> vector<2x24xf32>
    %824 = vector.broadcast %440 : vector<1x24xf32> to vector<2x24xf32>
    %825 = arith.addf %823, %824 : vector<2x24xf32>
    %826 = vector.extract_strided_slice %822 {offsets = [0, 0], sizes = [2, 8], strides = [1, 1]} : vector<2x24xf32> to vector<2x8xf32>
    %827 = vector.extract_strided_slice %825 {offsets = [0, 0], sizes = [2, 8], strides = [1, 1]} : vector<2x24xf32> to vector<2x8xf32>
    %828 = arith.addf %826, %827 : vector<2x8xf32>
    %829 = arith.negf %828 : vector<2x8xf32>
    %830 = math.exp %829 : vector<2x8xf32>
    %cst_267 = arith.constant 1.000000e+00 : f32
    %831 = vector.broadcast %cst_267 : f32 to vector<2x8xf32>
    %832 = arith.addf %831, %830 : vector<2x8xf32>
    %833 = arith.divf %831, %832 : vector<2x8xf32>
    %834 = vector.extract_strided_slice %822 {offsets = [0, 8], sizes = [2, 8], strides = [1, 1]} : vector<2x24xf32> to vector<2x8xf32>
    %835 = vector.extract_strided_slice %825 {offsets = [0, 8], sizes = [2, 8], strides = [1, 1]} : vector<2x24xf32> to vector<2x8xf32>
    %836 = arith.addf %834, %835 : vector<2x8xf32>
    %837 = arith.negf %836 : vector<2x8xf32>
    %838 = math.exp %837 : vector<2x8xf32>
    %cst_268 = arith.constant 1.000000e+00 : f32
    %839 = vector.broadcast %cst_268 : f32 to vector<2x8xf32>
    %840 = arith.addf %839, %838 : vector<2x8xf32>
    %841 = arith.divf %839, %840 : vector<2x8xf32>
    %842 = vector.extract_strided_slice %822 {offsets = [0, 16], sizes = [2, 8], strides = [1, 1]} : vector<2x24xf32> to vector<2x8xf32>
    %843 = vector.extract_strided_slice %825 {offsets = [0, 16], sizes = [2, 8], strides = [1, 1]} : vector<2x24xf32> to vector<2x8xf32>
    %844 = arith.mulf %833, %843 : vector<2x8xf32>
    %845 = arith.addf %842, %844 : vector<2x8xf32>
    %846 = math.tanh %845 : vector<2x8xf32>
    %cst_269 = arith.constant 1.000000e+00 : f32
    %847 = vector.broadcast %cst_269 : f32 to vector<2x8xf32>
    %848 = arith.subf %847, %841 : vector<2x8xf32>
    %849 = arith.mulf %848, %846 : vector<2x8xf32>
    %850 = arith.mulf %841, %789 : vector<2x8xf32>
    %851 = arith.addf %849, %850 : vector<2x8xf32>
    %cst_270 = arith.constant dense<0.000000e+00> : vector<2x24xf32>
    %852 = tpu.matmul %851, %441, %cst_270 {dimension_numbers = #tpu.dot_dimension_numbers<[1], [0], [0], [1], [0, 0, 1, 1], [], []>} : vector<2x8xf32>, vector<8x24xf32>, vector<2x24xf32> -> vector<2x24xf32>
    %853 = vector.broadcast %442 : vector<1x24xf32> to vector<2x24xf32>
    %854 = arith.addf %852, %853 : vector<2x24xf32>
    %cst_271 = arith.constant dense<0.000000e+00> : vector<2x24xf32>
    %855 = tpu.matmul %821, %443, %cst_271 {dimension_numbers = #tpu.dot_dimension_numbers<[1], [0], [0], [1], [0, 0, 1, 1], [], []>} : vector<2x8xf32>, vector<8x24xf32>, vector<2x24xf32> -> vector<2x24xf32>
    %856 = vector.broadcast %444 : vector<1x24xf32> to vector<2x24xf32>
    %857 = arith.addf %855, %856 : vector<2x24xf32>
    %858 = vector.extract_strided_slice %854 {offsets = [0, 0], sizes = [2, 8], strides = [1, 1]} : vector<2x24xf32> to vector<2x8xf32>
    %859 = vector.extract_strided_slice %857 {offsets = [0, 0], sizes = [2, 8], strides = [1, 1]} : vector<2x24xf32> to vector<2x8xf32>
    %860 = arith.addf %858, %859 : vector<2x8xf32>
    %861 = arith.negf %860 : vector<2x8xf32>
    %862 = math.exp %861 : vector<2x8xf32>
    %cst_272 = arith.constant 1.000000e+00 : f32
    %863 = vector.broadcast %cst_272 : f32 to vector<2x8xf32>
    %864 = arith.addf %863, %862 : vector<2x8xf32>
    %865 = arith.divf %863, %864 : vector<2x8xf32>
    %866 = vector.extract_strided_slice %854 {offsets = [0, 8], sizes = [2, 8], strides = [1, 1]} : vector<2x24xf32> to vector<2x8xf32>
    %867 = vector.extract_strided_slice %857 {offsets = [0, 8], sizes = [2, 8], strides = [1, 1]} : vector<2x24xf32> to vector<2x8xf32>
    %868 = arith.addf %866, %867 : vector<2x8xf32>
    %869 = arith.negf %868 : vector<2x8xf32>
    %870 = math.exp %869 : vector<2x8xf32>
    %cst_273 = arith.constant 1.000000e+00 : f32
    %871 = vector.broadcast %cst_273 : f32 to vector<2x8xf32>
    %872 = arith.addf %871, %870 : vector<2x8xf32>
    %873 = arith.divf %871, %872 : vector<2x8xf32>
    %874 = vector.extract_strided_slice %854 {offsets = [0, 16], sizes = [2, 8], strides = [1, 1]} : vector<2x24xf32> to vector<2x8xf32>
    %875 = vector.extract_strided_slice %857 {offsets = [0, 16], sizes = [2, 8], strides = [1, 1]} : vector<2x24xf32> to vector<2x8xf32>
    %876 = arith.mulf %865, %875 : vector<2x8xf32>
    %877 = arith.addf %874, %876 : vector<2x8xf32>
    %878 = math.tanh %877 : vector<2x8xf32>
    %cst_274 = arith.constant 1.000000e+00 : f32
    %879 = vector.broadcast %cst_274 : f32 to vector<2x8xf32>
    %880 = arith.subf %879, %873 : vector<2x8xf32>
    %881 = arith.mulf %880, %878 : vector<2x8xf32>
    %882 = arith.mulf %873, %821 : vector<2x8xf32>
    %883 = arith.addf %881, %882 : vector<2x8xf32>
    %884 = vector.extract_strided_slice %447 {offsets = [14, 0], sizes = [2, 24], strides = [1, 1]} : vector<16x24xf32> to vector<2x24xf32>
    %cst_275 = arith.constant dense<0.000000e+00> : vector<2x24xf32>
    %885 = tpu.matmul %851, %439, %cst_275 {dimension_numbers = #tpu.dot_dimension_numbers<[1], [0], [0], [1], [0, 0, 1, 1], [], []>} : vector<2x8xf32>, vector<8x24xf32>, vector<2x24xf32> -> vector<2x24xf32>
    %886 = vector.broadcast %440 : vector<1x24xf32> to vector<2x24xf32>
    %887 = arith.addf %885, %886 : vector<2x24xf32>
    %888 = vector.extract_strided_slice %884 {offsets = [0, 0], sizes = [2, 8], strides = [1, 1]} : vector<2x24xf32> to vector<2x8xf32>
    %889 = vector.extract_strided_slice %887 {offsets = [0, 0], sizes = [2, 8], strides = [1, 1]} : vector<2x24xf32> to vector<2x8xf32>
    %890 = arith.addf %888, %889 : vector<2x8xf32>
    %891 = arith.negf %890 : vector<2x8xf32>
    %892 = math.exp %891 : vector<2x8xf32>
    %cst_276 = arith.constant 1.000000e+00 : f32
    %893 = vector.broadcast %cst_276 : f32 to vector<2x8xf32>
    %894 = arith.addf %893, %892 : vector<2x8xf32>
    %895 = arith.divf %893, %894 : vector<2x8xf32>
    %896 = vector.extract_strided_slice %884 {offsets = [0, 8], sizes = [2, 8], strides = [1, 1]} : vector<2x24xf32> to vector<2x8xf32>
    %897 = vector.extract_strided_slice %887 {offsets = [0, 8], sizes = [2, 8], strides = [1, 1]} : vector<2x24xf32> to vector<2x8xf32>
    %898 = arith.addf %896, %897 : vector<2x8xf32>
    %899 = arith.negf %898 : vector<2x8xf32>
    %900 = math.exp %899 : vector<2x8xf32>
    %cst_277 = arith.constant 1.000000e+00 : f32
    %901 = vector.broadcast %cst_277 : f32 to vector<2x8xf32>
    %902 = arith.addf %901, %900 : vector<2x8xf32>
    %903 = arith.divf %901, %902 : vector<2x8xf32>
    %904 = vector.extract_strided_slice %884 {offsets = [0, 16], sizes = [2, 8], strides = [1, 1]} : vector<2x24xf32> to vector<2x8xf32>
    %905 = vector.extract_strided_slice %887 {offsets = [0, 16], sizes = [2, 8], strides = [1, 1]} : vector<2x24xf32> to vector<2x8xf32>
    %906 = arith.mulf %895, %905 : vector<2x8xf32>
    %907 = arith.addf %904, %906 : vector<2x8xf32>
    %908 = math.tanh %907 : vector<2x8xf32>
    %cst_278 = arith.constant 1.000000e+00 : f32
    %909 = vector.broadcast %cst_278 : f32 to vector<2x8xf32>
    %910 = arith.subf %909, %903 : vector<2x8xf32>
    %911 = arith.mulf %910, %908 : vector<2x8xf32>
    %912 = arith.mulf %903, %851 : vector<2x8xf32>
    %913 = arith.addf %911, %912 : vector<2x8xf32>
    %cst_279 = arith.constant dense<0.000000e+00> : vector<2x24xf32>
    %914 = tpu.matmul %913, %441, %cst_279 {dimension_numbers = #tpu.dot_dimension_numbers<[1], [0], [0], [1], [0, 0, 1, 1], [], []>} : vector<2x8xf32>, vector<8x24xf32>, vector<2x24xf32> -> vector<2x24xf32>
    %915 = vector.broadcast %442 : vector<1x24xf32> to vector<2x24xf32>
    %916 = arith.addf %914, %915 : vector<2x24xf32>
    %cst_280 = arith.constant dense<0.000000e+00> : vector<2x24xf32>
    %917 = tpu.matmul %883, %443, %cst_280 {dimension_numbers = #tpu.dot_dimension_numbers<[1], [0], [0], [1], [0, 0, 1, 1], [], []>} : vector<2x8xf32>, vector<8x24xf32>, vector<2x24xf32> -> vector<2x24xf32>
    %918 = vector.broadcast %444 : vector<1x24xf32> to vector<2x24xf32>
    %919 = arith.addf %917, %918 : vector<2x24xf32>
    %920 = vector.extract_strided_slice %916 {offsets = [0, 0], sizes = [2, 8], strides = [1, 1]} : vector<2x24xf32> to vector<2x8xf32>
    %921 = vector.extract_strided_slice %919 {offsets = [0, 0], sizes = [2, 8], strides = [1, 1]} : vector<2x24xf32> to vector<2x8xf32>
    %922 = arith.addf %920, %921 : vector<2x8xf32>
    %923 = arith.negf %922 : vector<2x8xf32>
    %924 = math.exp %923 : vector<2x8xf32>
    %cst_281 = arith.constant 1.000000e+00 : f32
    %925 = vector.broadcast %cst_281 : f32 to vector<2x8xf32>
    %926 = arith.addf %925, %924 : vector<2x8xf32>
    %927 = arith.divf %925, %926 : vector<2x8xf32>
    %928 = vector.extract_strided_slice %916 {offsets = [0, 8], sizes = [2, 8], strides = [1, 1]} : vector<2x24xf32> to vector<2x8xf32>
    %929 = vector.extract_strided_slice %919 {offsets = [0, 8], sizes = [2, 8], strides = [1, 1]} : vector<2x24xf32> to vector<2x8xf32>
    %930 = arith.addf %928, %929 : vector<2x8xf32>
    %931 = arith.negf %930 : vector<2x8xf32>
    %932 = math.exp %931 : vector<2x8xf32>
    %cst_282 = arith.constant 1.000000e+00 : f32
    %933 = vector.broadcast %cst_282 : f32 to vector<2x8xf32>
    %934 = arith.addf %933, %932 : vector<2x8xf32>
    %935 = arith.divf %933, %934 : vector<2x8xf32>
    %936 = vector.extract_strided_slice %916 {offsets = [0, 16], sizes = [2, 8], strides = [1, 1]} : vector<2x24xf32> to vector<2x8xf32>
    %937 = vector.extract_strided_slice %919 {offsets = [0, 16], sizes = [2, 8], strides = [1, 1]} : vector<2x24xf32> to vector<2x8xf32>
    %938 = arith.mulf %927, %937 : vector<2x8xf32>
    %939 = arith.addf %936, %938 : vector<2x8xf32>
    %940 = math.tanh %939 : vector<2x8xf32>
    %cst_283 = arith.constant 1.000000e+00 : f32
    %941 = vector.broadcast %cst_283 : f32 to vector<2x8xf32>
    %942 = arith.subf %941, %935 : vector<2x8xf32>
    %943 = arith.mulf %942, %940 : vector<2x8xf32>
    %944 = arith.mulf %935, %883 : vector<2x8xf32>
    %945 = arith.addf %943, %944 : vector<2x8xf32>
    %c84 = arith.constant 84 : index
    %c0_284 = arith.constant 0 : index
    %946 = vector.load %arg3[%c84, %c0_284] : memref<86x8xf32, #tpu.memory_space<vmem>>, vector<1x8xf32>
    %c85 = arith.constant 85 : index
    %c0_285 = arith.constant 0 : index
    %947 = vector.load %arg3[%c85, %c0_285] : memref<86x8xf32, #tpu.memory_space<vmem>>, vector<1x1xf32>
    %948 = vector.broadcast %946 : vector<1x8xf32> to vector<2x8xf32>
    %949 = arith.mulf %945, %948 : vector<2x8xf32>
    %cst_286 = arith.constant dense<0.000000e+00> : vector<2xf32>
    %950 = vector.multi_reduction <add>, %949, %cst_286 [1] : vector<2x8xf32> to vector<2xf32>
    %951 = vector.shape_cast %950 : vector<2xf32> to vector<2x1xf32>
    %952 = vector.broadcast %947 : vector<1x1xf32> to vector<2x1xf32>
    %953 = arith.addf %951, %952 : vector<2x1xf32>
    %c0_287 = arith.constant 0 : index
    %c0_288 = arith.constant 0 : index
    %954 = vector.load %arg5[%c0_287, %c0_288] : memref<2x1xf32, #tpu.memory_space<vmem>>, vector<2x1xf32>
    tpu.vector_store %arg5[%c0_287, %c0_288], %953 {strides = array<i32>} : memref<2x1xf32, #tpu.memory_space<vmem>>, vector<2x1xf32>,
    return
  }
}

</mosaic_0001>

<bundles_post_ra>
// kernel: transformer_forward.1
= control target key start
LH: loop header
LB: loop body
LE: loop exit
PB: predicated region body
PF: predicated region fallthrough
CT: control target
= control target key end

     0   :  { %10 = vsyncpa [#allocation3], 0  ;;  %s8546_s18 = smov [#allocation2]   ;;  %s9586_s0 = inlined_call_operand.vmem [shape: f32[16,6], index: 0, kind: input, shape index: {}]   ;;  %s9587_s1 = inlined_call_operand.vmem [shape: f32[16,8], index: 1, kind: input, shape index: {}]   ;;  %s9588_s2 = inlined_call_operand.vmem [shape: f32[54,24], index: 2, kind: input, shape index: {}]   ;;  %s9589_s3 = inlined_call_operand.vmem [shape: f32[86,8], index: 3, kind: input, shape index: {}]   ;;  %s9590_s4 = inlined_call_operand.hbm [shape: f32[2,24,2048], index: 4, kind: input, shape index: {}]   ;;  %s9591_s5 = inlined_call_operand.vmem [shape: f32[2,1], index: 5, kind: output, shape index: {}]  }
   0x1   :  { %s24_s19 = sshll.u32 %s8546_s18, 4  ;;  %s25_s19 = int_to_ptr.vmem [resolvable:$true] %s24_s19 }
   0x2   :  { %s8532_s20 = scalar_lea.vmem %s25_s19, 12288  ;;  %p8537_p1 = scmp.lt.s32.totalorder %s25_s19, %s25_s19 }
   0x3   :  { %p8533_p0 = scmp.ne.s32.totalorder %s25_s19, %s8532_s20  ;;  %p8538_p2 = scmp.lt.s32.totalorder %s8532_s20, %s8532_s20 }
   0x5   :  { %p8539_p3 = por %p8538_p2, %p8537_p1 }
   0x7   :  { %p8540_p4 = pnand %p8539_p3, %p8533_p0 }
   0x9   :  { %8543 = shalt.err (!%p8540_p4)
}
   0xa   :  { %s8547_s21 = smov 2048   ;;  %s8548_s22 = smov 128  }
   0xb   :  { %30 = dma.hbm_to_vmem [thread:$0]  %s9590_s4, 12288, %s25_s19, [#allocation3], %s8547_s21, %s8547_s21, %s8548_s22  }
   0xc   :  { %8544 = dma.done.wait [#allocation3], 12288  }
   0xd   :  { %8545 = vsyncadd [#allocation3], 4294955008  ;;  %vm46_vm0 = vcmask 1045504   ;;  %vm39_vm1 = vcmask 48128   ;;  %v34_v0 = vld [vmem:[%s9589_s3] sm:$0x3f]  ;;  %v125_v45 = vlaneseq }
   0xe   :  { %v35_v1 = vld [vmem:[%s9586_s0] sm:$0xff]  ;;  %v36_v2 = vld [vmem:[%s9586_s0 + $0x8] sm:$0xff]  ;;  %8046 = vmatprep.subr.msk.mxu1 %vm46_vm0, %v34_v0  ;;  %v205_v3 = vld [vmem:[%s9589_s3 + $0x16] sm:$0xff]  ;;  %s8549_s14 = smov 8   ;;  %s8550_s15 = smov 16   ;;  %vm172_vm2 = vcmask 1041408  }
   0xf   :  { %8048 = vmatprep.mubr.msk.f32.mxu1 %vm39_vm1, %v35_v1  ;;  %8047 = vmatpush3.msk.msra.mxu1 %vm46_vm0, %v34_v0  ;;  %v204_v4 = vld [vmem:[%s9589_s3 + $0xe] sm:$0xff]  ;;  %v203_v5 = vld [vmem:[%s9589_s3 + $0x6] sm:$0xff]  ;;  %vm197_vm3 = vcmask 64512   ;;  %vm200_vm4 = vcmask 130048   ;;  %vm211_vm5 = vcmask 195584   ;;  %vm388_vm6 = vcmask 15360  }
  0x10   :  { %8049 = vmatmul.mubr.msk.f32.vlgmr.msra.gmra.mxu1 %vm39_vm1, %v36_v2  ;;  %8051 = vmatprep.subr.mxu1 %v205_v3  ;;  %v38_v6 = vld [vmem:[%s9587_s1 + $0x8] sm:$0xff]  ;;  %v37_v8 = vld [vmem:[%s9587_s1] sm:$0xff]  ;;  %v7752_v29 = vld [vmem:[%s9589_s3 + $0x1e] ss:$0 sm:$0xff]  ;;  %s8551_s21 = smov 120   ;;  %s8552_s22 = smov 112  }
  0x11   :  { %8052 = vmatpush3.msra.mxu1 %v205_v3  ;;  %v295_v28 = vld [vmem:[%s9588_s2] sm:$0xff]  ;;  %v7755_v36 = vld [vmem:[%s9588_s2 + $0x8] ss:$0 sm:$0xff]  ;;  %v8680_v46 = vshrl.u32 %v125_v45, 7  ;;  %v129_v48 = vand.u32 127, %v125_v45  ;;  %s8554_s23 = smov 118  }
  0x12   :  { %8053 = vmatprep.subr.mxu1 %v204_v4  ;;  %8060 = vmatprep.subr.mxu0 %v295_v28  ;;  %v8553_v53 = vmov -1e+30   ;;  %s8555_s24 = smov 126   ;;  %s8556_s25 = smov 110   ;;  %vm1223_vm9 = vcmask 31744   ;;  %vm8567_vm10 = vmmov 0  }
  0x13   :  { %8054 = vmatpush3.msra.mxu1 %v204_v4  ;;  %8061 = vmatpush3.msra.mxu0 %v295_v28  ;;  %v127_v47 = vadd.s32 8, %v8680_v46  ;;  %v158_v50 = vand.u32 1, %v129_v48  ;;  %v134_v51 = vand.u32 1, %v8680_v46  ;;  %s8557_s26 = smov 116   ;;  %s8558_s27 = smov 124   ;;  %vm7729_vm11 = vcmask 58368  }
  0x14   :  { %8055 = vmatprep.subr.mxu1 %v203_v5  ;;  %s8559_s28 = smov 108   ;;  %s8560_s29 = smov 114   ;;  %vm7738_vm12 = vcmask 1024  }
  0x15   :  { %8056 = vmatpush3.msra.mxu1 %v203_v5  ;;  %v141_v49 = vand.u32 1, %v127_v47  ;;  %vm166_vm8 = vcmp.eq.s32.totalorder %v134_v51, %v158_v50  ;;  %s8561_s30 = smov 122   ;;  %s8562_s4 = smov 106  }
  0x16   :  { %v8686_v57 = vsel %vm166_vm8, 0.0, %v8553_v53  ;;  %s8563_s6 = smov 2   ;;  %s8564_s7 = smov 4  }
  0x17   :  { %vm167_vm7 = vcmp.eq.s32.totalorder %v141_v49, %v158_v50  ;;  %s8565_s9 = smov 6  }
  0x18   :  { %v8684_v54 = vsel %vm167_vm7, 0.0, %v8553_v53 }
  0xd0   :  { %v8050_v7 = vpop.f32.mrf.mxu1 }
  0xd1   :  { %v122_v9 = vadd.f32 %v8050_v7, %v38_v6 }
  0xd2   :  { %v116_v10 = vpop.f32.mrf.mxu1 }
  0xd3   :  { %v117_v11 = vadd.f32 %v116_v10, %v37_v8  ;;  %v180_v13 = vrot.slane %v122_v9, 2  ;;  %v174_v22 = vrot.slane %v122_v9, 6 }
  0xd5   :  { %184 = vrot.lane.b32.xlu0 %v117_v11, %s8549_s14  ;;  %v179_v12 = vrot.slane %v117_v11, 2  ;;  %v183_v15 = vsel %vm46_vm0, %v180_v13, 0.0  ;;  %v173_v16 = vrot.slane %v117_v11, 6 }
  0xd7   :  { %v181_v14 = vsel %vm46_vm0, %v179_v12, %v180_v13  ;;  %v178_v18 = vsel %vm172_vm2, 0.0, %v173_v16  ;;  %v175_v24 = vsel %vm172_vm2, %v173_v16, %v174_v22 }
  0xd8   :  { %191 = vrot.lane.b32.xlu1 %v181_v14, %s8550_s15 }
  0xd9   :  { %186 = vrot.lane.b32.xlu0 %v122_v9, %s8549_s14 }
  0xdc   :  { %193 = vrot.lane.b32.xlu1 %v183_v15, %s8550_s15 }
 0x147   :  { %v185_v17 = vpop.permute.xlu0 %184 }
 0x148   :  { %v198_v19 = vsel %vm197_vm3, %v178_v18, %v185_v17 }
 0x14a   :  { %v192_v20 = vpop.permute.xlu1 %191 }
 0x14b   :  { %v201_v21 = vsel %vm200_vm4, %v198_v19, %v192_v20  ;;  %v187_v23 = vpop.permute.xlu0 %186 }
 0x14c   :  { %8057 = vmatprep.mubr.msk.f32.mxu1 %vm211_vm5, %v201_v21  ;;  %v199_v25 = vsel %vm197_vm3, %v175_v24, %v187_v23 }
 0x14e   :  { %v194_v26 = vpop.permute.xlu1 %193 }
 0x14f   :  { %v202_v27 = vsel %vm200_vm4, %v199_v25, %v194_v26 }
 0x150   :  { %8058 = vmatmul.mubr.msk.f32.vlgmr.msra.gmra.mxu1 %vm211_vm5, %v202_v27 }
 0x210   :  { %v8059_v30 = vpop.f32.mrf.mxu1 }
 0x211   :  { %v290_v31 = vadd.f32 %v8059_v30, %v7752_v29 }
 0x212   :  { %v284_v32 = vpop.f32.mrf.mxu1 }
 0x213   :  { %v285_v33 = vadd.f32 %v7752_v29, %v284_v32  ;;  %v8651_v35 = vadd.f32 %v290_v31, %v122_v9 }
 0x215   :  { %v8649_v34 = vadd.f32 %v285_v33, %v117_v11 }
 0x217   :  { %8062 = vmatprep.mubr.msk.f32.mxu0 %vm197_vm3, %v8649_v34 }
 0x218   :  { %8063 = vmatmul.mubr.msk.f32.vlgmr.msra.gmra.mxu0 %vm197_vm3, %v8651_v35 }
 0x2d8   :  { %v8064_v37 = vpop.f32.mrf.mxu0 }
 0x2d9   :  { %v8660_v38 = vadd.f32 %v8064_v37, %v7755_v36 }
 0x2da   :  { %v373_v39 = vpop.f32.mrf.mxu0 }
 0x2db   :  { %v8662_v40 = vadd.f32 %v7755_v36, %v373_v39  ;;  %386 = vrot.lane.b32.xlu0 %v8660_v38, %s8551_s21 }
 0x2dd   :  { %384 = vrot.lane.b32.xlu1 %v8662_v40, %s8551_s21  ;;  %8069 = vmatprep.mubr.msk.f32.mxu0 %vm388_vm6, %v8662_v40 }
 0x2df   :  { %496 = vrot.lane.b32.xlu0 %v8660_v38, %s8552_s22 }
 0x2e1   :  { %494 = vrot.lane.b32.xlu1 %v8662_v40, %s8552_s22 }
 0x34d   :  { %v387_v41 = vpop.permute.xlu0 %386 }
 0x34e   :  { %8065 = vmatprep.subr.msk.mxu0 %vm388_vm6, %v387_v41 }
 0x34f   :  { %8066 = vmatpush3.xpose.msk.msra.mxu0 %vm388_vm6, %v387_v41  ;;  %v385_v42 = vpop.permute.xlu1 %384 }
 0x350   :  { %8067 = vmatprep.subr.msk.mxu0 %vm388_vm6, %v385_v42 }
 0x351   :  { %v497_v43 = vpop.permute.xlu0 %496 }
 0x352   :  { %8072 = vmatprep.subr.mxu1 %v497_v43 }
 0x353   :  { %8068 = vmatpush3.xpose.msk.msra.mxu0 %vm388_vm6, %v385_v42  ;;  %8073 = vmatpush3.msra.mxu1 %v497_v43  ;;  %v495_v44 = vpop.permute.xlu1 %494 }
 0x354   :  { %8074 = vmatprep.subr.mxu1 %v495_v44 }
 0x355   :  { %8075 = vmatpush3.msra.mxu1 %v495_v44 }
 0x356   :  { %8070 = vmatmul.mubr.msk.f32.vlgmr.msra.gmra.mxu0 %vm388_vm6, %v8660_v38 }
 0x416   :  { %v8071_v52 = vpop.f32.mrf.mxu0 }
 0x417   :  { %v473_v55 = vmul.f32 0.70710677, %v8071_v52 }
 0x418   :  { %v463_v56 = vpop.f32.mrf.mxu0 }
 0x419   :  { %v472_v58 = vmul.f32 0.70710677, %v463_v56  ;;  %v475_v59 = vadd.f32 %v473_v55, %v8684_v54 }
 0x41b   :  { %v479_v60 = vsel %vm200_vm4, %v475_v59, -inf  ;;  %v474_v61 = vadd.f32 %v472_v58, %v8686_v57 }
 0x41c   :  { %480 = vmax.xlane.f32.xlu1 %v479_v60 }
 0x41d   :  { %v476_v62 = vsel %vm200_vm4, %v474_v61, -inf }
 0x41e   :  { %477 = vmax.xlane.f32.xlu0 %v476_v62 }
 0x42d   :  { %589 = vrot.lane.b32.xlu1 %v8662_v40, %s8554_s23 }
 0x431   :  { %587 = vrot.lane.b32.xlu1 %v8660_v38, %s8555_s24 }
 0x434   :  { %591 = vrot.lane.b32.xlu0 %v8660_v38, %s8554_s23 }
 0x435   :  { %698 = vrot.lane.b32.xlu1 %v8662_v40, %s8556_s25 }
 0x438   :  { %585 = vrot.lane.b32.xlu0 %v8662_v40, %s8555_s24 }
 0x43c   :  { %700 = vrot.lane.b32.xlu0 %v8660_v38, %s8556_s25 }
 0x4a5   :  { %v481_v63 = vpop.xlane.xlu1 %480 }
 0x4a6   :  { %v483_v0 = vsub.f32 %v475_v59, %v481_v63 }
 0x4a7   :  { %v478_v1 = vpop.xlane.xlu0 %477 }
 0x4a8   :  { %v482_v2 = vsub.f32 %v474_v61, %v478_v1  ;;  %v486_v3 = vmul.f32 1.442695, %v483_v0 }
 0x4a9   :  { %v590_v4 = vpop.permute.xlu1 %589 }
 0x4aa   :  { %v484_v5 = vmul.f32 1.442695, %v482_v2 }
 0x4ab   :  { %v592_v6 = vpop.permute.xlu0 %591 }
 0x4ac   :  { %8348 = vpow2.f32 %v484_v5  ;;  %8079 = vmatprep.subr.msk.mxu1 %vm388_vm6, %v592_v6 }
 0x4ad   :  { %8350 = vpow2.f32 %v486_v3  ;;  %v588_v7 = vpop.permute.xlu1 %587 }
 0x4af   :  { %v586_v8 = vpop.permute.xlu0 %585 }
 0x4b1   :  { %v699_v10 = vpop.permute.xlu1 %698 }
 0x4b3   :  { %v701_v9 = vpop.permute.xlu0 %700 }
 0x4b4   :  { %8086 = vmatprep.subr.mxu0 %v701_v9 }
 0x4b5   :  { %8087 = vmatpush3.msra.mxu0 %v701_v9 }
 0x4b6   :  { %8088 = vmatprep.subr.mxu0 %v699_v10 }
 0x4b7   :  { %8089 = vmatpush3.msra.mxu0 %v699_v10 }
 0x4b9   :  { %v8705_v11 = vpop.eup %8348 }
 0x4ba   :  { %v8707_v12 = vpop.eup %8350  ;;  %8076 = vmatprep.mubr.msk.f32.mxu1 %vm200_vm4, %v8705_v11 }
 0x4bb   :  { %8077 = vmatmul.mubr.msk.f32.vlgmr.msra.gmra.mxu1 %vm200_vm4, %v8707_v12 }
 0x4bc   :  { %8080 = vmatpush3.xpose.msk.msra.mxu1 %vm388_vm6, %v592_v6  ;;  %8083 = vmatprep.mubr.msk.f32.mxu1 %vm388_vm6, %v586_v8 }
 0x4bd   :  { %8081 = vmatprep.subr.msk.mxu1 %vm388_vm6, %v590_v4 }
 0x4c0   :  { %8082 = vmatpush3.xpose.msk.msra.mxu1 %vm388_vm6, %v590_v4 }
 0x4c3   :  { %8084 = vmatmul.mubr.msk.f32.vlgmr.msra.gmra.mxu1 %vm388_vm6, %v588_v7 }
 0x57b   :  { %v8718_v13 = vpop.f32.mrf.mxu1 }
 0x57d   :  { %v8720_v14 = vpop.f32.mrf.mxu1 }
 0x583   :  { %v8085_v15 = vpop.f32.mrf.mxu1 }
 0x584   :  { %v677_v16 = vmul.f32 0.70710677, %v8085_v15 }
 0x585   :  { %v667_v17 = vpop.f32.mrf.mxu1 }
 0x586   :  { %v676_v18 = vmul.f32 0.70710677, %v667_v17  ;;  %v679_v19 = vadd.f32 %v677_v16, %v8684_v54 }
 0x588   :  { %v683_v20 = vsel %vm200_vm4, %v679_v19, -inf  ;;  %v678_v21 = vadd.f32 %v676_v18, %v8686_v57 }
 0x589   :  { %684 = vmax.xlane.f32.xlu1 %v683_v20 }
 0x58a   :  { %v680_v22 = vsel %vm200_vm4, %v678_v21, -inf }
 0x58b   :  { %681 = vmax.xlane.f32.xlu0 %v680_v22 }
 0x59a   :  { %793 = vrot.lane.b32.xlu1 %v8662_v40, %s8557_s26 }
 0x59e   :  { %791 = vrot.lane.b32.xlu1 %v8660_v38, %s8558_s27 }
 0x5a1   :  { %795 = vrot.lane.b32.xlu0 %v8660_v38, %s8557_s26 }
 0x5a2   :  { %902 = vrot.lane.b32.xlu1 %v8662_v40, %s8559_s28 }
 0x5a5   :  { %789 = vrot.lane.b32.xlu0 %v8662_v40, %s8558_s27 }
 0x5a9   :  { %904 = vrot.lane.b32.xlu0 %v8660_v38, %s8559_s28 }
 0x612   :  { %v685_v23 = vpop.xlane.xlu1 %684 }
 0x613   :  { %v687_v24 = vsub.f32 %v679_v19, %v685_v23 }
 0x614   :  { %v682_v25 = vpop.xlane.xlu0 %681 }
 0x615   :  { %v686_v26 = vsub.f32 %v678_v21, %v682_v25  ;;  %v690_v27 = vmul.f32 1.442695, %v687_v24 }
 0x616   :  { %v794_v28 = vpop.permute.xlu1 %793 }
 0x617   :  { %v688_v29 = vmul.f32 1.442695, %v686_v26 }
 0x618   :  { %v796_v30 = vpop.permute.xlu0 %795 }
 0x619   :  { %8352 = vpow2.f32 %v688_v29  ;;  %8093 = vmatprep.subr.msk.mxu0 %vm388_vm6, %v796_v30 }
 0x61a   :  { %8354 = vpow2.f32 %v690_v27  ;;  %v792_v31 = vpop.permute.xlu1 %791 }
 0x61c   :  { %v790_v32 = vpop.permute.xlu0 %789 }
 0x61e   :  { %v903_v36 = vpop.permute.xlu1 %902 }
 0x620   :  { %v905_v33 = vpop.permute.xlu0 %904 }
 0x621   :  { %8100 = vmatprep.subr.mxu1 %v905_v33 }
 0x622   :  { %8101 = vmatpush3.msra.mxu1 %v905_v33 }
 0x623   :  { %8102 = vmatprep.subr.mxu1 %v903_v36 }
 0x624   :  { %8103 = vmatpush3.msra.mxu1 %v903_v36 }
 0x626   :  { %v8739_v37 = vpop.eup %8352 }
 0x627   :  { %v8741_v39 = vpop.eup %8354  ;;  %8090 = vmatprep.mubr.msk.f32.mxu0 %vm200_vm4, %v8739_v37  ;;  %v692_v17 = vsel %vm200_vm4, %v8739_v37, 0.0 }
 0x628   :  { %8091 = vmatmul.mubr.msk.f32.vlgmr.msra.gmra.mxu0 %vm200_vm4, %v8741_v39  ;;  %v695_v16 = vsel %vm200_vm4, %v8741_v39, 0.0 }
 0x629   :  { %8094 = vmatpush3.xpose.msk.msra.mxu0 %vm388_vm6, %v796_v30  ;;  %8097 = vmatprep.mubr.msk.f32.mxu0 %vm388_vm6, %v790_v32  ;;  %v491_v30 = vsel %vm200_vm4, %v8707_v12, 0.0 }
 0x62a   :  { %8095 = vmatprep.subr.msk.mxu0 %vm388_vm6, %v794_v28 }
 0x62d   :  { %8096 = vmatpush3.xpose.msk.msra.mxu0 %vm388_vm6, %v794_v28 }
 0x630   :  { %8098 = vmatmul.mubr.msk.f32.vlgmr.msra.gmra.mxu0 %vm388_vm6, %v792_v31  ;;  %v488_v31 = vsel %vm200_vm4, %v8705_v11, 0.0 }
 0x6e8   :  { %v8752_v41 = vpop.f32.mrf.mxu0 }
 0x6ea   :  { %v8754_v42 = vpop.f32.mrf.mxu0 }
 0x6f0   :  { %v8099_v43 = vpop.f32.mrf.mxu0 }
 0x6f1   :  { %v881_v44 = vmul.f32 0.70710677, %v8099_v43 }
 0x6f2   :  { %v871_v45 = vpop.f32.mrf.mxu0 }
 0x6f3   :  { %v880_v47 = vmul.f32 0.70710677, %v871_v45  ;;  %v883_v48 = vadd.f32 %v881_v44, %v8684_v54 }
 0x6f5   :  { %v887_v49 = vsel %vm200_vm4, %v883_v48, -inf  ;;  %v882_v50 = vadd.f32 %v880_v47, %v8686_v57 }
 0x6f6   :  { %888 = vmax.xlane.f32.xlu1 %v887_v49 }
 0x6f7   :  { %v884_v51 = vsel %vm200_vm4, %v882_v50, -inf }
 0x6f8   :  { %885 = vmax.xlane.f32.xlu0 %v884_v51 }
 0x707   :  { %997 = vrot.lane.b32.xlu1 %v8662_v40, %s8560_s29 }
 0x70b   :  { %995 = vrot.lane.b32.xlu1 %v8660_v38, %s8561_s30 }
 0x70e   :  { %999 = vrot.lane.b32.xlu0 %v8660_v38, %s8560_s29 }
 0x712   :  { %993 = vrot.lane.b32.xlu0 %v8662_v40, %s8561_s30 }
 0x77f   :  { %v889_v52 = vpop.xlane.xlu1 %888 }
 0x780   :  { %v891_v53 = vsub.f32 %v883_v48, %v889_v52 }
 0x781   :  { %v886_v55 = vpop.xlane.xlu0 %885 }
 0x782   :  { %v890_v56 = vsub.f32 %v882_v50, %v886_v55  ;;  %v894_v58 = vmul.f32 1.442695, %v891_v53 }
 0x783   :  { %v998_v0 = vpop.permute.xlu1 %997 }
 0x784   :  { %v892_v59 = vmul.f32 1.442695, %v890_v56 }
 0x785   :  { %v1000_v60 = vpop.permute.xlu0 %999 }
 0x786   :  { %8356 = vpow2.f32 %v892_v59  ;;  %8107 = vmatprep.subr.msk.mxu1 %vm388_vm6, %v1000_v60 }
 0x787   :  { %8358 = vpow2.f32 %v894_v58  ;;  %v996_v1 = vpop.permute.xlu1 %995 }
 0x789   :  { %v994_v63 = vpop.permute.xlu0 %993 }
 0x793   :  { %v8357_v61 = vpop.eup %8356 }
 0x794   :  { %v8359_v62 = vpop.eup %8358  ;;  %8104 = vmatprep.mubr.msk.f32.mxu1 %vm200_vm4, %v8357_v61  ;;  %v896_v18 = vsel %vm200_vm4, %v8357_v61, 0.0 }
 0x795   :  { %8105 = vmatmul.mubr.msk.f32.vlgmr.msra.gmra.mxu1 %vm200_vm4, %v8359_v62  ;;  %v899_v19 = vsel %vm200_vm4, %v8359_v62, 0.0 }
 0x796   :  { %8108 = vmatpush3.xpose.msk.msra.mxu1 %vm388_vm6, %v1000_v60  ;;  %8111 = vmatprep.mubr.msk.f32.mxu1 %vm388_vm6, %v994_v63 }
 0x797   :  { %8109 = vmatprep.subr.msk.mxu1 %vm388_vm6, %v998_v0 }
 0x79a   :  { %8110 = vmatpush3.xpose.msk.msra.mxu1 %vm388_vm6, %v998_v0 }
 0x79d   :  { %8112 = vmatmul.mubr.msk.f32.vlgmr.msra.gmra.mxu1 %vm388_vm6, %v996_v1 }
 0x855   :  { %v8776_v2 = vpop.f32.mrf.mxu1 }
 0x857   :  { %v8778_v3 = vpop.f32.mrf.mxu1 }
 0x85d   :  { %v8113_v4 = vpop.f32.mrf.mxu1 }
 0x85e   :  { %v1085_v5 = vmul.f32 0.70710677, %v8113_v4 }
 0x85f   :  { %v1075_v6 = vpop.f32.mrf.mxu1 }
 0x860   :  { %v1084_v7 = vmul.f32 0.70710677, %v1075_v6  ;;  %v1087_v8 = vadd.f32 %v1085_v5, %v8684_v54 }
 0x862   :  { %v1091_v9 = vsel %vm200_vm4, %v1087_v8, -inf  ;;  %v1086_v10 = vadd.f32 %v1084_v7, %v8686_v57 }
 0x863   :  { %1092 = vmax.xlane.f32.xlu1 %v1091_v9 }
 0x864   :  { %v1088_v15 = vsel %vm200_vm4, %v1086_v10, -inf }
 0x865   :  { %1089 = vmax.xlane.f32.xlu0 %v1088_v15 }
 0x874   :  { %1106 = vrot.lane.b32.xlu1 %v8662_v40, %s8562_s4 }
 0x87b   :  { %1108 = vrot.lane.b32.xlu0 %v8660_v38, %s8562_s4 }
 0x898   :  { %696 = vadd.xlane.f32.xlu1 %v695_v16 }
 0x89a   :  { %693 = vadd.xlane.f32.xlu0 %v692_v17 }
 0x89e   :  { %897 = vadd.xlane.f32.xlu0 %v896_v18 }
 0x8a2   :  { %900 = vadd.xlane.f32.xlu0 %v899_v19 }
 0x8ec   :  { %v1093_v20 = vpop.xlane.xlu1 %1092 }
 0x8ed   :  { %v1095_v21 = vsub.f32 %v1087_v8, %v1093_v20 }
 0x8ee   :  { %v1090_v40 = vpop.xlane.xlu0 %1089 }
 0x8ef   :  { %v1098_v22 = vmul.f32 1.442695, %v1095_v21  ;;  %v1094_v23 = vsub.f32 %v1086_v10, %v1090_v40 }
 0x8f0   :  { %v1107_v25 = vpop.permute.xlu1 %1106 }
 0x8f1   :  { %8360 = vpow2.f32 %v1098_v22  ;;  %v1096_v38 = vmul.f32 1.442695, %v1094_v23 }
 0x8f2   :  { %v1109_v24 = vpop.permute.xlu0 %1108 }
 0x8f3   :  { %8362 = vpow2.f32 %v1096_v38  ;;  %8114 = vmatprep.subr.mxu0 %v1109_v24 }
 0x8f4   :  { %8115 = vmatpush3.msra.mxu0 %v1109_v24 }
 0x8f5   :  { %8116 = vmatprep.subr.mxu0 %v1107_v25 }
 0x8f6   :  { %8117 = vmatpush3.msra.mxu0 %v1107_v25 }
 0x8fe   :  { %v8361_v26 = vpop.eup %8360 }
 0x8ff   :  { %v1103_v27 = vsel %vm200_vm4, %v8361_v26, 0.0 }
 0x900   :  { %v8363_v28 = vpop.eup %8362  ;;  %1104 = vadd.xlane.f32.xlu0 %v1103_v27 }
 0x901   :  { %8118 = vmatprep.mubr.msk.f32.mxu0 %vm200_vm4, %v8363_v28  ;;  %v1100_v29 = vsel %vm200_vm4, %v8363_v28, 0.0 }
 0x902   :  { %1101 = vadd.xlane.f32.xlu1 %v1100_v29  ;;  %8119 = vmatmul.mubr.msk.f32.vlgmr.msra.gmra.mxu0 %vm200_vm4, %v8361_v26 }
 0x904   :  { %492 = vadd.xlane.f32.xlu0 %v491_v30  ;;  %v1359_v30 = vld [vmem:[#allocation2 + $0x8] sm:$0xff] }
 0x905   :  { %1421 = vmatprep.subr.mxu1 %v1359_v30 }
 0x906   :  { %489 = vadd.xlane.f32.xlu1 %v488_v31  ;;  %v1358_v31 = vld [vmem:[#allocation2] sm:$0xff] }
 0x907   :  { %1422 = vmatpush1.msra.mxu1 %v1358_v31 }
 0x921   :  { %v697_v32 = vpop.xlane.xlu1 %696 }
 0x922   :  { %8364 = vrcp.f32 %v697_v32  ;;  %v1360_v32 = vld [vmem:[#allocation2 + $0x10] sm:$0xff] }
 0x923   :  { %v694_v33 = vpop.xlane.xlu0 %693 }
 0x924   :  { %8366 = vrcp.f32 %v694_v33  ;;  %v8566_v33 = vmov 0.0  }
 0x925   :  { %1455 = vmatprep.mubr.f32.mxu1 %v8566_v33 }
 0x927   :  { %v898_v36 = vpop.xlane.xlu0 %897 }
 0x928   :  { %8368 = vrcp.f32 %v898_v36  ;;  %v1558_v36 = vld [vmem:[#allocation2 + $0x28] sm:$0xff] }
 0x929   :  { %1614 = vmatprep.subr.mxu1 %v1558_v36 }
 0x92b   :  { %v901_v37 = vpop.xlane.xlu0 %900 }
 0x92c   :  { %8370 = vrcp.f32 %v901_v37  ;;  %v1560_v37 = vld [vmem:[#allocation2 + $0x38] sm:$0xff] }
 0x92f   :  { %v8365_v39 = vpop.eup %8364 }
 0x930   :  { %v788_v43 = vmul.f32 %v8365_v39, %v8752_v41  ;;  %v1228_v41 = vld [vmem:[%s9589_s3 + $0x1f] sm:$0xff] }
 0x931   :  { %v8367_v44 = vpop.eup %8366  ;;  %8121 = vmatprep.subr.mxu0 %v1228_v41 }
 0x932   :  { %1201 = vrot.lane.b32.xlu0 %v788_v43, %s8563_s6  ;;  %v787_v12 = vmul.f32 %v8367_v44, %v8754_v42  ;;  %8122 = vmatpush3.msra.mxu0 %v1228_v41 }
 0x934   :  { %1199 = vrot.lane.b32.xlu1 %v787_v12, %s8563_s6 }
 0x935   :  { %v8369_v11 = vpop.eup %8368 }
 0x936   :  { %v991_v45 = vmul.f32 %v8369_v11, %v8778_v3 }
 0x938   :  { %1207 = vrot.lane.b32.xlu1 %v991_v45, %s8564_s7 }
 0x939   :  { %v8371_v47 = vpop.eup %8370 }
 0x93a   :  { %v992_v48 = vmul.f32 %v8371_v47, %v8776_v2 }
 0x93c   :  { %1209 = vrot.lane.b32.xlu1 %v992_v48, %s8564_s7  ;;  %v7785_v48 = vld [vmem:[%s9589_s3 + $0x28] ss:$0 sm:$0xff] }
 0x989   :  { %v1105_v42 = vpop.xlane.xlu0 %1104 }
 0x98a   :  { %8372 = vrcp.f32 %v1105_v42  ;;  %v7786_v42 = vld [vmem:[%s9589_s3 + $0x29] ss:$0 sm:$0xff] }
 0x98b   :  { %v1102_v49 = vpop.xlane.xlu1 %1101 }
 0x98c   :  { %8374 = vrcp.f32 %v1102_v49 }
 0x98d   :  { %v493_v59 = vpop.xlane.xlu0 %492 }
 0x98f   :  { %v490_v58 = vpop.xlane.xlu1 %489 }
 0x990   :  { %8376 = vrcp.f32 %v490_v58 }
 0x991   :  { %8378 = vrcp.f32 %v493_v59  ;;  %v1747_v59 = vld [vmem:[#allocation2 + $0x128] sm:$0xff] }
 0x997   :  { %v8373_v50 = vpop.eup %8372 }
 0x999   :  { %v8375_v53 = vpop.eup %8374 }
 0x99d   :  { %v8377_v62 = vpop.eup %8376 }
 0x99e   :  { %v8379_v63 = vpop.eup %8378  ;;  %v583_v2 = vmul.f32 %v8377_v62, %v8720_v14  ;;  %v1748_v62 = vld [vmem:[#allocation2 + $0x130] sm:$0xff] }
 0x99f   :  { %v584_v3 = vmul.f32 %v8379_v63, %v8718_v13  ;;  %v7782_v13 = vld [vmem:[%s9589_s3 + $0x27] ss:$0 sm:$0xff]  ;;  %v1554_v63 = vld [vmem:[#allocation2 + $0x108] sm:$0xff] }
 0x9a4   :  { %v1202_v1 = vpop.permute.xlu0 %1201 }
 0x9a5   :  { %v1222_v6 = vsel %vm388_vm6, %v584_v3, %v1202_v1 }
 0x9a6   :  { %v1200_v60 = vpop.permute.xlu1 %1199 }
 0x9a7   :  { %v1221_v4 = vsel %vm388_vm6, %v583_v2, %v1200_v60  ;;  %v1749_v60 = vld [vmem:[#allocation2 + $0x138] sm:$0xff] }
 0x9aa   :  { %v1208_v61 = vpop.permute.xlu1 %1207 }
 0x9ab   :  { %v1224_v7 = vsel %vm1223_vm9, %v1221_v4, %v1208_v61  ;;  %v1746_v61 = vld [vmem:[#allocation2 + $0x120] sm:$0xff] }
 0x9ae   :  { %v1210_v0 = vpop.permute.xlu1 %1209 }
 0x9af   :  { %v1225_v9 = vsel %vm1223_vm9, %v1222_v6, %v1210_v0  ;;  %v1556_v0 = vld [vmem:[#allocation2 + $0x118] sm:$0xff]  ;;  %v8869_v6 = vsub.s32 0, %v8680_v46 }
 0x9c2   :  { %v8120_v51 = vpop.f32.mrf.mxu0 }
 0x9c3   :  { %v1196_v52 = vmul.f32 %v8373_v50, %v8120_v51 }
 0x9c4   :  { %v1184_v55 = vpop.f32.mrf.mxu0 }
 0x9c5   :  { %v1195_v56 = vmul.f32 %v8375_v53, %v1184_v55  ;;  %1217 = vrot.lane.b32.xlu1 %v1196_v52, %s8565_s9  ;;  %v1557_v53 = vld [vmem:[#allocation2 + $0x20] sm:$0xff]  ;;  %v1559_v55 = vld [vmem:[#allocation2 + $0x30] sm:$0xff] }
 0x9c7   :  { %1215 = vrot.lane.b32.xlu0 %v1195_v56, %s8565_s9 }
 0xa37   :  { %v1218_v5 = vpop.permute.xlu1 %1217 }
 0xa38   :  { %v1227_v15 = vsel %vm39_vm1, %v1225_v9, %v1218_v5  ;;  %v1562_v5 = vld [vmem:[#allocation2 + $0xa0] ss:$8 sm:$0xf] }
 0xa39   :  { %v1216_v8 = vpop.permute.xlu0 %1215 }
 0xa3a   :  { %v1226_v10 = vsel %vm39_vm1, %v1224_v7, %v1216_v8  ;;  %v8872_v7 = vsub.s32 2, %v8680_v46 }
 0xa3b   :  { %8123 = vmatprep.mubr.msk.f32.mxu0 %vm197_vm3, %v1226_v10  ;;  %v8879_v10 = vsub.s32 1, %v8680_v46 }
 0xa3c   :  { %8124 = vmatmul.mubr.msk.f32.vlgmr.msra.gmra.mxu0 %vm197_vm3, %v1227_v15  ;;  %v8882_v15 = vsub.s32 3, %v8680_v46 }
 0xa3d   :  { %1532 = vmatprep.mubr.f32.mxu0 %v8566_v33 }
 0xafc   :  { %v8125_v14 = vpop.f32.mrf.mxu0 }
 0xafd   :  { %v1312_v16 = vadd.f32 %v8125_v14, %v7782_v13 }
 0xafe   :  { %v1306_v17 = vpop.f32.mrf.mxu0 }
 0xaff   :  { %v1307_v18 = vadd.f32 %v7782_v13, %v1306_v17  ;;  %v1316_v19 = vadd.f32 %v1312_v16, %v8651_v35  ;;  %v1567_v16 = vrot.slane %v1562_v5, %v8869_v6  ;;  %v1575_v17 = vrot.slane %v1562_v5, %v8872_v7 }
 0xb01   :  { %v1322_v20 = vsel %vm197_vm3, %v1316_v19, 0.0  ;;  %v1315_v21 = vadd.f32 %v1307_v18, %v8649_v34  ;;  %v1361_v34 = vld [vmem:[#allocation2 + $0x18] sm:$0xff]  ;;  %v1571_v18 = vrot.slane %v1562_v5, %v8879_v10 }
 0xb02   :  { %1323 = vadd.xlane.f32.xlu1 %v1322_v20  ;;  %1498 = vmatprep.subr.mxu0 %v1361_v34  ;;  %v1363_v20 = vld [vmem:[#allocation2 + $0x80] ss:$8 sm:$0xf] }
 0xb03   :  { %v1319_v40 = vsel %vm197_vm3, %v1315_v21, 0.0  ;;  %1499 = vmatpush1.msra.mxu0 %v1360_v32  ;;  %v1376_v30 = vrot.slane %v1363_v20, %v8872_v7 }
 0xb04   :  { %1320 = vadd.xlane.f32.xlu0 %v1319_v40  ;;  %1691 = vmatprep.subr.mxu0 %v1560_v37 }
 0xb8b   :  { %v1324_v22 = vpop.xlane.xlu1 %1323 }
 0xb8c   :  { %v1327_v23 = vmul.f32 0.125, %v1324_v22  ;;  %v1372_v22 = vrot.slane %v1363_v20, %v8879_v10 }
 0xb8d   :  { %v1321_v38 = vpop.xlane.xlu0 %1320 }
 0xb8e   :  { %v1326_v24 = vmul.f32 0.125, %v1321_v38  ;;  %v1329_v25 = vsub.f32 %v1316_v19, %v1327_v23  ;;  %v1579_v19 = vrot.slane %v1562_v5, %v8882_v15  ;;  %v2052_v5 = vld [vmem:[#allocation2 + $0x50] sm:$0xff] }
 0xb90   :  { %v1328_v26 = vsub.f32 %v1315_v21, %v1326_v24  ;;  %v1331_v29 = vmul.f32 %v1329_v25, %v1329_v25 }
 0xb92   :  { %v1330_v27 = vmul.f32 %v1328_v26, %v1328_v26  ;;  %v1335_v35 = vsel %vm197_vm3, %v1331_v29, 0.0 }
 0xb94   :  { %v1332_v28 = vsel %vm197_vm3, %v1330_v27, 0.0 }
 0xb95   :  { %1333 = vadd.xlane.f32.xlu0 %v1332_v28  ;;  %v1368_v28 = vrot.slane %v1363_v20, %v8869_v6 }
 0xb99   :  { %1336 = vadd.xlane.f32.xlu0 %v1335_v35 }
 0xc1e   :  { %v1334_v39 = vpop.xlane.xlu0 %1333 }
 0xc1f   :  { %v1338_v43 = vmul.f32 0.125, %v1334_v39 }
 0xc21   :  { %v1340_v44 = vadd.f32 1e-05, %v1338_v43 }
 0xc22   :  { %v1337_v12 = vpop.xlane.xlu0 %1336 }
 0xc23   :  { %8380 = vrsqrt.f32 %v1340_v44  ;;  %v1339_v11 = vmul.f32 0.125, %v1337_v12 }
 0xc25   :  { %v1341_v45 = vadd.f32 1e-05, %v1339_v11  ;;  %v1553_v11 = vld [vmem:[#allocation2 + $0x100] sm:$0xff] }
 0xc27   :  { %8382 = vrsqrt.f32 %v1341_v45  ;;  %v1555_v45 = vld [vmem:[#allocation2 + $0x110] sm:$0xff] }
 0xc30   :  { %v8381_v47 = vpop.eup %8380 }
 0xc31   :  { %v1344_v41 = vmul.f32 %v8381_v47, %v1328_v26 }
 0xc33   :  { %v1350_v49 = vmul.f32 %v7785_v48, %v1344_v41 }
 0xc34   :  { %v8383_v50 = vpop.eup %8382 }
 0xc35   :  { %v8842_v51 = vadd.f32 %v7786_v42, %v1350_v49  ;;  %v1345_v52 = vmul.f32 %v8383_v50, %v1329_v25  ;;  %v1380_v25 = vrot.slane %v1363_v20, %v8882_v15  ;;  %v2053_v49 = vld [vmem:[#allocation2 + $0x58] sm:$0xff]  ;;  %v2396_v20 = vld [vmem:[#allocation2 + $0x68] sm:$0xff] }
 0xc37   :  { %v1351_v56 = vmul.f32 %v7785_v48, %v1345_v52  ;;  %7787 = vmatmul.mubr.msk.f32.vlgmr.msra.gmra.mxu1 %vm197_vm3, %v8842_v51  ;;  %7789 = vmatmul.mubr.msk.f32.vlgmr.msra.gmra.mxu0 %vm197_vm3, %v8842_v51 }
 0xc38   :  { %1615 = vmatpush1.msra.mxu1 %v1557_v53  ;;  %1692 = vmatpush1.msra.mxu0 %v1559_v55 }
 0xc39   :  { %v8848_v58 = vadd.f32 %v7786_v42, %v1351_v56  ;;  %1461 = vmatprep.mubr.f32.mxu1 %v8566_v33  ;;  %1538 = vmatprep.mubr.f32.mxu0 %v8566_v33  ;;  %v2051_v42 = vld [vmem:[#allocation2 + $0x48] sm:$0xff] }
 0xc3a   :  { %1780 = vmatprep.subr.mxu1 %v1747_v59  ;;  %1855 = vmatprep.subr.mxu0 %v1749_v60 }
 0xc3b   :  { %7788 = vmatmul.mubr.msk.f32.gmra.mxu1 %vm197_vm3, %v8848_v58  ;;  %7790 = vmatmul.mubr.msk.f32.gmra.mxu0 %vm197_vm3, %v8848_v58 }
 0xc3c   :  { %1648 = vmatprep.mubr.f32.mxu1 %v8566_v33  ;;  %1725 = vmatprep.mubr.f32.mxu0 %v8566_v33 }
 0xc3f   :  { %7791 = vmatmul.mubr.msk.f32.vlgmr.msra.gmra.mxu1 %vm197_vm3, %v8842_v51  ;;  %7793 = vmatmul.mubr.msk.f32.vlgmr.msra.gmra.mxu0 %vm197_vm3, %v8842_v51 }
 0xc40   :  { %1654 = vmatprep.mubr.f32.mxu1 %v8566_v33  ;;  %1731 = vmatprep.mubr.f32.mxu0 %v8566_v33 }
 0xc41   :  { %1781 = vmatpush1.xpose.msra.mxu1 %v1746_v61  ;;  %1856 = vmatpush1.xpose.msra.mxu0 %v1748_v62 }
 0xc42   :  { %1930 = vmatprep.subr.mxu1 %v1554_v63  ;;  %2005 = vmatprep.subr.mxu0 %v1556_v0 }
 0xc43   :  { %7792 = vmatmul.mubr.msk.f32.gmra.mxu1 %vm197_vm3, %v8848_v58  ;;  %7794 = vmatmul.mubr.msk.f32.gmra.mxu0 %vm197_vm3, %v8848_v58 }
 0xcf7   :  { %v1457_v1 = vpop.f32.mrf.mxu1  ;;  %v1534_v2 = vpop.f32.mrf.mxu0 }
 0xcf8   :  { %v1458_v53 = vadd.f32 %v1457_v1, %v1368_v28  ;;  %v1535_v55 = vadd.f32 %v1534_v2, %v1376_v30  ;;  %v2050_v2 = vld [vmem:[#allocation2 + $0x40] sm:$0xff] }
 0xcf9   :  { %v1459_v3 = vpop.f32.mrf.mxu1  ;;  %v1536_v4 = vpop.f32.mrf.mxu0 }
 0xcfa   :  { %v1460_v34 = vadd.f32 %v1459_v3, %v1372_v22  ;;  %v1537_v47 = vadd.f32 %v1536_v4, %v1380_v25  ;;  %v1545_v0 = vmax.f32 %v1458_v53, 0.0  ;;  %v1547_v3 = vmax.f32 %v1535_v55, 0.0 }
 0xcfb   :  { %v8874_v8 = vpop.f32.mrf.mxu1  ;;  %v8876_v9 = vpop.f32.mrf.mxu0 }
 0xcfc   :  { %v1546_v60 = vmax.f32 %v1460_v34, 0.0  ;;  %v1548_v61 = vmax.f32 %v1537_v47, 0.0  ;;  %v1464_v4 = vadd.f32 %v8874_v8, %v1368_v28  ;;  %v1541_v1 = vadd.f32 %v8876_v9, %v1376_v30  ;;  %v2240_v8 = vld [vmem:[#allocation2 + $0x148] sm:$0xff]  ;;  %v2242_v9 = vld [vmem:[#allocation2 + $0x158] sm:$0xff] }
 0xcfd   :  { %v1465_v13 = vpop.f32.mrf.mxu1  ;;  %v1542_v14 = vpop.f32.mrf.mxu0 }
 0xcfe   :  { %v1466_v62 = vadd.f32 %v1465_v13, %v1372_v22  ;;  %v1543_v63 = vadd.f32 %v1542_v14, %v1380_v25  ;;  %v1549_v13 = vmax.f32 %v1464_v4, 0.0  ;;  %v1551_v14 = vmax.f32 %v1541_v1, 0.0 }
 0xcff   :  { %v1650_v21 = vpop.f32.mrf.mxu1  ;;  %v1727_v40 = vpop.f32.mrf.mxu0 }
 0xd00   :  { %v1651_v23 = vadd.f32 %v1650_v21, %v1567_v16  ;;  %v1728_v38 = vadd.f32 %v1727_v40, %v1575_v17  ;;  %v2398_v21 = vld [vmem:[#allocation2 + $0x78] sm:$0xff] }
 0xd01   :  { %v1652_v24 = vpop.f32.mrf.mxu1  ;;  %v1729_v46 = vpop.f32.mrf.mxu0 }
 0xd02   :  { %v1653_v26 = vadd.f32 %v1652_v24, %v1571_v18  ;;  %v1730_v27 = vadd.f32 %v1729_v46, %v1579_v19  ;;  %v1738_v36 = vmax.f32 %v1651_v23, 0.0  ;;  %v1740_v37 = vmax.f32 %v1728_v38, 0.0 }
 0xd03   :  { %v1656_v29 = vpop.f32.mrf.mxu1  ;;  %v1733_v35 = vpop.f32.mrf.mxu0 }
 0xd04   :  { %v1739_v31 = vmax.f32 %v1653_v26, 0.0  ;;  %v1741_v32 = vmax.f32 %v1730_v27, 0.0  ;;  %v1657_v39 = vadd.f32 %v1656_v29, %v1567_v16  ;;  %v1734_v43 = vadd.f32 %v1733_v35, %v1575_v17 }
 0xd05   :  { %v1658_v44 = vpop.f32.mrf.mxu1  ;;  %v1735_v12 = vpop.f32.mrf.mxu0  ;;  %v1550_v16 = vmax.f32 %v1466_v62, 0.0  ;;  %v1552_v17 = vmax.f32 %v1543_v63, 0.0 }
 0xd06   :  { %v1659_v48 = vadd.f32 %v1658_v44, %v1571_v18  ;;  %v1736_v41 = vadd.f32 %v1735_v12, %v1579_v19  ;;  %1814 = vmatprep.mubr.f32.mxu1 %v1739_v31  ;;  %1889 = vmatprep.mubr.f32.mxu0 %v1741_v32  ;;  %v1742_v56 = vmax.f32 %v1657_v39, 0.0  ;;  %v1744_v59 = vmax.f32 %v1734_v43, 0.0  ;;  %v2239_v18 = vld [vmem:[#allocation2 + $0x140] sm:$0xff]  ;;  %v2241_v19 = vld [vmem:[#allocation2 + $0x150] sm:$0xff] }
 0xd07   :  { %1815 = vmatmul.mubr.f32.vlgmr.msra.gmra.mxu1 %v1738_v36  ;;  %1890 = vmatmul.mubr.f32.vlgmr.msra.gmra.mxu0 %v1740_v37  ;;  %v2055_v36 = vld [vmem:[#allocation2 + $0xc0] ss:$8 sm:$0xf] }
 0xd08   :  { %v1743_v50 = vmax.f32 %v1659_v48, 0.0  ;;  %v1745_v52 = vmax.f32 %v1736_v41, 0.0  ;;  %1931 = vmatpush1.xpose.msra.mxu1 %v1553_v11  ;;  %2006 = vmatpush1.xpose.msra.mxu0 %v1555_v45  ;;  %v2060_v11 = vrot.slane %v2055_v36, %v8869_v6  ;;  %v2068_v45 = vrot.slane %v2055_v36, %v8872_v7 }
 0xd09   :  { %2107 = vmatprep.subr.mxu1 %v2051_v42  ;;  %2184 = vmatprep.subr.mxu0 %v2053_v49  ;;  %v2064_v48 = vrot.slane %v2055_v36, %v8879_v10  ;;  %v2072_v41 = vrot.slane %v2055_v36, %v8882_v15 }
 0xd0a   :  { %1819 = vmatprep.mubr.f32.mxu1 %v1743_v50  ;;  %1894 = vmatprep.mubr.f32.mxu0 %v1745_v52 }
 0xd0b   :  { %1820 = vmatmul.mubr.f32.gmra.mxu1 %v1742_v56  ;;  %1895 = vmatmul.mubr.f32.gmra.mxu0 %v1744_v59 }
 0xd0c   :  { %1964 = vmatprep.mubr.f32.mxu1 %v1546_v60  ;;  %2039 = vmatprep.mubr.f32.mxu0 %v1548_v61 }
 0xd0f   :  { %1965 = vmatmul.mubr.f32.vlgmr.msra.gmra.mxu1 %v1545_v0  ;;  %2040 = vmatmul.mubr.f32.vlgmr.msra.gmra.mxu0 %v1547_v3 }
 0xd10   :  { %2108 = vmatpush1.msra.mxu1 %v2050_v2  ;;  %2185 = vmatpush1.msra.mxu0 %v2052_v5 }
 0xd11   :  { %1969 = vmatprep.mubr.f32.mxu1 %v1550_v16  ;;  %2044 = vmatprep.mubr.f32.mxu0 %v1552_v17  ;;  %v2395_v16 = vld [vmem:[#allocation2 + $0x60] sm:$0xff]  ;;  %v2397_v17 = vld [vmem:[#allocation2 + $0x70] sm:$0xff] }
 0xd12   :  { %2273 = vmatprep.subr.mxu1 %v2240_v8  ;;  %2348 = vmatprep.subr.mxu0 %v2242_v9 }
 0xd13   :  { %1970 = vmatmul.mubr.f32.gmra.mxu1 %v1549_v13  ;;  %2045 = vmatmul.mubr.f32.gmra.mxu0 %v1551_v14 }
 0xd14   :  { %2141 = vmatprep.mubr.f32.mxu1 %v8566_v33  ;;  %2218 = vmatprep.mubr.f32.mxu0 %v8566_v33 }
 0xd17   :  { %7795 = vmatmul.mubr.msk.f32.vlgmr.msra.gmra.mxu1 %vm197_vm3, %v8842_v51  ;;  %7797 = vmatmul.mubr.msk.f32.vlgmr.msra.gmra.mxu0 %vm197_vm3, %v8842_v51 }
 0xd18   :  { %2147 = vmatprep.mubr.f32.mxu1 %v8566_v33  ;;  %2224 = vmatprep.mubr.f32.mxu0 %v8566_v33 }
 0xd19   :  { %2274 = vmatpush1.xpose.msra.mxu1 %v2239_v18  ;;  %2349 = vmatpush1.xpose.msra.mxu0 %v2241_v19 }
 0xd1a   :  { %2452 = vmatprep.subr.mxu1 %v2396_v20  ;;  %2529 = vmatprep.subr.mxu0 %v2398_v21  ;;  %v2585_v20 = vld [vmem:[#allocation2 + $0x168] sm:$0xff]  ;;  %v2587_v21 = vld [vmem:[#allocation2 + $0x178] sm:$0xff] }
 0xd1b   :  { %7796 = vmatmul.mubr.msk.f32.gmra.mxu1 %vm197_vm3, %v8848_v58  ;;  %7798 = vmatmul.mubr.msk.f32.gmra.mxu0 %vm197_vm3, %v8848_v58 }
 0xdc7   :  { %v1816_v40 = vpop.f32.mrf.mxu1  ;;  %v1891_v22 = vpop.f32.mrf.mxu0 }
 0xdc8   :  { %v1892_v23 = vadd.f32 %v1891_v22, %v1816_v40  ;;  %v2584_v40 = vld [vmem:[#allocation2 + $0x160] sm:$0xff]  ;;  %v2586_v22 = vld [vmem:[#allocation2 + $0x170] sm:$0xff] }
 0xdc9   :  { %v1818_v38 = vpop.f32.mrf.mxu1  ;;  %v1893_v24 = vpop.f32.mrf.mxu0 }
 0xdcb   :  { %v1821_v46 = vpop.f32.mrf.mxu1  ;;  %v1896_v25 = vpop.f32.mrf.mxu0 }
 0xdcc   :  { %v1897_v26 = vadd.f32 %v1896_v25, %v1821_v46 }
 0xdcd   :  { %v1823_v27 = vpop.f32.mrf.mxu1  ;;  %v1898_v28 = vpop.f32.mrf.mxu0 }
 0xdce   :  { %v2400_v27 = vld [vmem:[#allocation2 + $0xe0] ss:$8 sm:$0xf] }
 0xdcf   :  { %v1966_v29 = vpop.f32.mrf.mxu1  ;;  %v2041_v35 = vpop.f32.mrf.mxu0  ;;  %v2413_v36 = vrot.slane %v2400_v27, %v8872_v7 }
 0xdd0   :  { %v1967_v30 = vadd.f32 %v1966_v29, %v1892_v23 }
 0xdd1   :  { %v1968_v34 = vpop.f32.mrf.mxu1  ;;  %v2043_v31 = vpop.f32.mrf.mxu0 }
 0xdd2   :  { %v8906_v32 = vadd.f32 %v2041_v35, %v1967_v30  ;;  %v2405_v31 = vrot.slane %v2400_v27, %v8869_v6 }
 0xdd3   :  { %v1971_v37 = vpop.f32.mrf.mxu1  ;;  %v2046_v39 = vpop.f32.mrf.mxu0 }
 0xdd4   :  { %v1972_v43 = vadd.f32 %v1971_v37, %v1897_v26 }
 0xdd5   :  { %v1973_v44 = vpop.f32.mrf.mxu1  ;;  %v2048_v12 = vpop.f32.mrf.mxu0 }
 0xdd6   :  { %v8910_v47 = vadd.f32 %v2046_v39, %v1972_v43  ;;  %v2409_v39 = vrot.slane %v2400_v27, %v8879_v10  ;;  %v2417_v43 = vrot.slane %v2400_v27, %v8882_v15 }
 0xdd7   :  { %v2143_v42 = vpop.f32.mrf.mxu1  ;;  %v2220_v49 = vpop.f32.mrf.mxu0 }
 0xdd8   :  { %v2144_v50 = vadd.f32 %v2143_v42, %v2060_v11  ;;  %v2221_v52 = vadd.f32 %v2220_v49, %v2068_v45 }
 0xdd9   :  { %v2145_v53 = vpop.f32.mrf.mxu1  ;;  %v2222_v55 = vpop.f32.mrf.mxu0 }
 0xdda   :  { %v2146_v56 = vadd.f32 %v2145_v53, %v2064_v48  ;;  %v2223_v59 = vadd.f32 %v2222_v55, %v2072_v41  ;;  %v2231_v0 = vmax.f32 %v2144_v50, 0.0  ;;  %v2233_v3 = vmax.f32 %v2221_v52, 0.0 }
 0xddb   :  { %v2149_v60 = vpop.f32.mrf.mxu1  ;;  %v2226_v61 = vpop.f32.mrf.mxu0 }
 0xddc   :  { %v2232_v62 = vmax.f32 %v2146_v56, 0.0  ;;  %v2234_v63 = vmax.f32 %v2223_v59, 0.0  ;;  %v2150_v4 = vadd.f32 %v2149_v60, %v2060_v11  ;;  %v2227_v1 = vadd.f32 %v2226_v61, %v2068_v45 }
 0xddd   :  { %v2151_v2 = vpop.f32.mrf.mxu1  ;;  %v2228_v5 = vpop.f32.mrf.mxu0 }
 0xdde   :  { %v2152_v13 = vadd.f32 %v2151_v2, %v2064_v48  ;;  %v2229_v14 = vadd.f32 %v2228_v5, %v2072_v41  ;;  %2307 = vmatprep.mubr.f32.mxu1 %v2232_v62  ;;  %2382 = vmatprep.mubr.f32.mxu0 %v2234_v63  ;;  %v2235_v18 = vmax.f32 %v2150_v4, 0.0  ;;  %v2237_v19 = vmax.f32 %v2227_v1, 0.0 }
 0xddf   :  { %2308 = vmatmul.mubr.f32.vlgmr.msra.gmra.mxu1 %v2231_v0  ;;  %2383 = vmatmul.mubr.f32.vlgmr.msra.gmra.mxu0 %v2233_v3 }
 0xde0   :  { %v2236_v8 = vmax.f32 %v2152_v13, 0.0  ;;  %v2238_v9 = vmax.f32 %v2229_v14, 0.0  ;;  %2453 = vmatpush1.msra.mxu1 %v2395_v16  ;;  %2530 = vmatpush1.msra.mxu0 %v2397_v17  ;;  %v7803_v14 = vld [vmem:[%s9589_s3 + $0x2c] ss:$0 sm:$0xff] }
 0xde1   :  { %2618 = vmatprep.subr.mxu1 %v2585_v20  ;;  %2693 = vmatprep.subr.mxu0 %v2587_v21 }
 0xde2   :  { %2312 = vmatprep.mubr.f32.mxu1 %v2236_v8  ;;  %2387 = vmatprep.mubr.f32.mxu0 %v2238_v9 }
 0xde3   :  { %2313 = vmatmul.mubr.f32.gmra.mxu1 %v2235_v18  ;;  %2388 = vmatmul.mubr.f32.gmra.mxu0 %v2237_v19 }
 0xde4   :  { %2486 = vmatprep.mubr.f32.mxu1 %v8566_v33  ;;  %2563 = vmatprep.mubr.f32.mxu0 %v8566_v33 }
 0xde7   :  { %7799 = vmatmul.mubr.msk.f32.vlgmr.msra.gmra.mxu1 %vm197_vm3, %v8842_v51  ;;  %7801 = vmatmul.mubr.msk.f32.vlgmr.msra.gmra.mxu0 %vm197_vm3, %v8842_v51 }
 0xde8   :  { %2492 = vmatprep.mubr.f32.mxu1 %v8566_v33  ;;  %2569 = vmatprep.mubr.f32.mxu0 %v8566_v33 }
 0xde9   :  { %2619 = vmatpush1.xpose.msra.mxu1 %v2584_v40  ;;  %2694 = vmatpush1.xpose.msra.mxu0 %v2586_v22 }
 0xdeb   :  { %7800 = vmatmul.mubr.msk.f32.gmra.mxu1 %vm197_vm3, %v8848_v58  ;;  %7802 = vmatmul.mubr.msk.f32.gmra.mxu0 %vm197_vm3, %v8848_v58 }
 0xe9f   :  { %v2309_v23 = vpop.f32.mrf.mxu1  ;;  %v2384_v38 = vpop.f32.mrf.mxu0 }
 0xea0   :  { %v2385_v24 = vadd.f32 %v2384_v38, %v2309_v23 }
 0xea1   :  { %v2311_v46 = vpop.f32.mrf.mxu1  ;;  %v2386_v25 = vpop.f32.mrf.mxu0 }
 0xea2   :  { %v2393_v26 = vadd.f32 %v2385_v24, %v8906_v32 }
 0xea3   :  { %v2314_v28 = vpop.f32.mrf.mxu1  ;;  %v2389_v29 = vpop.f32.mrf.mxu0 }
 0xea4   :  { %v2390_v35 = vadd.f32 %v2389_v29, %v2314_v28 }
 0xea5   :  { %v2316_v30 = vpop.f32.mrf.mxu1  ;;  %v2391_v34 = vpop.f32.mrf.mxu0 }
 0xea6   :  { %v2394_v37 = vadd.f32 %v2390_v35, %v8910_v47 }
 0xea7   :  { %v2488_v44 = vpop.f32.mrf.mxu1  ;;  %v2565_v12 = vpop.f32.mrf.mxu0 }
 0xea8   :  { %v2489_v11 = vadd.f32 %v2488_v44, %v2405_v31  ;;  %v2566_v32 = vadd.f32 %v2565_v12, %v2413_v36 }
 0xea9   :  { %v2490_v45 = vpop.f32.mrf.mxu1  ;;  %v2567_v48 = vpop.f32.mrf.mxu0 }
 0xeaa   :  { %v2491_v41 = vadd.f32 %v2490_v45, %v2409_v39  ;;  %v2568_v42 = vadd.f32 %v2567_v48, %v2417_v43  ;;  %v2576_v55 = vmax.f32 %v2489_v11, 0.0  ;;  %v2578_v56 = vmax.f32 %v2566_v32, 0.0  ;;  %v2821_v11 = vld [vmem:[%s9589_s3 + $0x3d] sm:$0xff]  ;;  %v2820_v32 = vld [vmem:[%s9589_s3 + $0x35] sm:$0xff]  ;;  %v7804_v48 = vld [vmem:[%s9589_s3 + $0x2a] ss:$0 sm:$0xff] }
 0xeab   :  { %v2494_v49 = vpop.f32.mrf.mxu1  ;;  %v2571_v50 = vpop.f32.mrf.mxu0  ;;  %8126 = vmatprep.subr.mxu1 %v2821_v11 }
 0xeac   :  { %v2577_v52 = vmax.f32 %v2491_v41, 0.0  ;;  %v2579_v53 = vmax.f32 %v2568_v42, 0.0  ;;  %v2495_v59 = vadd.f32 %v2494_v49, %v2405_v31  ;;  %v2572_v47 = vadd.f32 %v2571_v50, %v2413_v36  ;;  %v7805_v42 = vld [vmem:[%s9589_s3 + $0x2b] ss:$0 sm:$0xff]  ;;  %v2819_v49 = vld [vmem:[%s9589_s3 + $0x2d] sm:$0xff] }
 0xead   :  { %v2496_v60 = vpop.f32.mrf.mxu1  ;;  %v2573_v61 = vpop.f32.mrf.mxu0 }
 0xeae   :  { %v2497_v62 = vadd.f32 %v2496_v60, %v2409_v39  ;;  %v2574_v63 = vadd.f32 %v2573_v61, %v2417_v43  ;;  %2652 = vmatprep.mubr.f32.mxu1 %v2577_v52  ;;  %2727 = vmatprep.mubr.f32.mxu0 %v2579_v53  ;;  %v2580_v4 = vmax.f32 %v2495_v59, 0.0  ;;  %v2582_v1 = vmax.f32 %v2572_v47, 0.0 }
 0xeaf   :  { %2653 = vmatmul.mubr.f32.vlgmr.msra.gmra.mxu1 %v2576_v55  ;;  %2728 = vmatmul.mubr.f32.vlgmr.msra.gmra.mxu0 %v2578_v56  ;;  %v2910_v56 = vld [vmem:[%s9588_s2 + $0x1b] sm:$0xff] }
 0xeb0   :  { %v2581_v0 = vmax.f32 %v2497_v62, 0.0  ;;  %v2583_v3 = vmax.f32 %v2574_v63, 0.0  ;;  %8127 = vmatpush3.msra.mxu1 %v2821_v11  ;;  %8135 = vmatprep.subr.mxu0 %v2910_v56 }
 0xeb1   :  { %8128 = vmatprep.subr.mxu1 %v2820_v32  ;;  %8136 = vmatpush3.msra.mxu0 %v2910_v56 }
 0xeb2   :  { %2657 = vmatprep.mubr.f32.mxu1 %v2581_v0  ;;  %2732 = vmatprep.mubr.f32.mxu0 %v2583_v3 }
 0xeb3   :  { %2658 = vmatmul.mubr.f32.gmra.mxu1 %v2580_v4  ;;  %2733 = vmatmul.mubr.f32.gmra.mxu0 %v2582_v1 }
 0xeb4   :  { %8129 = vmatpush3.msra.mxu1 %v2820_v32 }
 0xeb5   :  { %8130 = vmatprep.subr.mxu1 %v2819_v49 }
 0xeb6   :  { %8131 = vmatpush3.msra.mxu1 %v2819_v49 }
 0xf6f   :  { %v2654_v2 = vpop.f32.mrf.mxu1  ;;  %v2729_v5 = vpop.f32.mrf.mxu0 }
 0xf70   :  { %v2730_v16 = vadd.f32 %v2729_v5, %v2654_v2 }
 0xf71   :  { %v2656_v17 = vpop.f32.mrf.mxu1  ;;  %v2731_v13 = vpop.f32.mrf.mxu0 }
 0xf72   :  { %v2738_v8 = vadd.f32 %v2730_v16, %v2393_v26 }
 0xf73   :  { %v2659_v9 = vpop.f32.mrf.mxu1  ;;  %v2734_v18 = vpop.f32.mrf.mxu0 }
 0xf74   :  { %v2735_v19 = vadd.f32 %v2734_v18, %v2659_v9  ;;  %v2745_v20 = vadd.f32 %v7803_v14, %v2738_v8  ;;  %v7806_v18 = vld [vmem:[%s9589_s3 + $0x45] ss:$0 sm:$0xff] }
 0xf75   :  { %v2661_v21 = vpop.f32.mrf.mxu1  ;;  %v2736_v40 = vpop.f32.mrf.mxu0 }
 0xf76   :  { %v2739_v22 = vadd.f32 %v2735_v19, %v2394_v37  ;;  %v2747_v23 = vadd.f32 %v2745_v20, %v8842_v51 }
 0xf78   :  { %v2751_v38 = vsel %vm197_vm3, %v2747_v23, 0.0  ;;  %v2746_v24 = vadd.f32 %v7803_v14, %v2739_v22 }
 0xf79   :  { %2752 = vadd.xlane.f32.xlu1 %v2751_v38  ;;  %v7809_v38 = vld [vmem:[%s9588_s2 + $0x23] ss:$0 sm:$0xff] }
 0xf7a   :  { %v2748_v46 = vadd.f32 %v2746_v24, %v8848_v58 }
 0xf7c   :  { %v2754_v25 = vsel %vm197_vm3, %v2748_v46, 0.0 }
 0xf7d   :  { %2755 = vadd.xlane.f32.xlu0 %v2754_v25 }
0x1002   :  { %v2753_v27 = vpop.xlane.xlu1 %2752 }
0x1003   :  { %v2757_v26 = vmul.f32 0.125, %v2753_v27 }
0x1005   :  { %v2759_v28 = vsub.f32 %v2747_v23, %v2757_v26 }
0x1006   :  { %v2756_v29 = vpop.xlane.xlu0 %2755 }
0x1007   :  { %v2758_v35 = vmul.f32 0.125, %v2756_v29  ;;  %v2761_v30 = vmul.f32 %v2759_v28, %v2759_v28 }
0x1009   :  { %v2760_v34 = vsub.f32 %v2748_v46, %v2758_v35  ;;  %v2763_v31 = vsel %vm197_vm3, %v2761_v30, 0.0 }
0x100a   :  { %2764 = vadd.xlane.f32.xlu1 %v2763_v31 }
0x100b   :  { %v2762_v51 = vmul.f32 %v2760_v34, %v2760_v34 }
0x100d   :  { %v2766_v36 = vsel %vm197_vm3, %v2762_v51, 0.0 }
0x100e   :  { %2767 = vadd.xlane.f32.xlu0 %v2766_v36 }
0x1093   :  { %v2765_v37 = vpop.xlane.xlu1 %2764 }
0x1094   :  { %v2769_v39 = vmul.f32 0.125, %v2765_v37 }
0x1096   :  { %v2771_v58 = vadd.f32 1e-05, %v2769_v39 }
0x1097   :  { %v2768_v43 = vpop.xlane.xlu0 %2767 }
0x1098   :  { %8384 = vrsqrt.f32 %v2771_v58  ;;  %v2770_v44 = vmul.f32 0.125, %v2768_v43 }
0x109a   :  { %v2772_v12 = vadd.f32 1e-05, %v2770_v44 }
0x109c   :  { %8386 = vrsqrt.f32 %v2772_v12 }
0x10a5   :  { %v8385_v45 = vpop.eup %8384 }
0x10a6   :  { %v2775_v41 = vmul.f32 %v8385_v45, %v2759_v28 }
0x10a8   :  { %v2781_v50 = vmul.f32 %v7804_v48, %v2775_v41 }
0x10a9   :  { %v8387_v52 = vpop.eup %8386 }
0x10aa   :  { %v2787_v53 = vadd.f32 %v7805_v42, %v2781_v50  ;;  %v2776_v55 = vmul.f32 %v8387_v52, %v2760_v34 }
0x10ac   :  { %2802 = vrot.lane.b32.xlu1 %v2787_v53, %s8549_s14  ;;  %v2782_v59 = vmul.f32 %v7804_v48, %v2776_v55  ;;  %v2797_v60 = vrot.slane %v2787_v53, 2  ;;  %v2791_v0 = vrot.slane %v2787_v53, 6 }
0x10ae   :  { %v2788_v47 = vadd.f32 %v7805_v42, %v2782_v59  ;;  %v2796_v4 = vsel %vm172_vm2, 0.0, %v2791_v0 }
0x10b0   :  { %2804 = vrot.lane.b32.xlu0 %v2788_v47, %s8549_s14  ;;  %v2798_v61 = vrot.slane %v2788_v47, 2  ;;  %v2792_v1 = vrot.slane %v2788_v47, 6 }
0x10b2   :  { %v2799_v62 = vsel %vm46_vm0, %v2797_v60, %v2798_v61  ;;  %v2801_v63 = vsel %vm46_vm0, %v2798_v61, 0.0  ;;  %v2793_v13 = vsel %vm172_vm2, %v2791_v0, %v2792_v1 }
0x10b3   :  { %2809 = vrot.lane.b32.xlu1 %v2799_v62, %s8550_s15 }
0x10b7   :  { %2811 = vrot.lane.b32.xlu1 %v2801_v63, %s8550_s15 }
0x111e   :  { %v2803_v3 = vpop.permute.xlu1 %2802 }
0x111f   :  { %v2815_v2 = vsel %vm197_vm3, %v2796_v4, %v2803_v3 }
0x1122   :  { %v2805_v16 = vpop.permute.xlu0 %2804 }
0x1123   :  { %v2816_v14 = vsel %vm197_vm3, %v2793_v13, %v2805_v16 }
0x1125   :  { %v2810_v5 = vpop.permute.xlu1 %2809 }
0x1126   :  { %v2817_v17 = vsel %vm200_vm4, %v2815_v2, %v2810_v5 }
0x1127   :  { %8132 = vmatprep.mubr.msk.f32.mxu1 %vm211_vm5, %v2817_v17 }
0x1129   :  { %v2812_v8 = vpop.permute.xlu1 %2811 }
0x112a   :  { %v2818_v9 = vsel %vm200_vm4, %v2816_v14, %v2812_v8 }
0x112b   :  { %8133 = vmatmul.mubr.msk.f32.vlgmr.msra.gmra.mxu1 %vm211_vm5, %v2818_v9 }
0x11eb   :  { %v8134_v19 = vpop.f32.mrf.mxu1 }
0x11ec   :  { %v8976_v20 = vadd.f32 %v8134_v19, %v7806_v18 }
0x11ed   :  { %v2899_v21 = vpop.f32.mrf.mxu1 }
0x11ee   :  { %v8978_v40 = vadd.f32 %v7806_v18, %v2899_v21  ;;  %v8984_v23 = vadd.f32 %v8976_v20, %v2788_v47 }
0x11f0   :  { %v8981_v22 = vadd.f32 %v8978_v40, %v2787_v53 }
0x11f2   :  { %8137 = vmatprep.mubr.msk.f32.mxu0 %vm197_vm3, %v8981_v22 }
0x11f3   :  { %8138 = vmatmul.mubr.msk.f32.vlgmr.msra.gmra.mxu0 %vm197_vm3, %v8984_v23 }
0x12b3   :  { %v8139_v24 = vpop.f32.mrf.mxu0 }
0x12b4   :  { %v8993_v46 = vadd.f32 %v8139_v24, %v7809_v38 }
0x12b5   :  { %v2988_v25 = vpop.f32.mrf.mxu0 }
0x12b6   :  { %v8995_v27 = vadd.f32 %v7809_v38, %v2988_v25  ;;  %3001 = vrot.lane.b32.xlu0 %v8993_v46, %s8551_s21 }
0x12b8   :  { %2999 = vrot.lane.b32.xlu1 %v8995_v27, %s8551_s21  ;;  %8144 = vmatprep.mubr.msk.f32.mxu1 %vm388_vm6, %v8995_v27 }
0x12ba   :  { %3110 = vrot.lane.b32.xlu0 %v8993_v46, %s8552_s22 }
0x12bc   :  { %3108 = vrot.lane.b32.xlu1 %v8995_v27, %s8552_s22 }
0x1328   :  { %v3002_v26 = vpop.permute.xlu0 %3001 }
0x1329   :  { %8140 = vmatprep.subr.msk.mxu1 %vm388_vm6, %v3002_v26 }
0x132a   :  { %8141 = vmatpush3.xpose.msk.msra.mxu1 %vm388_vm6, %v3002_v26  ;;  %v3000_v28 = vpop.permute.xlu1 %2999 }
0x132b   :  { %8142 = vmatprep.subr.msk.mxu1 %vm388_vm6, %v3000_v28 }
0x132c   :  { %v3111_v29 = vpop.permute.xlu0 %3110 }
0x132d   :  { %8147 = vmatprep.subr.mxu0 %v3111_v29 }
0x132e   :  { %8143 = vmatpush3.xpose.msk.msra.mxu1 %vm388_vm6, %v3000_v28  ;;  %8148 = vmatpush3.msra.mxu0 %v3111_v29  ;;  %v3109_v35 = vpop.permute.xlu1 %3108 }
0x132f   :  { %8149 = vmatprep.subr.mxu0 %v3109_v35 }
0x1330   :  { %8150 = vmatpush3.msra.mxu0 %v3109_v35 }
0x1331   :  { %8145 = vmatmul.mubr.msk.f32.vlgmr.msra.gmra.mxu1 %vm388_vm6, %v8993_v46 }
0x13f1   :  { %v8146_v30 = vpop.f32.mrf.mxu1 }
0x13f2   :  { %v3087_v34 = vmul.f32 0.70710677, %v8146_v30 }
0x13f3   :  { %v3077_v31 = vpop.f32.mrf.mxu1 }
0x13f4   :  { %v3086_v51 = vmul.f32 0.70710677, %v3077_v31  ;;  %v3089_v36 = vadd.f32 %v3087_v34, %v8684_v54 }
0x13f6   :  { %v3093_v37 = vsel %vm200_vm4, %v3089_v36, -inf  ;;  %v3088_v39 = vadd.f32 %v3086_v51, %v8686_v57 }
0x13f7   :  { %3094 = vmax.xlane.f32.xlu1 %v3093_v37 }
0x13f8   :  { %v3090_v58 = vsel %vm200_vm4, %v3088_v39, -inf }
0x13f9   :  { %3091 = vmax.xlane.f32.xlu0 %v3090_v58 }
0x1408   :  { %3203 = vrot.lane.b32.xlu1 %v8995_v27, %s8554_s23 }
0x140c   :  { %3201 = vrot.lane.b32.xlu1 %v8993_v46, %s8555_s24 }
0x140f   :  { %3205 = vrot.lane.b32.xlu0 %v8993_v46, %s8554_s23 }
0x1410   :  { %3312 = vrot.lane.b32.xlu1 %v8995_v27, %s8556_s25 }
0x1413   :  { %3199 = vrot.lane.b32.xlu0 %v8995_v27, %s8555_s24 }
0x1417   :  { %3314 = vrot.lane.b32.xlu0 %v8993_v46, %s8556_s25 }
0x1480   :  { %v3095_v43 = vpop.xlane.xlu1 %3094 }
0x1481   :  { %v3097_v44 = vsub.f32 %v3089_v36, %v3095_v43 }
0x1482   :  { %v3092_v12 = vpop.xlane.xlu0 %3091 }
0x1483   :  { %v3096_v11 = vsub.f32 %v3088_v39, %v3092_v12  ;;  %v3100_v32 = vmul.f32 1.442695, %v3097_v44 }
0x1484   :  { %v3204_v45 = vpop.permute.xlu1 %3203 }
0x1485   :  { %v3098_v48 = vmul.f32 1.442695, %v3096_v11 }
0x1486   :  { %v3206_v41 = vpop.permute.xlu0 %3205 }
0x1487   :  { %8388 = vpow2.f32 %v3098_v48  ;;  %8154 = vmatprep.subr.msk.mxu0 %vm388_vm6, %v3206_v41 }
0x1488   :  { %8390 = vpow2.f32 %v3100_v32  ;;  %v3202_v42 = vpop.permute.xlu1 %3201 }
0x148a   :  { %v3200_v49 = vpop.permute.xlu0 %3199 }
0x148c   :  { %v3313_v52 = vpop.permute.xlu1 %3312 }
0x148e   :  { %v3315_v50 = vpop.permute.xlu0 %3314 }
0x148f   :  { %8161 = vmatprep.subr.mxu1 %v3315_v50 }
0x1490   :  { %8162 = vmatpush3.msra.mxu1 %v3315_v50 }
0x1491   :  { %8163 = vmatprep.subr.mxu1 %v3313_v52 }
0x1492   :  { %8164 = vmatpush3.msra.mxu1 %v3313_v52 }
0x1494   :  { %v9030_v53 = vpop.eup %8388 }
0x1495   :  { %v9032_v55 = vpop.eup %8390  ;;  %8151 = vmatprep.mubr.msk.f32.mxu0 %vm200_vm4, %v9030_v53 }
0x1496   :  { %8152 = vmatmul.mubr.msk.f32.vlgmr.msra.gmra.mxu0 %vm200_vm4, %v9032_v55 }
0x1497   :  { %8155 = vmatpush3.xpose.msk.msra.mxu0 %vm388_vm6, %v3206_v41  ;;  %8158 = vmatprep.mubr.msk.f32.mxu0 %vm388_vm6, %v3200_v49 }
0x1498   :  { %8156 = vmatprep.subr.msk.mxu0 %vm388_vm6, %v3204_v45 }
0x149b   :  { %8157 = vmatpush3.xpose.msk.msra.mxu0 %vm388_vm6, %v3204_v45 }
0x149e   :  { %8159 = vmatmul.mubr.msk.f32.vlgmr.msra.gmra.mxu0 %vm388_vm6, %v3202_v42 }
0x1556   :  { %v9043_v56 = vpop.f32.mrf.mxu0 }
0x1558   :  { %v9045_v59 = vpop.f32.mrf.mxu0 }
0x155e   :  { %v8160_v47 = vpop.f32.mrf.mxu0 }
0x155f   :  { %v3291_v60 = vmul.f32 0.70710677, %v8160_v47 }
0x1560   :  { %v3281_v61 = vpop.f32.mrf.mxu0 }
0x1561   :  { %v3290_v62 = vmul.f32 0.70710677, %v3281_v61  ;;  %v3293_v63 = vadd.f32 %v3291_v60, %v8684_v54 }
0x1563   :  { %v3297_v0 = vsel %vm200_vm4, %v3293_v63, -inf  ;;  %v3292_v3 = vadd.f32 %v3290_v62, %v8686_v57 }
0x1564   :  { %3298 = vmax.xlane.f32.xlu1 %v3297_v0 }
0x1565   :  { %v3294_v4 = vsel %vm200_vm4, %v3292_v3, -inf }
0x1566   :  { %3295 = vmax.xlane.f32.xlu0 %v3294_v4 }
0x1575   :  { %3407 = vrot.lane.b32.xlu1 %v8995_v27, %s8557_s26 }
0x1579   :  { %3405 = vrot.lane.b32.xlu1 %v8993_v46, %s8558_s27 }
0x157c   :  { %3409 = vrot.lane.b32.xlu0 %v8993_v46, %s8557_s26 }
0x157d   :  { %3516 = vrot.lane.b32.xlu1 %v8995_v27, %s8559_s28 }
0x1580   :  { %3403 = vrot.lane.b32.xlu0 %v8995_v27, %s8558_s27 }
0x1584   :  { %3518 = vrot.lane.b32.xlu0 %v8993_v46, %s8559_s28 }
0x15ed   :  { %v3299_v1 = vpop.xlane.xlu1 %3298 }
0x15ee   :  { %v3301_v2 = vsub.f32 %v3293_v63, %v3299_v1 }
0x15ef   :  { %v3296_v5 = vpop.xlane.xlu0 %3295 }
0x15f0   :  { %v3300_v16 = vsub.f32 %v3292_v3, %v3296_v5  ;;  %v3304_v17 = vmul.f32 1.442695, %v3301_v2 }
0x15f1   :  { %v3408_v13 = vpop.permute.xlu1 %3407 }
0x15f2   :  { %v3302_v14 = vmul.f32 1.442695, %v3300_v16 }
0x15f3   :  { %v3410_v8 = vpop.permute.xlu0 %3409 }
0x15f4   :  { %8392 = vpow2.f32 %v3302_v14  ;;  %8168 = vmatprep.subr.msk.mxu1 %vm388_vm6, %v3410_v8 }
0x15f5   :  { %8394 = vpow2.f32 %v3304_v17  ;;  %v3406_v9 = vpop.permute.xlu1 %3405 }
0x15f7   :  { %v3404_v18 = vpop.permute.xlu0 %3403 }
0x15f9   :  { %v3517_v21 = vpop.permute.xlu1 %3516 }
0x15fb   :  { %v3519_v19 = vpop.permute.xlu0 %3518 }
0x15fc   :  { %8175 = vmatprep.subr.mxu0 %v3519_v19 }
0x15fd   :  { %8176 = vmatpush3.msra.mxu0 %v3519_v19 }
0x15fe   :  { %8177 = vmatprep.subr.mxu0 %v3517_v21 }
0x15ff   :  { %8178 = vmatpush3.msra.mxu0 %v3517_v21  ;;  %v3105_v21 = vsel %vm200_vm4, %v9032_v55, 0.0 }
0x1601   :  { %v9064_v38 = vpop.eup %8392 }
0x1602   :  { %v8395_v24 = vpop.eup %8394  ;;  %8165 = vmatprep.mubr.msk.f32.mxu1 %vm200_vm4, %v9064_v38 }
0x1603   :  { %8166 = vmatmul.mubr.msk.f32.vlgmr.msra.gmra.mxu1 %vm200_vm4, %v8395_v24  ;;  %v3309_v4 = vsel %vm200_vm4, %v8395_v24, 0.0 }
0x1604   :  { %8169 = vmatpush3.xpose.msk.msra.mxu1 %vm388_vm6, %v3410_v8  ;;  %8172 = vmatprep.mubr.msk.f32.mxu1 %vm388_vm6, %v3404_v18 }
0x1605   :  { %8170 = vmatprep.subr.msk.mxu1 %vm388_vm6, %v3408_v13 }
0x1608   :  { %8171 = vmatpush3.xpose.msk.msra.mxu1 %vm388_vm6, %v3408_v13 }
0x160b   :  { %8173 = vmatmul.mubr.msk.f32.vlgmr.msra.gmra.mxu1 %vm388_vm6, %v3406_v9 }
0x16c3   :  { %v9074_v25 = vpop.f32.mrf.mxu1 }
0x16c5   :  { %v9076_v26 = vpop.f32.mrf.mxu1 }
0x16cb   :  { %v8174_v28 = vpop.f32.mrf.mxu1 }
0x16cc   :  { %v3495_v29 = vmul.f32 0.70710677, %v8174_v28 }
0x16cd   :  { %v3485_v35 = vpop.f32.mrf.mxu1 }
0x16ce   :  { %v3494_v30 = vmul.f32 0.70710677, %v3485_v35  ;;  %v3497_v34 = vadd.f32 %v3495_v29, %v8684_v54 }
0x16d0   :  { %v3501_v31 = vsel %vm200_vm4, %v3497_v34, -inf  ;;  %v3496_v51 = vadd.f32 %v3494_v30, %v8686_v57 }
0x16d1   :  { %3502 = vmax.xlane.f32.xlu1 %v3501_v31 }
0x16d2   :  { %v3498_v36 = vsel %vm200_vm4, %v3496_v51, -inf }
0x16d3   :  { %3499 = vmax.xlane.f32.xlu0 %v3498_v36 }
0x16e2   :  { %3611 = vrot.lane.b32.xlu1 %v8995_v27, %s8560_s29 }
0x16e6   :  { %3609 = vrot.lane.b32.xlu1 %v8993_v46, %s8561_s30 }
0x16e9   :  { %3613 = vrot.lane.b32.xlu0 %v8993_v46, %s8560_s29 }
0x16ed   :  { %3607 = vrot.lane.b32.xlu0 %v8995_v27, %s8561_s30 }
0x175a   :  { %v3503_v37 = vpop.xlane.xlu1 %3502 }
0x175b   :  { %v3505_v39 = vsub.f32 %v3497_v34, %v3503_v37 }
0x175c   :  { %v3500_v58 = vpop.xlane.xlu0 %3499 }
0x175d   :  { %v3504_v43 = vsub.f32 %v3496_v51, %v3500_v58  ;;  %v3508_v44 = vmul.f32 1.442695, %v3505_v39 }
0x175e   :  { %v3612_v41 = vpop.permute.xlu1 %3611 }
0x175f   :  { %v3506_v12 = vmul.f32 1.442695, %v3504_v43 }
0x1760   :  { %v3614_v11 = vpop.permute.xlu0 %3613 }
0x1761   :  { %8396 = vpow2.f32 %v3506_v12  ;;  %8182 = vmatprep.subr.msk.mxu0 %vm388_vm6, %v3614_v11 }
0x1762   :  { %8398 = vpow2.f32 %v3508_v44  ;;  %v3610_v42 = vpop.permute.xlu1 %3609 }
0x1764   :  { %v3608_v48 = vpop.permute.xlu0 %3607 }
0x176e   :  { %v8397_v32 = vpop.eup %8396 }
0x176f   :  { %v8399_v45 = vpop.eup %8398  ;;  %8179 = vmatprep.mubr.msk.f32.mxu0 %vm200_vm4, %v8397_v32  ;;  %v3510_v1 = vsel %vm200_vm4, %v8397_v32, 0.0 }
0x1770   :  { %8180 = vmatmul.mubr.msk.f32.vlgmr.msra.gmra.mxu0 %vm200_vm4, %v8399_v45 }
0x1771   :  { %8183 = vmatpush3.xpose.msk.msra.mxu0 %vm388_vm6, %v3614_v11  ;;  %8186 = vmatprep.mubr.msk.f32.mxu0 %vm388_vm6, %v3608_v48 }
0x1772   :  { %8184 = vmatprep.subr.msk.mxu0 %vm388_vm6, %v3612_v41 }
0x1775   :  { %8185 = vmatpush3.xpose.msk.msra.mxu0 %vm388_vm6, %v3612_v41 }
0x1778   :  { %8187 = vmatmul.mubr.msk.f32.vlgmr.msra.gmra.mxu0 %vm388_vm6, %v3610_v42 }
0x1779   :  { %4068 = vmatprep.mubr.f32.mxu0 %v8566_v33 }
0x1830   :  { %v9099_v49 = vpop.f32.mrf.mxu0 }
0x1832   :  { %v3594_v50 = vpop.f32.mrf.mxu0 }
0x1838   :  { %v8188_v52 = vpop.f32.mrf.mxu0 }
0x1839   :  { %v3699_v47 = vmul.f32 0.70710677, %v8188_v52 }
0x183a   :  { %v3689_v60 = vpop.f32.mrf.mxu0 }
0x183b   :  { %v3698_v61 = vmul.f32 0.70710677, %v3689_v60  ;;  %v3701_v62 = vadd.f32 %v3699_v47, %v8684_v54  ;;  %v3306_v54 = vsel %vm200_vm4, %v9064_v38, 0.0  ;;  %v3102_v38 = vsel %vm200_vm4, %v9030_v53, 0.0 }
0x183d   :  { %v3705_v63 = vsel %vm200_vm4, %v3701_v62, -inf  ;;  %v3700_v0 = vadd.f32 %v3698_v61, %v8686_v57  ;;  %v3513_v57 = vsel %vm200_vm4, %v8399_v45, 0.0 }
0x183e   :  { %3706 = vmax.xlane.f32.xlu1 %v3705_v63 }
0x183f   :  { %v3702_v3 = vsel %vm200_vm4, %v3700_v0, -inf }
0x1840   :  { %3703 = vmax.xlane.f32.xlu0 %v3702_v3 }
0x184f   :  { %3720 = vrot.lane.b32.xlu1 %v8995_v27, %s8562_s4 }
0x1856   :  { %3722 = vrot.lane.b32.xlu0 %v8993_v46, %s8562_s4 }
0x1873   :  { %3310 = vadd.xlane.f32.xlu1 %v3309_v4 }
0x1875   :  { %3307 = vadd.xlane.f32.xlu0 %v3306_v54 }
0x1879   :  { %3511 = vadd.xlane.f32.xlu0 %v3510_v1 }
0x187d   :  { %3514 = vadd.xlane.f32.xlu0 %v3513_v57 }
0x18c7   :  { %v3707_v2 = vpop.xlane.xlu1 %3706 }
0x18c8   :  { %v3709_v5 = vsub.f32 %v3701_v62, %v3707_v2 }
0x18c9   :  { %v3704_v16 = vpop.xlane.xlu0 %3703 }
0x18ca   :  { %v3712_v27 = vmul.f32 1.442695, %v3709_v5  ;;  %v3708_v17 = vsub.f32 %v3700_v0, %v3704_v16 }
0x18cb   :  { %v3721_v14 = vpop.permute.xlu1 %3720 }
0x18cc   :  { %8400 = vpow2.f32 %v3712_v27  ;;  %v3710_v46 = vmul.f32 1.442695, %v3708_v17 }
0x18cd   :  { %v3723_v13 = vpop.permute.xlu0 %3722 }
0x18ce   :  { %8402 = vpow2.f32 %v3710_v46  ;;  %8189 = vmatprep.subr.mxu1 %v3723_v13 }
0x18cf   :  { %8190 = vmatpush3.msra.mxu1 %v3723_v13 }
0x18d0   :  { %8191 = vmatprep.subr.mxu1 %v3721_v14 }
0x18d1   :  { %8192 = vmatpush3.msra.mxu1 %v3721_v14 }
0x18d9   :  { %v8401_v8 = vpop.eup %8400 }
0x18da   :  { %v3717_v9 = vsel %vm200_vm4, %v8401_v8, 0.0 }
0x18db   :  { %v8403_v18 = vpop.eup %8402  ;;  %3718 = vadd.xlane.f32.xlu0 %v3717_v9 }
0x18dc   :  { %8193 = vmatprep.mubr.msk.f32.mxu1 %vm200_vm4, %v8403_v18  ;;  %v3714_v19 = vsel %vm200_vm4, %v8403_v18, 0.0 }
0x18dd   :  { %3715 = vadd.xlane.f32.xlu1 %v3714_v19  ;;  %8194 = vmatmul.mubr.msk.f32.vlgmr.msra.gmra.mxu1 %vm200_vm4, %v8401_v8 }
0x18df   :  { %3106 = vadd.xlane.f32.xlu0 %v3105_v21 }
0x18e1   :  { %3103 = vadd.xlane.f32.xlu1 %v3102_v38 }
0x18fc   :  { %v3311_v24 = vpop.xlane.xlu1 %3310 }
0x18fd   :  { %8404 = vrcp.f32 %v3311_v24 }
0x18fe   :  { %v3308_v28 = vpop.xlane.xlu0 %3307 }
0x18ff   :  { %8406 = vrcp.f32 %v3308_v28 }
0x1902   :  { %v3512_v29 = vpop.xlane.xlu0 %3511 }
0x1903   :  { %8408 = vrcp.f32 %v3512_v29  ;;  %v3974_v29 = vld [vmem:[#allocation2 + $0x198] sm:$0xff] }
0x1906   :  { %v3515_v35 = vpop.xlane.xlu0 %3514 }
0x1907   :  { %8410 = vrcp.f32 %v3515_v35  ;;  %v3971_v35 = vld [vmem:[#allocation2 + $0x180] sm:$0xff] }
0x190a   :  { %v8405_v30 = vpop.eup %8404 }
0x190b   :  { %v3402_v34 = vmul.f32 %v8405_v30, %v9074_v25  ;;  %v3841_v25 = vld [vmem:[%s9589_s3 + $0x46] sm:$0xff]  ;;  %v3973_v30 = vld [vmem:[#allocation2 + $0x190] sm:$0xff] }
0x190c   :  { %v8407_v31 = vpop.eup %8406  ;;  %8196 = vmatprep.subr.mxu1 %v3841_v25 }
0x190d   :  { %3815 = vrot.lane.b32.xlu0 %v3402_v34, %s8563_s6  ;;  %v3401_v55 = vmul.f32 %v8407_v31, %v9076_v26  ;;  %8197 = vmatpush3.msra.mxu1 %v3841_v25  ;;  %v4171_v34 = vld [vmem:[#allocation2 + $0x1a8] sm:$0xff]  ;;  %v4173_v31 = vld [vmem:[#allocation2 + $0x1b8] sm:$0xff] }
0x190e   :  { %4111 = vmatprep.subr.mxu1 %v3974_v29 }
0x190f   :  { %3813 = vrot.lane.b32.xlu1 %v3401_v55, %s8563_s6 }
0x1910   :  { %v8409_v53 = vpop.eup %8408 }
0x1911   :  { %v3605_v51 = vmul.f32 %v8409_v53, %v3594_v50 }
0x1913   :  { %3821 = vrot.lane.b32.xlu1 %v3605_v51, %s8564_s7 }
0x1914   :  { %v8411_v36 = vpop.eup %8410 }
0x1915   :  { %v3606_v37 = vmul.f32 %v8411_v36, %v9099_v49 }
0x1917   :  { %3823 = vrot.lane.b32.xlu1 %v3606_v37, %s8564_s7 }
0x1964   :  { %v3719_v39 = vpop.xlane.xlu0 %3718 }
0x1965   :  { %8412 = vrcp.f32 %v3719_v39 }
0x1966   :  { %v3716_v58 = vpop.xlane.xlu1 %3715 }
0x1967   :  { %8414 = vrcp.f32 %v3716_v58  ;;  %v7839_v58 = vld [vmem:[%s9589_s3 + $0x4f] ss:$0 sm:$0xff] }
0x1968   :  { %v3107_v48 = vpop.xlane.xlu0 %3106 }
0x196a   :  { %v3104_v45 = vpop.xlane.xlu1 %3103 }
0x196b   :  { %8416 = vrcp.f32 %v3104_v45  ;;  %v4170_v45 = vld [vmem:[#allocation2 + $0x1a0] sm:$0xff] }
0x196c   :  { %8418 = vrcp.f32 %v3107_v48  ;;  %v4172_v48 = vld [vmem:[#allocation2 + $0x1b0] sm:$0xff] }
0x1972   :  { %v8413_v26 = vpop.eup %8412 }
0x1974   :  { %v8415_v12 = vpop.eup %8414 }
0x1978   :  { %v8417_v49 = vpop.eup %8416 }
0x1979   :  { %v8419_v50 = vpop.eup %8418  ;;  %v3197_v60 = vmul.f32 %v8417_v49, %v9045_v59  ;;  %v4360_v49 = vld [vmem:[#allocation2 + $0x2a8] sm:$0xff] }
0x197a   :  { %v3198_v61 = vmul.f32 %v8419_v50, %v9043_v56  ;;  %v7836_v56 = vld [vmem:[%s9589_s3 + $0x4e] ss:$0 sm:$0xff]  ;;  %v4362_v50 = vld [vmem:[#allocation2 + $0x2b8] sm:$0xff] }
0x197f   :  { %v3816_v47 = vpop.permute.xlu0 %3815 }
0x1980   :  { %v3836_v0 = vsel %vm388_vm6, %v3198_v61, %v3816_v47  ;;  %v4361_v47 = vld [vmem:[#allocation2 + $0x2b0] sm:$0xff]  ;;  %v4169_v61 = vld [vmem:[#allocation2 + $0x298] sm:$0xff] }
0x1981   :  { %v3814_v41 = vpop.permute.xlu1 %3813 }
0x1982   :  { %v3835_v62 = vsel %vm388_vm6, %v3197_v60, %v3814_v41  ;;  %v4167_v60 = vld [vmem:[#allocation2 + $0x288] sm:$0xff] }
0x1985   :  { %v3822_v42 = vpop.permute.xlu1 %3821 }
0x1986   :  { %v3837_v3 = vsel %vm1223_vm9, %v3835_v62, %v3822_v42 }
0x1989   :  { %v3824_v52 = vpop.permute.xlu1 %3823 }
0x198a   :  { %v3838_v54 = vsel %vm1223_vm9, %v3836_v0, %v3824_v52  ;;  %v4359_v52 = vld [vmem:[#allocation2 + $0x2a0] sm:$0xff] }
0x199d   :  { %v8195_v43 = vpop.f32.mrf.mxu1 }
0x199e   :  { %v3810_v44 = vmul.f32 %v8413_v26, %v8195_v43  ;;  %v7840_v43 = vld [vmem:[%s9589_s3 + $0x50] ss:$0 sm:$0xff] }
0x199f   :  { %v3798_v11 = vpop.f32.mrf.mxu1 }
0x19a0   :  { %v3809_v32 = vmul.f32 %v8415_v12, %v3798_v11  ;;  %3831 = vrot.lane.b32.xlu1 %v3810_v44, %s8565_s9 }
0x19a2   :  { %3829 = vrot.lane.b32.xlu0 %v3809_v32, %s8565_s9 }
0x1a12   :  { %v3832_v63 = vpop.permute.xlu1 %3831 }
0x1a13   :  { %v3840_v57 = vsel %vm39_vm1, %v3838_v54, %v3832_v63 }
0x1a14   :  { %v3830_v4 = vpop.permute.xlu0 %3829 }
0x1a15   :  { %v3839_v1 = vsel %vm39_vm1, %v3837_v3, %v3830_v4  ;;  %v4175_v4 = vld [vmem:[#allocation2 + $0x220] ss:$8 sm:$0xf] }
0x1a16   :  { %8198 = vmatprep.mubr.msk.f32.mxu1 %vm197_vm3, %v3839_v1 }
0x1a17   :  { %8199 = vmatmul.mubr.msk.f32.vlgmr.msra.gmra.mxu1 %vm197_vm3, %v3840_v57 }
0x1a18   :  { %4145 = vmatprep.mubr.f32.mxu1 %v8566_v33  ;;  %4112 = vmatpush1.msra.mxu1 %v3973_v30 }
0x1a19   :  { %4304 = vmatprep.subr.mxu1 %v4173_v31 }
0x1ad7   :  { %v8200_v59 = vpop.f32.mrf.mxu1 }
0x1ad8   :  { %v3925_v2 = vadd.f32 %v8200_v59, %v7836_v56  ;;  %v4180_v59 = vrot.slane %v4175_v4, %v8869_v6 }
0x1ad9   :  { %v3919_v5 = vpop.f32.mrf.mxu1 }
0x1ada   :  { %v3929_v16 = vadd.f32 %v3925_v2, %v8984_v23  ;;  %v3920_v27 = vadd.f32 %v7836_v56, %v3919_v5  ;;  %v4188_v2 = vrot.slane %v4175_v4, %v8872_v7  ;;  %v4184_v5 = vrot.slane %v4175_v4, %v8879_v10 }
0x1adc   :  { %v3928_v17 = vadd.f32 %v3920_v27, %v8981_v22  ;;  %v3935_v46 = vsel %vm197_vm3, %v3929_v16, 0.0  ;;  %v3972_v22 = vld [vmem:[#allocation2 + $0x188] sm:$0xff] }
0x1add   :  { %3936 = vadd.xlane.f32.xlu1 %v3935_v46  ;;  %4034 = vmatprep.subr.mxu0 %v3972_v22  ;;  %v3976_v27 = vld [vmem:[#allocation2 + $0x200] ss:$8 sm:$0xf] }
0x1ade   :  { %v3932_v13 = vsel %vm197_vm3, %v3928_v17, 0.0  ;;  %4035 = vmatpush1.msra.mxu0 %v3971_v35  ;;  %v3989_v22 = vrot.slane %v3976_v27, %v8872_v7 }
0x1adf   :  { %3933 = vadd.xlane.f32.xlu0 %v3932_v13  ;;  %4227 = vmatprep.subr.mxu0 %v4171_v34  ;;  %v3985_v13 = vrot.slane %v3976_v27, %v8879_v10 }
0x1b66   :  { %v3937_v14 = vpop.xlane.xlu1 %3936 }
0x1b67   :  { %v3939_v8 = vmul.f32 0.125, %v3937_v14 }
0x1b68   :  { %v3934_v9 = vpop.xlane.xlu0 %3933 }
0x1b69   :  { %v3938_v18 = vmul.f32 0.125, %v3934_v9  ;;  %v3941_v19 = vsub.f32 %v3929_v16, %v3939_v8  ;;  %v4192_v16 = vrot.slane %v4175_v4, %v8882_v15  ;;  %v4665_v4 = vld [vmem:[#allocation2 + $0x1d0] sm:$0xff] }
0x1b6b   :  { %v3940_v21 = vsub.f32 %v3928_v17, %v3938_v18  ;;  %v3943_v28 = vmul.f32 %v3941_v19, %v3941_v19 }
0x1b6d   :  { %v3942_v38 = vmul.f32 %v3940_v21, %v3940_v21  ;;  %v3947_v23 = vsel %vm197_vm3, %v3943_v28, 0.0 }
0x1b6f   :  { %v3944_v24 = vsel %vm197_vm3, %v3942_v38, 0.0 }
0x1b70   :  { %3945 = vadd.xlane.f32.xlu0 %v3944_v24  ;;  %v3981_v24 = vrot.slane %v3976_v27, %v8869_v6 }
0x1b74   :  { %3948 = vadd.xlane.f32.xlu0 %v3947_v23 }
0x1bf9   :  { %v3946_v55 = vpop.xlane.xlu0 %3945 }
0x1bfa   :  { %v3950_v53 = vmul.f32 0.125, %v3946_v55 }
0x1bfc   :  { %v3952_v51 = vadd.f32 1e-05, %v3950_v53 }
0x1bfd   :  { %v3949_v36 = vpop.xlane.xlu0 %3948 }
0x1bfe   :  { %8420 = vrsqrt.f32 %v3952_v51  ;;  %v3951_v37 = vmul.f32 0.125, %v3949_v36 }
0x1c00   :  { %v3953_v25 = vadd.f32 1e-05, %v3951_v37  ;;  %v4166_v37 = vld [vmem:[#allocation2 + $0x280] sm:$0xff] }
0x1c02   :  { %8422 = vrsqrt.f32 %v3953_v25  ;;  %v4168_v25 = vld [vmem:[#allocation2 + $0x290] sm:$0xff] }
0x1c0b   :  { %v8421_v39 = vpop.eup %8420 }
0x1c0c   :  { %v3956_v26 = vmul.f32 %v8421_v39, %v3940_v21 }
0x1c0e   :  { %v3962_v44 = vmul.f32 %v7839_v58, %v3956_v26 }
0x1c0f   :  { %v8423_v12 = vpop.eup %8422 }
0x1c10   :  { %v9160_v11 = vadd.f32 %v7840_v43, %v3962_v44  ;;  %v3957_v32 = vmul.f32 %v8423_v12, %v3941_v19  ;;  %v3993_v19 = vrot.slane %v3976_v27, %v8882_v15  ;;  %v4666_v44 = vld [vmem:[#allocation2 + $0x1d8] sm:$0xff]  ;;  %v5009_v27 = vld [vmem:[#allocation2 + $0x1e8] sm:$0xff] }
0x1c12   :  { %v3963_v41 = vmul.f32 %v7839_v58, %v3957_v32  ;;  %7841 = vmatmul.mubr.msk.f32.vlgmr.msra.gmra.mxu0 %vm197_vm3, %v9160_v11  ;;  %7843 = vmatmul.mubr.msk.f32.vlgmr.msra.gmra.mxu1 %vm197_vm3, %v9160_v11 }
0x1c13   :  { %4228 = vmatpush1.msra.mxu0 %v4170_v45  ;;  %4305 = vmatpush1.msra.mxu1 %v4172_v48 }
0x1c14   :  { %v9166_v42 = vadd.f32 %v7840_v43, %v3963_v41  ;;  %4074 = vmatprep.mubr.f32.mxu0 %v8566_v33  ;;  %4151 = vmatprep.mubr.f32.mxu1 %v8566_v33  ;;  %v4664_v43 = vld [vmem:[#allocation2 + $0x1c8] sm:$0xff] }
0x1c15   :  { %4393 = vmatprep.subr.mxu0 %v4360_v49  ;;  %4468 = vmatprep.subr.mxu1 %v4362_v50 }
0x1c16   :  { %7842 = vmatmul.mubr.msk.f32.gmra.mxu0 %vm197_vm3, %v9166_v42  ;;  %7844 = vmatmul.mubr.msk.f32.gmra.mxu1 %vm197_vm3, %v9166_v42 }
0x1c17   :  { %4261 = vmatprep.mubr.f32.mxu0 %v8566_v33  ;;  %4338 = vmatprep.mubr.f32.mxu1 %v8566_v33 }
0x1c1a   :  { %7845 = vmatmul.mubr.msk.f32.vlgmr.msra.gmra.mxu0 %vm197_vm3, %v9160_v11  ;;  %7847 = vmatmul.mubr.msk.f32.vlgmr.msra.gmra.mxu1 %vm197_vm3, %v9160_v11 }
0x1c1b   :  { %4267 = vmatprep.mubr.f32.mxu0 %v8566_v33  ;;  %4344 = vmatprep.mubr.f32.mxu1 %v8566_v33 }
0x1c1c   :  { %4394 = vmatpush1.xpose.msra.mxu0 %v4359_v52  ;;  %4469 = vmatpush1.xpose.msra.mxu1 %v4361_v47 }
0x1c1d   :  { %4543 = vmatprep.subr.mxu0 %v4167_v60  ;;  %4618 = vmatprep.subr.mxu1 %v4169_v61 }
0x1c1e   :  { %7846 = vmatmul.mubr.msk.f32.gmra.mxu0 %vm197_vm3, %v9166_v42  ;;  %7848 = vmatmul.mubr.msk.f32.gmra.mxu1 %vm197_vm3, %v9166_v42 }
0x1cd2   :  { %v4070_v62 = vpop.f32.mrf.mxu0  ;;  %v4147_v63 = vpop.f32.mrf.mxu1 }
0x1cd3   :  { %v4071_v45 = vadd.f32 %v4070_v62, %v3981_v24  ;;  %v4148_v48 = vadd.f32 %v4147_v63, %v3989_v22  ;;  %v4663_v63 = vld [vmem:[#allocation2 + $0x1c0] sm:$0xff] }
0x1cd4   :  { %v4072_v0 = vpop.f32.mrf.mxu0  ;;  %v4149_v3 = vpop.f32.mrf.mxu1 }
0x1cd5   :  { %v4073_v29 = vadd.f32 %v4072_v0, %v3985_v13  ;;  %v4150_v39 = vadd.f32 %v4149_v3, %v3993_v19  ;;  %v4158_v61 = vmax.f32 %v4071_v45, 0.0  ;;  %v4160_v0 = vmax.f32 %v4148_v48, 0.0 }
0x1cd6   :  { %v9186_v54 = vpop.f32.mrf.mxu0  ;;  %v9188_v1 = vpop.f32.mrf.mxu1 }
0x1cd7   :  { %v4159_v50 = vmax.f32 %v4073_v29, 0.0  ;;  %v4161_v52 = vmax.f32 %v4150_v39, 0.0  ;;  %v4077_v3 = vadd.f32 %v9186_v54, %v3981_v24  ;;  %v4154_v62 = vadd.f32 %v9188_v1, %v3989_v22  ;;  %v4853_v54 = vld [vmem:[#allocation2 + $0x2c8] sm:$0xff]  ;;  %v4855_v1 = vld [vmem:[#allocation2 + $0x2d8] sm:$0xff] }
0x1cd8   :  { %v4078_v57 = vpop.f32.mrf.mxu0  ;;  %v4155_v56 = vpop.f32.mrf.mxu1 }
0x1cd9   :  { %v4079_v47 = vadd.f32 %v4078_v57, %v3985_v13  ;;  %v4156_v60 = vadd.f32 %v4155_v56, %v3993_v19  ;;  %v4162_v57 = vmax.f32 %v4077_v3, 0.0  ;;  %v4164_v56 = vmax.f32 %v4154_v62, 0.0 }
0x1cda   :  { %v4263_v17 = vpop.f32.mrf.mxu0  ;;  %v4340_v46 = vpop.f32.mrf.mxu1 }
0x1cdb   :  { %v4264_v14 = vadd.f32 %v4263_v17, %v4180_v59  ;;  %v4341_v8 = vadd.f32 %v4340_v46, %v4188_v2  ;;  %v5011_v17 = vld [vmem:[#allocation2 + $0x1f8] sm:$0xff] }
0x1cdc   :  { %v4265_v9 = vpop.f32.mrf.mxu0  ;;  %v4342_v18 = vpop.f32.mrf.mxu1 }
0x1cdd   :  { %v4266_v21 = vadd.f32 %v4265_v9, %v4184_v5  ;;  %v4343_v38 = vadd.f32 %v4342_v18, %v4192_v16  ;;  %v4351_v34 = vmax.f32 %v4264_v14, 0.0  ;;  %v4353_v31 = vmax.f32 %v4341_v8, 0.0 }
0x1cde   :  { %v4269_v28 = vpop.f32.mrf.mxu0  ;;  %v4346_v23 = vpop.f32.mrf.mxu1 }
0x1cdf   :  { %v4352_v35 = vmax.f32 %v4266_v21, 0.0  ;;  %v4354_v30 = vmax.f32 %v4343_v38, 0.0  ;;  %v4270_v55 = vadd.f32 %v4269_v28, %v4180_v59  ;;  %v4347_v53 = vadd.f32 %v4346_v23, %v4188_v2 }
0x1ce0   :  { %v4271_v51 = vpop.f32.mrf.mxu0  ;;  %v4348_v36 = vpop.f32.mrf.mxu1  ;;  %v4163_v59 = vmax.f32 %v4079_v47, 0.0  ;;  %v4165_v2 = vmax.f32 %v4156_v60, 0.0 }
0x1ce1   :  { %v4272_v58 = vadd.f32 %v4271_v51, %v4184_v5  ;;  %v4349_v26 = vadd.f32 %v4348_v36, %v4192_v16  ;;  %4427 = vmatprep.mubr.f32.mxu0 %v4352_v35  ;;  %4502 = vmatprep.mubr.f32.mxu1 %v4354_v30  ;;  %v4355_v41 = vmax.f32 %v4270_v55, 0.0  ;;  %v4357_v49 = vmax.f32 %v4347_v53, 0.0  ;;  %v4852_v5 = vld [vmem:[#allocation2 + $0x2c0] sm:$0xff]  ;;  %v4854_v16 = vld [vmem:[#allocation2 + $0x2d0] sm:$0xff] }
0x1ce2   :  { %4428 = vmatmul.mubr.f32.vlgmr.msra.gmra.mxu0 %v4351_v34  ;;  %4503 = vmatmul.mubr.f32.vlgmr.msra.gmra.mxu1 %v4353_v31  ;;  %v4668_v34 = vld [vmem:[#allocation2 + $0x240] ss:$8 sm:$0xf] }
0x1ce3   :  { %v4356_v12 = vmax.f32 %v4272_v58, 0.0  ;;  %v4358_v32 = vmax.f32 %v4349_v26, 0.0  ;;  %4544 = vmatpush1.xpose.msra.mxu0 %v4166_v37  ;;  %4619 = vmatpush1.xpose.msra.mxu1 %v4168_v25  ;;  %v4673_v37 = vrot.slane %v4668_v34, %v8869_v6  ;;  %v4681_v25 = vrot.slane %v4668_v34, %v8872_v7 }
0x1ce4   :  { %4720 = vmatprep.subr.mxu0 %v4664_v43  ;;  %4797 = vmatprep.subr.mxu1 %v4666_v44  ;;  %v4677_v58 = vrot.slane %v4668_v34, %v8879_v10  ;;  %v4685_v26 = vrot.slane %v4668_v34, %v8882_v15 }
0x1ce5   :  { %4432 = vmatprep.mubr.f32.mxu0 %v4356_v12  ;;  %4507 = vmatprep.mubr.f32.mxu1 %v4358_v32 }
0x1ce6   :  { %4433 = vmatmul.mubr.f32.gmra.mxu0 %v4355_v41  ;;  %4508 = vmatmul.mubr.f32.gmra.mxu1 %v4357_v49 }
0x1ce7   :  { %4577 = vmatprep.mubr.f32.mxu0 %v4159_v50  ;;  %4652 = vmatprep.mubr.f32.mxu1 %v4161_v52 }
0x1cea   :  { %4578 = vmatmul.mubr.f32.vlgmr.msra.gmra.mxu0 %v4158_v61  ;;  %4653 = vmatmul.mubr.f32.vlgmr.msra.gmra.mxu1 %v4160_v0 }
0x1ceb   :  { %4721 = vmatpush1.msra.mxu0 %v4663_v63  ;;  %4798 = vmatpush1.msra.mxu1 %v4665_v4 }
0x1cec   :  { %4582 = vmatprep.mubr.f32.mxu0 %v4163_v59  ;;  %4657 = vmatprep.mubr.f32.mxu1 %v4165_v2  ;;  %v5008_v59 = vld [vmem:[#allocation2 + $0x1e0] sm:$0xff]  ;;  %v5010_v2 = vld [vmem:[#allocation2 + $0x1f0] sm:$0xff] }
0x1ced   :  { %4886 = vmatprep.subr.mxu0 %v4853_v54  ;;  %4961 = vmatprep.subr.mxu1 %v4855_v1 }
0x1cee   :  { %4583 = vmatmul.mubr.f32.gmra.mxu0 %v4162_v57  ;;  %4658 = vmatmul.mubr.f32.gmra.mxu1 %v4164_v56 }
0x1cef   :  { %4754 = vmatprep.mubr.f32.mxu0 %v8566_v33  ;;  %4831 = vmatprep.mubr.f32.mxu1 %v8566_v33 }
0x1cf2   :  { %7849 = vmatmul.mubr.msk.f32.vlgmr.msra.gmra.mxu0 %vm197_vm3, %v9160_v11  ;;  %7851 = vmatmul.mubr.msk.f32.vlgmr.msra.gmra.mxu1 %vm197_vm3, %v9160_v11 }
0x1cf3   :  { %4760 = vmatprep.mubr.f32.mxu0 %v8566_v33  ;;  %4837 = vmatprep.mubr.f32.mxu1 %v8566_v33 }
0x1cf4   :  { %4887 = vmatpush1.xpose.msra.mxu0 %v4852_v5  ;;  %4962 = vmatpush1.xpose.msra.mxu1 %v4854_v16 }
0x1cf5   :  { %5065 = vmatprep.subr.mxu0 %v5009_v27  ;;  %5142 = vmatprep.subr.mxu1 %v5011_v17  ;;  %v5198_v27 = vld [vmem:[#allocation2 + $0x2e8] sm:$0xff]  ;;  %v5200_v17 = vld [vmem:[#allocation2 + $0x2f8] sm:$0xff] }
0x1cf6   :  { %7850 = vmatmul.mubr.msk.f32.gmra.mxu0 %vm197_vm3, %v9166_v42  ;;  %7852 = vmatmul.mubr.msk.f32.gmra.mxu1 %vm197_vm3, %v9166_v42 }
0x1da2   :  { %v4429_v46 = vpop.f32.mrf.mxu0  ;;  %v4504_v13 = vpop.f32.mrf.mxu1 }
0x1da3   :  { %v4505_v14 = vadd.f32 %v4504_v13, %v4429_v46  ;;  %v5197_v46 = vld [vmem:[#allocation2 + $0x2e0] sm:$0xff]  ;;  %v5199_v13 = vld [vmem:[#allocation2 + $0x2f0] sm:$0xff] }
0x1da4   :  { %v4431_v8 = vpop.f32.mrf.mxu0  ;;  %v4506_v9 = vpop.f32.mrf.mxu1 }
0x1da6   :  { %v4434_v18 = vpop.f32.mrf.mxu0  ;;  %v4509_v19 = vpop.f32.mrf.mxu1 }
0x1da7   :  { %v4510_v21 = vadd.f32 %v4509_v19, %v4434_v18 }
0x1da8   :  { %v4436_v38 = vpop.f32.mrf.mxu0  ;;  %v4511_v24 = vpop.f32.mrf.mxu1 }
0x1da9   :  { %v5013_v38 = vld [vmem:[#allocation2 + $0x260] ss:$8 sm:$0xf] }
0x1daa   :  { %v4579_v28 = vpop.f32.mrf.mxu0  ;;  %v4654_v23 = vpop.f32.mrf.mxu1  ;;  %v5026_v34 = vrot.slane %v5013_v38, %v8872_v7 }
0x1dab   :  { %v4580_v22 = vadd.f32 %v4579_v28, %v4505_v14 }
0x1dac   :  { %v4581_v29 = vpop.f32.mrf.mxu0  ;;  %v4656_v35 = vpop.f32.mrf.mxu1 }
0x1dad   :  { %v9212_v30 = vadd.f32 %v4654_v23, %v4580_v22  ;;  %v5018_v35 = vrot.slane %v5013_v38, %v8869_v6 }
0x1dae   :  { %v4584_v31 = vpop.f32.mrf.mxu0  ;;  %v4659_v55 = vpop.f32.mrf.mxu1 }
0x1daf   :  { %v4585_v53 = vadd.f32 %v4584_v31, %v4510_v21 }
0x1db0   :  { %v4586_v51 = vpop.f32.mrf.mxu0  ;;  %v4661_v36 = vpop.f32.mrf.mxu1 }
0x1db1   :  { %v9216_v39 = vadd.f32 %v4659_v55, %v4585_v53  ;;  %v5022_v55 = vrot.slane %v5013_v38, %v8879_v10  ;;  %v5030_v53 = vrot.slane %v5013_v38, %v8882_v15 }
0x1db2   :  { %v4756_v43 = vpop.f32.mrf.mxu0  ;;  %v4833_v44 = vpop.f32.mrf.mxu1 }
0x1db3   :  { %v4757_v12 = vadd.f32 %v4756_v43, %v4673_v37  ;;  %v4834_v32 = vadd.f32 %v4833_v44, %v4681_v25 }
0x1db4   :  { %v4758_v45 = vpop.f32.mrf.mxu0  ;;  %v4835_v48 = vpop.f32.mrf.mxu1 }
0x1db5   :  { %v4759_v41 = vadd.f32 %v4758_v45, %v4677_v58  ;;  %v4836_v49 = vadd.f32 %v4835_v48, %v4685_v26  ;;  %v4844_v61 = vmax.f32 %v4757_v12, 0.0  ;;  %v4846_v0 = vmax.f32 %v4834_v32, 0.0 }
0x1db6   :  { %v4762_v50 = vpop.f32.mrf.mxu0  ;;  %v4839_v52 = vpop.f32.mrf.mxu1 }
0x1db7   :  { %v4845_v47 = vmax.f32 %v4759_v41, 0.0  ;;  %v4847_v60 = vmax.f32 %v4836_v49, 0.0  ;;  %v4763_v3 = vadd.f32 %v4762_v50, %v4673_v37  ;;  %v4840_v62 = vadd.f32 %v4839_v52, %v4681_v25 }
0x1db8   :  { %v4764_v63 = vpop.f32.mrf.mxu0  ;;  %v4841_v4 = vpop.f32.mrf.mxu1 }
0x1db9   :  { %v4765_v57 = vadd.f32 %v4764_v63, %v4677_v58  ;;  %v4842_v56 = vadd.f32 %v4841_v4, %v4685_v26  ;;  %4920 = vmatprep.mubr.f32.mxu0 %v4845_v47  ;;  %4995 = vmatprep.mubr.f32.mxu1 %v4847_v60  ;;  %v4848_v5 = vmax.f32 %v4763_v3, 0.0  ;;  %v4850_v16 = vmax.f32 %v4840_v62, 0.0  ;;  %v7857_v62 = vld [vmem:[%s9589_s3 + $0x53] ss:$0 sm:$0xff] }
0x1dba   :  { %4921 = vmatmul.mubr.f32.vlgmr.msra.gmra.mxu0 %v4844_v61  ;;  %4996 = vmatmul.mubr.f32.vlgmr.msra.gmra.mxu1 %v4846_v0 }
0x1dbb   :  { %v4849_v54 = vmax.f32 %v4765_v57, 0.0  ;;  %v4851_v1 = vmax.f32 %v4842_v56, 0.0  ;;  %5066 = vmatpush1.msra.mxu0 %v5008_v59  ;;  %5143 = vmatpush1.msra.mxu1 %v5010_v2 }
0x1dbc   :  { %5231 = vmatprep.subr.mxu0 %v5198_v27  ;;  %5306 = vmatprep.subr.mxu1 %v5200_v17 }
0x1dbd   :  { %4925 = vmatprep.mubr.f32.mxu0 %v4849_v54  ;;  %5000 = vmatprep.mubr.f32.mxu1 %v4851_v1 }
0x1dbe   :  { %4926 = vmatmul.mubr.f32.gmra.mxu0 %v4848_v5  ;;  %5001 = vmatmul.mubr.f32.gmra.mxu1 %v4850_v16 }
0x1dbf   :  { %5099 = vmatprep.mubr.f32.mxu0 %v8566_v33  ;;  %5176 = vmatprep.mubr.f32.mxu1 %v8566_v33 }
0x1dc2   :  { %7853 = vmatmul.mubr.msk.f32.vlgmr.msra.gmra.mxu0 %vm197_vm3, %v9160_v11  ;;  %7855 = vmatmul.mubr.msk.f32.vlgmr.msra.gmra.mxu1 %vm197_vm3, %v9160_v11 }
0x1dc3   :  { %5105 = vmatprep.mubr.f32.mxu0 %v8566_v33  ;;  %5182 = vmatprep.mubr.f32.mxu1 %v8566_v33 }
0x1dc4   :  { %5232 = vmatpush1.xpose.msra.mxu0 %v5197_v46  ;;  %5307 = vmatpush1.xpose.msra.mxu1 %v5199_v13 }
0x1dc5   :  { %8206 = vmatprep.subr.mxu1 %v8566_v33 }
0x1dc6   :  { %7854 = vmatmul.mubr.msk.f32.gmra.mxu0 %vm197_vm3, %v9166_v42  ;;  %7856 = vmatmul.mubr.msk.f32.gmra.mxu1 %vm197_vm3, %v9166_v42 }
0x1e7a   :  { %v4922_v14 = vpop.f32.mrf.mxu0  ;;  %v4997_v8 = vpop.f32.mrf.mxu1 }
0x1e7b   :  { %v4998_v9 = vadd.f32 %v4997_v8, %v4922_v14  ;;  %v9249_v8 = vld [vmem:[%s9588_s2 + $0x12] sm:$0xff] }
0x1e7c   :  { %v4924_v18 = vpop.f32.mrf.mxu0  ;;  %v4999_v19 = vpop.f32.mrf.mxu1 }
0x1e7d   :  { %v5006_v21 = vadd.f32 %v4998_v9, %v9212_v30 }
0x1e7e   :  { %v4927_v24 = vpop.f32.mrf.mxu0  ;;  %v5002_v28 = vpop.f32.mrf.mxu1 }
0x1e7f   :  { %v5003_v23 = vadd.f32 %v5002_v28, %v4927_v24 }
0x1e80   :  { %v4929_v22 = vpop.f32.mrf.mxu0  ;;  %v5004_v29 = vpop.f32.mrf.mxu1 }
0x1e81   :  { %v5007_v31 = vadd.f32 %v5003_v23, %v9216_v39  ;;  %v5404_v22 = vld [vmem:[%s9588_s2 + $0x9] sm:$0xff]  ;;  %v9267_v29 = vld [vmem:[%s9588_s2 + $0x1a] ss:$0 sm:$0xff] }
0x1e82   :  { %v5101_v51 = vpop.f32.mrf.mxu0  ;;  %v5178_v36 = vpop.f32.mrf.mxu1  ;;  %8201 = vmatprep.subr.mxu0 %v5404_v22 }
0x1e83   :  { %v5102_v37 = vadd.f32 %v5101_v51, %v5018_v35  ;;  %v5179_v30 = vadd.f32 %v5178_v36, %v5026_v34 }
0x1e84   :  { %v5103_v25 = vpop.f32.mrf.mxu0  ;;  %v5180_v58 = vpop.f32.mrf.mxu1 }
0x1e85   :  { %v5104_v26 = vadd.f32 %v5103_v25, %v5022_v55  ;;  %v5181_v43 = vadd.f32 %v5180_v58, %v5030_v53  ;;  %v5189_v45 = vmax.f32 %v5102_v37, 0.0  ;;  %v5191_v7 = vmax.f32 %v5179_v30, 0.0  ;;  %v7858_v58 = vld [vmem:[%s9589_s3 + $0x51] ss:$0 sm:$0xff] }
0x1e86   :  { %v5107_v44 = vpop.f32.mrf.mxu0  ;;  %v5184_v12 = vpop.f32.mrf.mxu1 }
0x1e87   :  { %v5190_v32 = vmax.f32 %v5104_v26, 0.0  ;;  %v5192_v6 = vmax.f32 %v5181_v43, 0.0  ;;  %v5108_v48 = vadd.f32 %v5107_v44, %v5018_v35  ;;  %v5185_v39 = vadd.f32 %v5184_v12, %v5026_v34  ;;  %v7859_v43 = vld [vmem:[%s9589_s3 + $0x52] ss:$0 sm:$0xff] }
0x1e88   :  { %v5109_v41 = vpop.f32.mrf.mxu0  ;;  %v5186_v10 = vpop.f32.mrf.mxu1 }
0x1e89   :  { %v5110_v49 = vadd.f32 %v5109_v41, %v5022_v55  ;;  %v5187_v15 = vadd.f32 %v5186_v10, %v5030_v53  ;;  %5265 = vmatprep.mubr.f32.mxu0 %v5190_v32  ;;  %5340 = vmatprep.mubr.f32.mxu1 %v5192_v6  ;;  %v5193_v47 = vmax.f32 %v5108_v48, 0.0  ;;  %v5195_v60 = vmax.f32 %v5185_v39, 0.0  ;;  %v7860_v41 = vld [vmem:[%s9588_s2 + $0x11] ss:$0 sm:$0xff] }
0x1e8a   :  { %5266 = vmatmul.mubr.f32.vlgmr.msra.gmra.mxu0 %v5189_v45  ;;  %5341 = vmatmul.mubr.f32.vlgmr.msra.gmra.mxu1 %v5191_v7 }
0x1e8b   :  { %v5194_v50 = vmax.f32 %v5110_v49, 0.0  ;;  %v5196_v52 = vmax.f32 %v5187_v15, 0.0  ;;  %8207 = vmatpush3.msra.mxu1 %v9249_v8  ;;  %8202 = vmatpush3.msra.mxu0 %v5404_v22 }
0x1e8c   :  { %8216 = vmatprep.subr.mxu1 %v8566_v33  ;;  %8211 = vmatprep.subr.mxu0 %v8566_v33 }
0x1e8d   :  { %5270 = vmatprep.mubr.f32.mxu0 %v5194_v50  ;;  %5345 = vmatprep.mubr.f32.mxu1 %v5196_v52 }
0x1e8e   :  { %5271 = vmatmul.mubr.f32.gmra.mxu0 %v5193_v47  ;;  %5346 = vmatmul.mubr.f32.gmra.mxu1 %v5195_v60 }
0x1e8f   :  { %8208 = vmatprep.mubr.msk.f32.mxu1 %vm8567_vm10, %v8566_v33 }
0x1e92   :  { %8209 = vmatmul.mubr.f32.vlgmr.msra.gmra.mxu1 %v8566_v33 }
0x1e93   :  { %8218 = vmatprep.mubr.msk.f32.mxu1 %vm8567_vm10, %v8566_v33 }
0x1f4a   :  { %v5267_v61 = vpop.f32.mrf.mxu0  ;;  %v5342_v0 = vpop.f32.mrf.mxu1 }
0x1f4b   :  { %v5343_v3 = vadd.f32 %v5342_v0, %v5267_v61 }
0x1f4c   :  { %v5269_v63 = vpop.f32.mrf.mxu0  ;;  %v5344_v4 = vpop.f32.mrf.mxu1 }
0x1f4d   :  { %v5351_v59 = vadd.f32 %v5343_v3, %v5006_v21  ;;  %v9296_v63 = vld [vmem:[%s9588_s2 + $0x2d] sm:$0xff]  ;;  %v9301_v4 = vld [vmem:[%s9588_s2 + $0x24] sm:$0xff] }
0x1f4e   :  { %v5272_v2 = vpop.f32.mrf.mxu0  ;;  %v5347_v57 = vpop.f32.mrf.mxu1  ;;  %8217 = vmatpush3.msra.mxu1 %v9296_v63 }
0x1f4f   :  { %v5358_v56 = vadd.f32 %v7857_v62, %v5351_v59  ;;  %v5348_v54 = vadd.f32 %v5347_v57, %v5272_v2  ;;  %8219 = vmatmul.mubr.f32.vlgmr.msra.gmra.mxu1 %v8566_v33  ;;  %8226 = vmatprep.subr.mxu1 %v8566_v33 }
0x1f50   :  { %v5274_v1 = vpop.f32.mrf.mxu0  ;;  %v5349_v5 = vpop.f32.mrf.mxu1  ;;  %8228 = vmatprep.mubr.msk.f32.mxu1 %vm8567_vm10, %v8566_v33  ;;  %8227 = vmatpush3.msra.mxu1 %v9301_v4 }
0x1f51   :  { %v5352_v16 = vadd.f32 %v5348_v54, %v5007_v31  ;;  %v5360_v27 = vadd.f32 %v5358_v56, %v9160_v11  ;;  %8236 = vmatprep.subr.mxu1 %v8566_v33  ;;  %v9320_v5 = vld [vmem:[%s9588_s2 + $0x35] ss:$0 sm:$0xff] }
0x1f52   :  { %v5570_v35 = vpop.f32.mrf.mxu1 }
0x1f53   :  { %v5359_v17 = vadd.f32 %v7857_v62, %v5352_v16  ;;  %v5364_v46 = vsel %vm197_vm3, %v5360_v27, 0.0  ;;  %v5571_v34 = vadd.f32 %v9267_v29, %v5570_v35 }
0x1f54   :  { %5365 = vadd.xlane.f32.xlu1 %v5364_v46  ;;  %v8210_v31 = vpop.f32.mrf.mxu1 }
0x1f55   :  { %v5361_v13 = vadd.f32 %v5359_v17, %v9166_v42 }
0x1f57   :  { %v5367_v14 = vsel %vm197_vm3, %v5361_v13, 0.0 }
0x1f58   :  { %5368 = vadd.xlane.f32.xlu0 %v5367_v14 }
0x1fdd   :  { %v5366_v11 = vpop.xlane.xlu1 %5365 }
0x1fde   :  { %v5370_v42 = vmul.f32 0.125, %v5366_v11 }
0x1fe0   :  { %v5372_v9 = vsub.f32 %v5360_v27, %v5370_v42 }
0x1fe1   :  { %v5369_v18 = vpop.xlane.xlu0 %5368 }
0x1fe2   :  { %v5371_v19 = vmul.f32 0.125, %v5369_v18  ;;  %v5374_v21 = vmul.f32 %v5372_v9, %v5372_v9 }
0x1fe4   :  { %v5373_v38 = vsub.f32 %v5361_v13, %v5371_v19  ;;  %v5376_v24 = vsel %vm197_vm3, %v5374_v21, 0.0  ;;  %v9337_v13 = vld [vmem:[%s9588_s2 + $0x2c] ss:$0 sm:$0xff] }
0x1fe5   :  { %5377 = vadd.xlane.f32.xlu1 %v5376_v24 }
0x1fe6   :  { %v5375_v28 = vmul.f32 %v5373_v38, %v5373_v38 }
0x1fe8   :  { %v5379_v23 = vsel %vm197_vm3, %v5375_v28, 0.0 }
0x1fe9   :  { %5380 = vadd.xlane.f32.xlu0 %v5379_v23 }
0x1ff6   :  { %5582 = vrot.lane.b32.xlu1 %v5571_v34, %s8552_s22 }
0x200f   :  { %v5749_v16 = vpop.f32.mrf.mxu1 }
0x2010   :  { %v5750_v27 = vadd.f32 %v9320_v5, %v5749_v16 }
0x2011   :  { %v8220_v17 = vpop.f32.mrf.mxu1 }
0x206e   :  { %v5378_v55 = vpop.xlane.xlu1 %5377 }
0x206f   :  { %v5382_v53 = vmul.f32 0.125, %v5378_v55 }
0x2071   :  { %v5384_v51 = vadd.f32 1e-05, %v5382_v53 }
0x2072   :  { %v5381_v36 = vpop.xlane.xlu0 %5380  ;;  %v5583_v60 = vpop.permute.xlu1 %5582 }
0x2073   :  { %8424 = vrsqrt.f32 %v5384_v51  ;;  %v5383_v37 = vmul.f32 0.125, %v5381_v36 }
0x2075   :  { %v5385_v30 = vadd.f32 1e-05, %v5383_v37 }
0x2077   :  { %8426 = vrsqrt.f32 %v5385_v30 }
0x2080   :  { %v8425_v25 = vpop.eup %8424 }
0x2081   :  { %v5388_v26 = vmul.f32 %v8425_v25, %v5372_v9 }
0x2083   :  { %v5394_v44 = vmul.f32 %v7858_v58, %v5388_v26 }
0x2084   :  { %v8427_v12 = vpop.eup %8426 }
0x2085   :  { %v5389_v32 = vmul.f32 %v8427_v12, %v5373_v38  ;;  %v5400_v6 = vadd.f32 %v7859_v43, %v5394_v44 }
0x2087   :  { %v5395_v45 = vmul.f32 %v7858_v58, %v5389_v32  ;;  %v5402_v7 = vadd.f32 %v5400_v6, %v8978_v40 }
0x2089   :  { %v5401_v48 = vadd.f32 %v7859_v43, %v5395_v45  ;;  %8203 = vmatprep.mubr.msk.f32.mxu0 %vm197_vm3, %v5402_v7 }
0x208b   :  { %v5403_v39 = vadd.f32 %v5401_v48, %v8976_v20 }
0x208d   :  { %8204 = vmatmul.mubr.msk.f32.vlgmr.msra.gmra.mxu0 %vm197_vm3, %v5403_v39 }
0x208e   :  { %8213 = vmatprep.mubr.msk.f32.mxu0 %vm8567_vm10, %v8566_v33  ;;  %8212 = vmatpush3.msra.mxu0 %v9301_v4 }
0x208f   :  { %8221 = vmatprep.subr.mxu0 %v8566_v33 }
0x214d   :  { %v8205_v10 = vpop.f32.mrf.mxu0 }
0x214e   :  { %v9286_v49 = vadd.f32 %v8205_v10, %v7860_v41 }
0x214f   :  { %v5488_v15 = vpop.f32.mrf.mxu0 }
0x2150   :  { %v9288_v50 = vadd.f32 %v7860_v41, %v5488_v15 }
0x2152   :  { %v5574_v40 = vadd.f32 %v5571_v34, %v9288_v50 }
0x2154   :  { %v7864_v52 = vmul.f32 -1.442695, %v5574_v40 }
0x2156   :  { %8428 = vpow2.f32 %v7864_v52 }
0x2163   :  { %v8429_v20 = vpop.eup %8428 }
0x2164   :  { %v5578_v47 = vadd.f32 1.0, %v8429_v20 }
0x2166   :  { %8430 = vrcp.f32 %v5578_v47 }
0x2173   :  { %v8431_v61 = vpop.eup %8430 }
0x2174   :  { %v5585_v0 = vmul.f32 %v8431_v61, %v5583_v60  ;;  %v5592_v2 = vsub.f32 1.0, %v8431_v61  ;;  %v5598_v56 = vmul.f32 0.0, %v8431_v61 }
0x2176   :  { %5587 = vrot.lane.b32.xlu0 %v5585_v0, %s8550_s15 }
0x21e8   :  { %v5588_v3 = vpop.permute.xlu0 %5587 }
0x21e9   :  { %v5590_v62 = vadd.f32 %v5588_v3, %v9288_v50 }
0x21eb   :  { %8432 = vtanh.f32 %v5590_v62 }
0x21f8   :  { %v8433_v59 = vpop.eup %8432 }
0x21f9   :  { %5594 = vrot.lane.b32.xlu1 %v8433_v59, %s8551_s21 }
0x226b   :  { %v5595_v57 = vpop.permute.xlu1 %5594 }
0x226c   :  { %v5597_v54 = vmul.f32 %v5595_v57, %v5592_v2 }
0x226e   :  { %v9313_v1 = vadd.f32 %v5598_v56, %v5597_v54 }
0x2270   :  { %5605 = vrot.lane.b32.xlu1 %v9313_v1, %s8551_s21  ;;  %v5875_v39 = vrot.slane %v9313_v1, 6 }
0x2274   :  { %5761 = vrot.lane.b32.xlu1 %v5750_v27, %s8552_s22 }
0x22e2   :  { %v5606_v46 = vpop.permute.xlu1 %5605 }
0x22e3   :  { %8214 = vmatmul.mubr.msk.f32.vlgmr.msra.gmra.mxu0 %vm197_vm3, %v5606_v46 }
0x22e4   :  { %8222 = vmatpush3.msra.mxu0 %v9249_v8  ;;  %8223 = vmatprep.mubr.msk.f32.mxu0 %vm8567_vm10, %v8566_v33 }
0x22e5   :  { %8231 = vmatprep.subr.mxu0 %v8566_v33 }
0x22e6   :  { %v5762_v22 = vpop.permute.xlu1 %5761 }
0x22e7   :  { %8224 = vmatmul.mubr.msk.f32.vlgmr.msra.gmra.mxu0 %vm197_vm3, %v5606_v46 }
0x22e8   :  { %8232 = vmatpush3.msra.mxu0 %v9296_v63  ;;  %8233 = vmatprep.mubr.msk.f32.mxu0 %vm8567_vm10, %v8566_v33 }
0x22e9   :  { %8241 = vmatprep.subr.mxu0 %v8566_v33 }
0x23a3   :  { %v5675_v14 = vpop.f32.mrf.mxu0 }
0x23a4   :  { %v5676_v11 = vadd.f32 %v9337_v13, %v5675_v14 }
0x23a5   :  { %v8215_v42 = vpop.f32.mrf.mxu0 }
0x23a6   :  { %v5753_v9 = vadd.f32 %v5750_v27, %v5676_v11 }
0x23a7   :  { %v5845_v18 = vpop.f32.mrf.mxu0 }
0x23a8   :  { %v7868_v19 = vmul.f32 -1.442695, %v5753_v9  ;;  %v5846_v21 = vadd.f32 %v9267_v29, %v5845_v18 }
0x23a9   :  { %v8225_v38 = vpop.f32.mrf.mxu0 }
0x23aa   :  { %8434 = vpow2.f32 %v7868_v19  ;;  %v5850_v24 = vrot.slane %v5846_v21, 6 }
0x23ac   :  { %5859 = vrot.lane.b32.xlu0 %v5850_v24, %s8552_s22  ;;  %v5852_v31 = vadd.f32 %v5850_v24, %v9288_v50 }
0x23ae   :  { %v7870_v55 = vmul.f32 -1.442695, %v5852_v31 }
0x23b7   :  { %v8435_v28 = vpop.eup %8434 }
0x23b8   :  { %v5757_v23 = vadd.f32 1.0, %v8435_v28 }
0x23ba   :  { %8436 = vrcp.f32 %v5757_v23 }
0x23bb   :  { %8438 = vpow2.f32 %v7870_v55 }
0x23c7   :  { %v8437_v35 = vpop.eup %8436 }
0x23c8   :  { %v5764_v34 = vmul.f32 %v8437_v35, %v5762_v22  ;;  %v8439_v53 = vpop.eup %8438  ;;  %v5771_v32 = vsub.f32 1.0, %v8437_v35  ;;  %v5777_v45 = vmul.f32 0.0, %v8437_v35 }
0x23c9   :  { %v5856_v51 = vadd.f32 1.0, %v8439_v53 }
0x23ca   :  { %5766 = vrot.lane.b32.xlu1 %v5764_v34, %s8550_s15 }
0x23cb   :  { %8440 = vrcp.f32 %v5856_v51 }
0x23d8   :  { %v8441_v36 = vpop.eup %8440 }
0x23d9   :  { %v5869_v41 = vsub.f32 1.0, %v8441_v36  ;;  %v5877_v40 = vmul.f32 %v8441_v36, %v5875_v39 }
0x241e   :  { %v5860_v37 = vpop.permute.xlu0 %5859 }
0x241f   :  { %v5862_v30 = vmul.f32 %v8441_v36, %v5860_v37 }
0x2421   :  { %5864 = vrot.lane.b32.xlu0 %v5862_v30, %s8550_s15 }
0x243c   :  { %v5767_v25 = vpop.permute.xlu1 %5766 }
0x243d   :  { %v5769_v58 = vadd.f32 %v5767_v25, %v5676_v11 }
0x243f   :  { %8442 = vtanh.f32 %v5769_v58 }
0x244c   :  { %v8443_v26 = vpop.eup %8442 }
0x244d   :  { %5773 = vrot.lane.b32.xlu1 %v8443_v26, %s8551_s21 }
0x2493   :  { %v5865_v43 = vpop.permute.xlu0 %5864 }
0x2494   :  { %v5867_v44 = vadd.f32 %v5865_v43, %v9288_v50 }
0x2496   :  { %8444 = vtanh.f32 %v5867_v44 }
0x24a3   :  { %v8445_v12 = vpop.eup %8444 }
0x24a4   :  { %5871 = vrot.lane.b32.xlu0 %v8445_v12, %s8551_s21 }
0x24bf   :  { %v5774_v6 = vpop.permute.xlu1 %5773 }
0x24c0   :  { %v5776_v7 = vmul.f32 %v5774_v6, %v5771_v32 }
0x24c2   :  { %v9348_v48 = vadd.f32 %v5777_v45, %v5776_v7 }
0x24c4   :  { %5956 = vrot.lane.b32.xlu1 %v9348_v48, %s8551_s21 }
0x2516   :  { %v5872_v10 = vpop.permute.xlu0 %5871 }
0x2517   :  { %v5874_v15 = vmul.f32 %v5872_v10, %v5869_v41 }
0x2519   :  { %v9353_v52 = vadd.f32 %v5877_v40, %v5874_v15 }
0x251b   :  { %v5880_v20 = vrot.slane %v9353_v52, 2  ;;  %v6152_v25 = vrot.slane %v9353_v52, 6 }
0x251d   :  { %5881 = vrot.lane.b32.xlu0 %v5880_v20, %s8551_s21 }
0x2536   :  { %v5957_v47 = vpop.permute.xlu1 %5956 }
0x2537   :  { %8234 = vmatmul.mubr.msk.f32.vlgmr.msra.gmra.mxu0 %vm197_vm3, %v5957_v47 }
0x2538   :  { %8242 = vmatpush3.msra.mxu0 %v9301_v4  ;;  %8243 = vmatprep.mubr.msk.f32.mxu0 %vm8567_vm10, %v8566_v33 }
0x2539   :  { %8251 = vmatprep.subr.mxu0 %v8566_v33 }
0x258f   :  { %v5882_v60 = vpop.permute.xlu0 %5881 }
0x2590   :  { %8229 = vmatmul.mubr.msk.f32.vlgmr.msra.gmra.mxu1 %vm197_vm3, %v5882_v60 }
0x2591   :  { %8237 = vmatpush3.msra.mxu1 %v9249_v8  ;;  %8238 = vmatprep.mubr.msk.f32.mxu1 %vm8567_vm10, %v8566_v33 }
0x2592   :  { %8246 = vmatprep.subr.mxu1 %v8566_v33 }
0x2594   :  { %8239 = vmatmul.mubr.msk.f32.vlgmr.msra.gmra.mxu1 %vm197_vm3, %v5882_v60 }
0x2595   :  { %8247 = vmatpush3.msra.mxu1 %v9296_v63  ;;  %8248 = vmatprep.mubr.msk.f32.mxu1 %vm8567_vm10, %v8566_v33 }
0x2596   :  { %8256 = vmatprep.subr.mxu1 %v8566_v33 }
0x25f7   :  { %v6026_v61 = vpop.f32.mrf.mxu0 }
0x25f8   :  { %v6027_v0 = vadd.f32 %v9320_v5, %v6026_v61 }
0x25f9   :  { %v8235_v3 = vpop.f32.mrf.mxu0 }
0x25fa   :  { %6038 = vrot.lane.b32.xlu1 %v6027_v0, %s8552_s22 }
0x2650   :  { %v5951_v62 = vpop.f32.mrf.mxu1 }
0x2651   :  { %v5952_v59 = vadd.f32 %v9337_v13, %v5951_v62 }
0x2652   :  { %v8230_v2 = vpop.f32.mrf.mxu1 }
0x2653   :  { %v6030_v57 = vadd.f32 %v6027_v0, %v5952_v59 }
0x2654   :  { %v6122_v56 = vpop.f32.mrf.mxu1 }
0x2655   :  { %v7873_v54 = vmul.f32 -1.442695, %v6030_v57  ;;  %v6123_v1 = vadd.f32 %v9267_v29, %v6122_v56 }
0x2656   :  { %v8240_v16 = vpop.f32.mrf.mxu1 }
0x2657   :  { %8446 = vpow2.f32 %v7873_v54  ;;  %v6127_v27 = vrot.slane %v6123_v1, 4 }
0x2659   :  { %6136 = vrot.lane.b32.xlu0 %v6127_v27, %s8552_s22  ;;  %v6129_v9 = vadd.f32 %v6127_v27, %v9288_v50 }
0x265b   :  { %v7875_v18 = vmul.f32 -1.442695, %v6129_v9 }
0x2664   :  { %v8447_v17 = vpop.eup %8446 }
0x2665   :  { %v6034_v46 = vadd.f32 1.0, %v8447_v17 }
0x2667   :  { %8448 = vrcp.f32 %v6034_v46 }
0x2668   :  { %8450 = vpow2.f32 %v7875_v18 }
0x266c   :  { %v6039_v11 = vpop.permute.xlu1 %6038 }
0x2674   :  { %v8449_v14 = vpop.eup %8448 }
0x2675   :  { %v6041_v42 = vmul.f32 %v8449_v14, %v6039_v11  ;;  %v8451_v19 = vpop.eup %8450  ;;  %v6048_v53 = vsub.f32 1.0, %v8449_v14  ;;  %v6054_v36 = vmul.f32 %v8449_v14, %v9348_v48 }
0x2676   :  { %v6133_v21 = vadd.f32 1.0, %v8451_v19 }
0x2677   :  { %6043 = vrot.lane.b32.xlu1 %v6041_v42, %s8550_s15 }
0x2678   :  { %8452 = vrcp.f32 %v6133_v21 }
0x2685   :  { %v8453_v38 = vpop.eup %8452 }
0x2686   :  { %v6146_v58 = vsub.f32 1.0, %v8453_v38  ;;  %v6154_v43 = vmul.f32 %v8453_v38, %v6152_v25 }
0x26cb   :  { %v6137_v24 = vpop.permute.xlu0 %6136 }
0x26cc   :  { %v6139_v28 = vmul.f32 %v8453_v38, %v6137_v24 }
0x26ce   :  { %6141 = vrot.lane.b32.xlu0 %v6139_v28, %s8550_s15 }
0x26e9   :  { %v6044_v23 = vpop.permute.xlu1 %6043 }
0x26ea   :  { %v6046_v22 = vadd.f32 %v6044_v23, %v5952_v59 }
0x26ec   :  { %8454 = vtanh.f32 %v6046_v22 }
0x26f9   :  { %v8455_v35 = vpop.eup %8454 }
0x26fa   :  { %6050 = vrot.lane.b32.xlu1 %v8455_v35, %s8551_s21 }
0x2740   :  { %v6142_v34 = vpop.permute.xlu0 %6141 }
0x2741   :  { %v6144_v31 = vadd.f32 %v6142_v34, %v9288_v50 }
0x2743   :  { %8456 = vtanh.f32 %v6144_v31 }
0x2750   :  { %v8457_v55 = vpop.eup %8456 }
0x2751   :  { %6148 = vrot.lane.b32.xlu0 %v8457_v55, %s8551_s21 }
0x276c   :  { %v6051_v51 = vpop.permute.xlu1 %6050 }
0x276d   :  { %v6053_v37 = vmul.f32 %v6051_v51, %v6048_v53 }
0x276f   :  { %v9384_v30 = vadd.f32 %v6054_v36, %v6053_v37 }
0x2771   :  { %6233 = vrot.lane.b32.xlu1 %v9384_v30, %s8551_s21 }
0x27c3   :  { %v6149_v26 = vpop.permute.xlu0 %6148 }
0x27c4   :  { %v6151_v44 = vmul.f32 %v6149_v26, %v6146_v58 }
0x27c6   :  { %v9389_v12 = vadd.f32 %v6154_v43, %v6151_v44 }
0x27c8   :  { %v6157_v32 = vrot.slane %v9389_v12, 4  ;;  %v6429_v23 = vrot.slane %v9389_v12, 6 }
0x27ca   :  { %6158 = vrot.lane.b32.xlu0 %v6157_v32, %s8551_s21 }
0x27e3   :  { %v6234_v6 = vpop.permute.xlu1 %6233 }
0x27e4   :  { %8249 = vmatmul.mubr.msk.f32.vlgmr.msra.gmra.mxu1 %vm197_vm3, %v6234_v6 }
0x27e5   :  { %8257 = vmatpush3.msra.mxu1 %v9301_v4  ;;  %8258 = vmatprep.mubr.msk.f32.mxu1 %vm8567_vm10, %v8566_v33 }
0x27e6   :  { %8266 = vmatprep.subr.mxu1 %v8566_v33 }
0x283c   :  { %v6159_v45 = vpop.permute.xlu0 %6158 }
0x283d   :  { %8244 = vmatmul.mubr.msk.f32.vlgmr.msra.gmra.mxu0 %vm197_vm3, %v6159_v45 }
0x283e   :  { %8252 = vmatpush3.msra.mxu0 %v9249_v8  ;;  %8253 = vmatprep.mubr.msk.f32.mxu0 %vm8567_vm10, %v8566_v33 }
0x283f   :  { %8261 = vmatprep.subr.mxu0 %v8566_v33 }
0x2841   :  { %8254 = vmatmul.mubr.msk.f32.vlgmr.msra.gmra.mxu0 %vm197_vm3, %v6159_v45 }
0x2842   :  { %8262 = vmatpush3.msra.mxu0 %v9296_v63  ;;  %8263 = vmatprep.mubr.msk.f32.mxu0 %vm8567_vm10, %v8566_v33 }
0x2843   :  { %8271 = vmatprep.subr.mxu0 %v8566_v33 }
0x28a4   :  { %v6303_v7 = vpop.f32.mrf.mxu1 }
0x28a5   :  { %v6304_v48 = vadd.f32 %v9320_v5, %v6303_v7 }
0x28a6   :  { %v8250_v39 = vpop.f32.mrf.mxu1 }
0x28a7   :  { %6315 = vrot.lane.b32.xlu1 %v6304_v48, %s8552_s22 }
0x28fd   :  { %v6228_v41 = vpop.f32.mrf.mxu0 }
0x28fe   :  { %v6229_v10 = vadd.f32 %v9337_v13, %v6228_v41 }
0x28ff   :  { %v8245_v15 = vpop.f32.mrf.mxu0 }
0x2900   :  { %v6307_v40 = vadd.f32 %v6304_v48, %v6229_v10 }
0x2901   :  { %v6399_v52 = vpop.f32.mrf.mxu0 }
0x2902   :  { %v7878_v20 = vmul.f32 -1.442695, %v6307_v40  ;;  %v6400_v47 = vadd.f32 %v9267_v29, %v6399_v52 }
0x2903   :  { %v8255_v60 = vpop.f32.mrf.mxu0 }
0x2904   :  { %8458 = vpow2.f32 %v7878_v20  ;;  %v6404_v61 = vrot.slane %v6400_v47, 2 }
0x2906   :  { %6413 = vrot.lane.b32.xlu0 %v6404_v61, %s8552_s22  ;;  %v6406_v57 = vadd.f32 %v6404_v61, %v9288_v50 }
0x2908   :  { %v7880_v56 = vmul.f32 -1.442695, %v6406_v57 }
0x2911   :  { %v8459_v0 = vpop.eup %8458 }
0x2912   :  { %v6311_v3 = vadd.f32 1.0, %v8459_v0 }
0x2914   :  { %8460 = vrcp.f32 %v6311_v3 }
0x2915   :  { %8462 = vpow2.f32 %v7880_v56 }
0x2919   :  { %v6316_v59 = vpop.permute.xlu1 %6315 }
0x2921   :  { %v8461_v62 = vpop.eup %8460 }
0x2922   :  { %v6318_v2 = vmul.f32 %v8461_v62, %v6316_v59  ;;  %v8463_v54 = vpop.eup %8462  ;;  %v6325_v19 = vsub.f32 1.0, %v8461_v62  ;;  %v6331_v38 = vmul.f32 %v8461_v62, %v9384_v30 }
0x2923   :  { %v6410_v1 = vadd.f32 1.0, %v8463_v54 }
0x2924   :  { %6320 = vrot.lane.b32.xlu1 %v6318_v2, %s8550_s15 }
0x2925   :  { %8464 = vrcp.f32 %v6410_v1 }
0x2932   :  { %v8465_v16 = vpop.eup %8464 }
0x2933   :  { %v6423_v22 = vsub.f32 1.0, %v8465_v16  ;;  %v6431_v34 = vmul.f32 %v8465_v16, %v6429_v23 }
0x2978   :  { %v6414_v27 = vpop.permute.xlu0 %6413 }
0x2979   :  { %v6416_v17 = vmul.f32 %v8465_v16, %v6414_v27 }
0x297b   :  { %6418 = vrot.lane.b32.xlu0 %v6416_v17, %s8550_s15 }
0x2996   :  { %v6321_v46 = vpop.permute.xlu1 %6320 }
0x2997   :  { %v6323_v14 = vadd.f32 %v6321_v46, %v6229_v10 }
0x2999   :  { %8466 = vtanh.f32 %v6323_v14 }
0x29a6   :  { %v8467_v11 = vpop.eup %8466 }
0x29a7   :  { %6327 = vrot.lane.b32.xlu1 %v8467_v11, %s8551_s21 }
0x29ed   :  { %v6419_v42 = vpop.permute.xlu0 %6418 }
0x29ee   :  { %v6421_v9 = vadd.f32 %v6419_v42, %v9288_v50 }
0x29f0   :  { %8468 = vtanh.f32 %v6421_v9 }
0x29fd   :  { %v8469_v18 = vpop.eup %8468 }
0x29fe   :  { %6425 = vrot.lane.b32.xlu0 %v8469_v18, %s8551_s21 }
0x2a19   :  { %v6328_v21 = vpop.permute.xlu1 %6327 }
0x2a1a   :  { %v6330_v24 = vmul.f32 %v6328_v21, %v6325_v19 }
0x2a1c   :  { %v9420_v28 = vadd.f32 %v6331_v38, %v6330_v24 }
0x2a1e   :  { %6510 = vrot.lane.b32.xlu1 %v9420_v28, %s8551_s21 }
0x2a70   :  { %v6426_v35 = vpop.permute.xlu0 %6425 }
0x2a71   :  { %v6428_v50 = vmul.f32 %v6426_v35, %v6423_v22 }
0x2a73   :  { %v9425_v31 = vadd.f32 %v6431_v34, %v6428_v50 }
0x2a75   :  { %v6434_v55 = vrot.slane %v9425_v31, 6 }
0x2a77   :  { %6435 = vrot.lane.b32.xlu0 %v6434_v55, %s8551_s21 }
0x2a90   :  { %v6511_v53 = vpop.permute.xlu1 %6510 }
0x2a91   :  { %8264 = vmatmul.mubr.msk.f32.vlgmr.msra.gmra.mxu0 %vm197_vm3, %v6511_v53 }
0x2a92   :  { %8272 = vmatpush3.msra.mxu0 %v9301_v4  ;;  %8273 = vmatprep.mubr.msk.f32.mxu0 %vm8567_vm10, %v8566_v33 }
0x2a93   :  { %8281 = vmatprep.subr.mxu0 %v8566_v33 }
0x2ae9   :  { %v6436_v51 = vpop.permute.xlu0 %6435 }
0x2aea   :  { %8259 = vmatmul.mubr.msk.f32.vlgmr.msra.gmra.mxu1 %vm197_vm3, %v6436_v51 }
0x2aeb   :  { %8267 = vmatpush3.msra.mxu1 %v9249_v8  ;;  %8268 = vmatprep.mubr.msk.f32.mxu1 %vm8567_vm10, %v8566_v33 }
0x2aec   :  { %8276 = vmatprep.subr.mxu1 %v8566_v33 }
0x2aee   :  { %8269 = vmatmul.mubr.msk.f32.vlgmr.msra.gmra.mxu1 %vm197_vm3, %v6436_v51 }
0x2aef   :  { %8277 = vmatpush3.msra.mxu1 %v9296_v63  ;;  %8278 = vmatprep.mubr.msk.f32.mxu1 %vm8567_vm10, %v8566_v33 }
0x2af0   :  { %8286 = vmatprep.subr.mxu1 %v8566_v33 }
0x2b51   :  { %v6580_v36 = vpop.f32.mrf.mxu0 }
0x2b52   :  { %v6581_v37 = vadd.f32 %v9320_v5, %v6580_v36 }
0x2b53   :  { %v8265_v30 = vpop.f32.mrf.mxu0 }
0x2b54   :  { %6592 = vrot.lane.b32.xlu0 %v6581_v37, %s8552_s22 }
0x2baa   :  { %v6505_v25 = vpop.f32.mrf.mxu1 }
0x2bab   :  { %v6506_v58 = vadd.f32 %v9337_v13, %v6505_v25 }
0x2bac   :  { %v8260_v26 = vpop.f32.mrf.mxu1 }
0x2bad   :  { %v6584_v43 = vadd.f32 %v6581_v37, %v6506_v58 }
0x2bae   :  { %v6676_v44 = vpop.f32.mrf.mxu1 }
0x2baf   :  { %v7883_v12 = vmul.f32 -1.442695, %v6584_v43  ;;  %v6677_v32 = vadd.f32 %v9267_v29, %v6676_v44 }
0x2bb0   :  { %v8270_v6 = vpop.f32.mrf.mxu1 }
0x2bb1   :  { %8470 = vpow2.f32 %v7883_v12  ;;  %6688 = vrot.lane.b32.xlu1 %v6677_v32, %s8552_s22  ;;  %v6680_v10 = vadd.f32 %v6677_v32, %v9286_v49 }
0x2bb3   :  { %v7885_v15 = vmul.f32 -1.442695, %v6680_v10 }
0x2bbe   :  { %v8471_v45 = vpop.eup %8470 }
0x2bbf   :  { %v6588_v7 = vadd.f32 1.0, %v8471_v45 }
0x2bc1   :  { %8472 = vrcp.f32 %v6588_v7 }
0x2bc2   :  { %8474 = vpow2.f32 %v7885_v15 }
0x2bc6   :  { %v6593_v39 = vpop.permute.xlu0 %6592 }
0x2bce   :  { %v8473_v48 = vpop.eup %8472 }
0x2bcf   :  { %v6595_v41 = vmul.f32 %v8473_v48, %v6593_v39  ;;  %v8475_v40 = vpop.eup %8474  ;;  %v6602_v57 = vsub.f32 1.0, %v8473_v48  ;;  %v6608_v54 = vmul.f32 %v8473_v48, %v9420_v28 }
0x2bd0   :  { %v6684_v52 = vadd.f32 1.0, %v8475_v40 }
0x2bd1   :  { %6597 = vrot.lane.b32.xlu0 %v6595_v41, %s8550_s15 }
0x2bd2   :  { %8476 = vrcp.f32 %v6684_v52 }
0x2bdf   :  { %v8477_v20 = vpop.eup %8476 }
0x2be0   :  { %v6698_v27 = vsub.f32 1.0, %v8477_v20  ;;  %v6705_v46 = vmul.f32 %v8477_v20, %v6434_v55 }
0x2c23   :  { %v6689_v47 = vpop.permute.xlu1 %6688 }
0x2c24   :  { %v6691_v60 = vmul.f32 %v8477_v20, %v6689_v47 }
0x2c26   :  { %6693 = vrot.lane.b32.xlu1 %v6691_v60, %s8550_s15 }
0x2c43   :  { %v6598_v61 = vpop.permute.xlu0 %6597 }
0x2c44   :  { %v6600_v0 = vadd.f32 %v6598_v61, %v6506_v58 }
0x2c46   :  { %8478 = vtanh.f32 %v6600_v0 }
0x2c53   :  { %v8479_v3 = vpop.eup %8478 }
0x2c54   :  { %6604 = vrot.lane.b32.xlu0 %v8479_v3, %s8551_s21 }
0x2c98   :  { %v6694_v62 = vpop.permute.xlu1 %6693 }
0x2c99   :  { %v6696_v59 = vadd.f32 %v6694_v62, %v9286_v49 }
0x2c9b   :  { %8480 = vtanh.f32 %v6696_v59 }
0x2ca8   :  { %v8481_v2 = vpop.eup %8480 }
0x2ca9   :  { %6700 = vrot.lane.b32.xlu1 %v8481_v2, %s8551_s21 }
0x2cc6   :  { %v6605_v56 = vpop.permute.xlu0 %6604 }
0x2cc7   :  { %v6607_v1 = vmul.f32 %v6605_v56, %v6602_v57 }
0x2cc9   :  { %v9458_v16 = vadd.f32 %v6608_v54, %v6607_v1 }
0x2ccb   :  { %6783 = vrot.lane.b32.xlu1 %v9458_v16, %s8551_s21 }
0x2d1b   :  { %v6701_v17 = vpop.permute.xlu1 %6700 }
0x2d1c   :  { %v6703_v14 = vmul.f32 %v6701_v17, %v6698_v27 }
0x2d1e   :  { %v9464_v11 = vadd.f32 %v6705_v46, %v6703_v14 }
0x2d20   :  { %6708 = vrot.lane.b32.xlu0 %v9464_v11, %s8551_s21  ;;  %v6979_v20 = vrot.slane %v9464_v11, 6 }
0x2d3d   :  { %v6784_v42 = vpop.permute.xlu1 %6783 }
0x2d3e   :  { %8279 = vmatmul.mubr.msk.f32.vlgmr.msra.gmra.mxu1 %vm197_vm3, %v6784_v42 }
0x2d3f   :  { %8287 = vmatpush3.msra.mxu1 %v9301_v4  ;;  %8288 = vmatprep.mubr.msk.f32.mxu1 %vm8567_vm10, %v8566_v33 }
0x2d40   :  { %8296 = vmatprep.subr.mxu1 %v8566_v33 }
0x2d92   :  { %v6709_v9 = vpop.permute.xlu0 %6708 }
0x2d93   :  { %8274 = vmatmul.mubr.msk.f32.vlgmr.msra.gmra.mxu0 %vm197_vm3, %v6709_v9 }
0x2d94   :  { %8282 = vmatpush3.msra.mxu0 %v9249_v8  ;;  %8283 = vmatprep.mubr.msk.f32.mxu0 %vm8567_vm10, %v8566_v33 }
0x2d95   :  { %8291 = vmatprep.subr.mxu0 %v8566_v33 }
0x2d97   :  { %8284 = vmatmul.mubr.msk.f32.vlgmr.msra.gmra.mxu0 %vm197_vm3, %v6709_v9 }
0x2d98   :  { %8292 = vmatpush3.msra.mxu0 %v9296_v63  ;;  %8293 = vmatprep.mubr.msk.f32.mxu0 %vm8567_vm10, %v8566_v33 }
0x2d99   :  { %8301 = vmatprep.subr.mxu0 %v8566_v33 }
0x2dfe   :  { %v6853_v18 = vpop.f32.mrf.mxu1 }
0x2dff   :  { %v6854_v19 = vadd.f32 %v9320_v5, %v6853_v18 }
0x2e00   :  { %v8280_v21 = vpop.f32.mrf.mxu1 }
0x2e01   :  { %6865 = vrot.lane.b32.xlu0 %v6854_v19, %s8552_s22 }
0x2e53   :  { %v6778_v38 = vpop.f32.mrf.mxu0 }
0x2e54   :  { %v6779_v24 = vadd.f32 %v9337_v13, %v6778_v38 }
0x2e55   :  { %v8275_v28 = vpop.f32.mrf.mxu0 }
0x2e56   :  { %v6857_v23 = vadd.f32 %v6854_v19, %v6779_v24 }
0x2e57   :  { %v6949_v22 = vpop.f32.mrf.mxu0 }
0x2e58   :  { %v7888_v35 = vmul.f32 -1.442695, %v6857_v23  ;;  %v6950_v34 = vadd.f32 %v9267_v29, %v6949_v22 }
0x2e59   :  { %v8285_v50 = vpop.f32.mrf.mxu0 }
0x2e5a   :  { %8482 = vpow2.f32 %v7888_v35  ;;  %v6954_v31 = vrot.slane %v6950_v34, 6 }
0x2e5c   :  { %6963 = vrot.lane.b32.xlu1 %v6954_v31, %s8552_s22  ;;  %v6956_v30 = vadd.f32 %v6954_v31, %v9286_v49 }
0x2e5e   :  { %v7890_v25 = vmul.f32 -1.442695, %v6956_v30 }
0x2e67   :  { %v8483_v55 = vpop.eup %8482 }
0x2e68   :  { %v6861_v53 = vadd.f32 1.0, %v8483_v55 }
0x2e6a   :  { %8484 = vrcp.f32 %v6861_v53 }
0x2e6b   :  { %8486 = vpow2.f32 %v7890_v25 }
0x2e73   :  { %v6866_v36 = vpop.permute.xlu0 %6865 }
0x2e77   :  { %v8485_v51 = vpop.eup %8484 }
0x2e78   :  { %v6868_v37 = vmul.f32 %v8485_v51, %v6866_v36  ;;  %v8487_v58 = vpop.eup %8486  ;;  %v6875_v41 = vsub.f32 1.0, %v8485_v51  ;;  %v6881_v15 = vmul.f32 %v8485_v51, %v9458_v16 }
0x2e79   :  { %v6960_v26 = vadd.f32 1.0, %v8487_v58 }
0x2e7a   :  { %6870 = vrot.lane.b32.xlu0 %v6868_v37, %s8550_s15 }
0x2e7b   :  { %8488 = vrcp.f32 %v6960_v26 }
0x2e88   :  { %v8489_v43 = vpop.eup %8488 }
0x2e89   :  { %v6973_v47 = vsub.f32 1.0, %v8489_v43  ;;  %v6981_v61 = vmul.f32 %v8489_v43, %v6979_v20 }
0x2ece   :  { %v6964_v44 = vpop.permute.xlu1 %6963 }
0x2ecf   :  { %v6966_v12 = vmul.f32 %v8489_v43, %v6964_v44 }
0x2ed1   :  { %6968 = vrot.lane.b32.xlu1 %v6966_v12, %s8550_s15 }
0x2eec   :  { %v6871_v32 = vpop.permute.xlu0 %6870 }
0x2eed   :  { %v6873_v6 = vadd.f32 %v6871_v32, %v6779_v24 }
0x2eef   :  { %8490 = vtanh.f32 %v6873_v6 }
0x2efc   :  { %v8491_v45 = vpop.eup %8490 }
0x2efd   :  { %6877 = vrot.lane.b32.xlu0 %v8491_v45, %s8551_s21 }
0x2f43   :  { %v6969_v7 = vpop.permute.xlu1 %6968 }
0x2f44   :  { %v6971_v48 = vadd.f32 %v6969_v7, %v9286_v49 }
0x2f46   :  { %8492 = vtanh.f32 %v6971_v48 }
0x2f53   :  { %v8493_v39 = vpop.eup %8492 }
0x2f54   :  { %6975 = vrot.lane.b32.xlu1 %v8493_v39, %s8551_s21 }
0x2f6f   :  { %v6878_v10 = vpop.permute.xlu0 %6877 }
0x2f70   :  { %v6880_v40 = vmul.f32 %v6878_v10, %v6875_v41 }
0x2f72   :  { %v9495_v52 = vadd.f32 %v6881_v15, %v6880_v40 }
0x2f74   :  { %7060 = vrot.lane.b32.xlu0 %v9495_v52, %s8551_s21 }
0x2fc6   :  { %v6976_v60 = vpop.permute.xlu1 %6975 }
0x2fc7   :  { %v6978_v0 = vmul.f32 %v6976_v60, %v6973_v47 }
0x2fc9   :  { %v9500_v3 = vadd.f32 %v6981_v61, %v6978_v0 }
0x2fcb   :  { %v6984_v62 = vrot.slane %v9500_v3, 2  ;;  %v7256_v12 = vrot.slane %v9500_v3, 6 }
0x2fcd   :  { %6985 = vrot.lane.b32.xlu1 %v6984_v62, %s8551_s21 }
0x2fe6   :  { %v7061_v59 = vpop.permute.xlu0 %7060 }
0x2fe7   :  { %8294 = vmatmul.mubr.msk.f32.vlgmr.msra.gmra.mxu0 %vm197_vm3, %v7061_v59 }
0x2fe8   :  { %8302 = vmatpush3.msra.mxu0 %v9301_v4  ;;  %8303 = vmatprep.mubr.msk.f32.mxu0 %vm8567_vm10, %v8566_v33 }
0x2fe9   :  { %8311 = vmatprep.subr.mxu0 %v8566_v33 }
0x303f   :  { %v6986_v2 = vpop.permute.xlu1 %6985 }
0x3040   :  { %8289 = vmatmul.mubr.msk.f32.vlgmr.msra.gmra.mxu1 %vm197_vm3, %v6986_v2 }
0x3041   :  { %8297 = vmatpush3.msra.mxu1 %v9249_v8  ;;  %8298 = vmatprep.mubr.msk.f32.mxu1 %vm8567_vm10, %v8566_v33 }
0x3042   :  { %8306 = vmatprep.subr.mxu1 %v8566_v33 }
0x3044   :  { %8299 = vmatmul.mubr.msk.f32.vlgmr.msra.gmra.mxu1 %vm197_vm3, %v6986_v2 }
0x3045   :  { %8307 = vmatpush3.msra.mxu1 %v9296_v63  ;;  %8308 = vmatprep.mubr.msk.f32.mxu1 %vm8567_vm10, %v8566_v33 }
0x3046   :  { %8316 = vmatprep.subr.mxu1 %v8566_v33 }
0x30a7   :  { %v7130_v57 = vpop.f32.mrf.mxu0 }
0x30a8   :  { %v7131_v56 = vadd.f32 %v9320_v5, %v7130_v57 }
0x30a9   :  { %v8295_v54 = vpop.f32.mrf.mxu0 }
0x30aa   :  { %7142 = vrot.lane.b32.xlu0 %v7131_v56, %s8552_s22 }
0x3100   :  { %v7055_v1 = vpop.f32.mrf.mxu1 }
0x3101   :  { %v7056_v16 = vadd.f32 %v9337_v13, %v7055_v1 }
0x3102   :  { %v8290_v27 = vpop.f32.mrf.mxu1 }
0x3103   :  { %v7134_v17 = vadd.f32 %v7131_v56, %v7056_v16 }
0x3104   :  { %v7226_v46 = vpop.f32.mrf.mxu1 }
0x3105   :  { %v7893_v14 = vmul.f32 -1.442695, %v7134_v17  ;;  %v7227_v11 = vadd.f32 %v9267_v29, %v7226_v46 }
0x3106   :  { %v8300_v42 = vpop.f32.mrf.mxu1 }
0x3107   :  { %8494 = vpow2.f32 %v7893_v14  ;;  %v7231_v9 = vrot.slane %v7227_v11, 4 }
0x3109   :  { %7240 = vrot.lane.b32.xlu1 %v7231_v9, %s8552_s22  ;;  %v7233_v28 = vadd.f32 %v7231_v9, %v9286_v49 }
0x310b   :  { %v7895_v23 = vmul.f32 -1.442695, %v7233_v28 }
0x3114   :  { %v8495_v18 = vpop.eup %8494 }
0x3115   :  { %v7138_v19 = vadd.f32 1.0, %v8495_v18 }
0x3117   :  { %8496 = vrcp.f32 %v7138_v19 }
0x3118   :  { %8498 = vpow2.f32 %v7895_v23 }
0x311c   :  { %v7143_v38 = vpop.permute.xlu0 %7142 }
0x3124   :  { %v8497_v21 = vpop.eup %8496 }
0x3125   :  { %v7145_v24 = vmul.f32 %v8497_v21, %v7143_v38  ;;  %v8499_v22 = vpop.eup %8498  ;;  %v7152_v25 = vsub.f32 1.0, %v8497_v21  ;;  %v7158_v26 = vmul.f32 %v8497_v21, %v9495_v52 }
0x3126   :  { %v7237_v35 = vadd.f32 1.0, %v8499_v22 }
0x3127   :  { %7147 = vrot.lane.b32.xlu0 %v7145_v24, %s8550_s15 }
0x3128   :  { %8500 = vrcp.f32 %v7237_v35 }
0x3135   :  { %v8501_v34 = vpop.eup %8500 }
0x3136   :  { %v7250_v32 = vsub.f32 1.0, %v8501_v34  ;;  %v7258_v45 = vmul.f32 %v8501_v34, %v7256_v12 }
0x317b   :  { %v7241_v50 = vpop.permute.xlu1 %7240 }
0x317c   :  { %v7243_v31 = vmul.f32 %v8501_v34, %v7241_v50 }
0x317e   :  { %7245 = vrot.lane.b32.xlu1 %v7243_v31, %s8550_s15 }
0x3199   :  { %v7148_v55 = vpop.permute.xlu0 %7147 }
0x319a   :  { %v7150_v53 = vadd.f32 %v7148_v55, %v7056_v16 }
0x319c   :  { %8502 = vtanh.f32 %v7150_v53 }
0x31a9   :  { %v8503_v51 = vpop.eup %8502 }
0x31aa   :  { %7154 = vrot.lane.b32.xlu0 %v8503_v51, %s8551_s21 }
0x31f0   :  { %v7246_v36 = vpop.permute.xlu1 %7245 }
0x31f1   :  { %v7248_v37 = vadd.f32 %v7246_v36, %v9286_v49 }
0x31f3   :  { %8504 = vtanh.f32 %v7248_v37 }
0x3200   :  { %v8505_v30 = vpop.eup %8504 }
0x3201   :  { %7252 = vrot.lane.b32.xlu1 %v8505_v30, %s8551_s21 }
0x321c   :  { %v7155_v58 = vpop.permute.xlu0 %7154 }
0x321d   :  { %v7157_v43 = vmul.f32 %v7155_v58, %v7152_v25 }
0x321f   :  { %v9531_v44 = vadd.f32 %v7158_v26, %v7157_v43 }
0x3221   :  { %7337 = vrot.lane.b32.xlu0 %v9531_v44, %s8551_s21 }
0x3273   :  { %v7253_v6 = vpop.permute.xlu1 %7252 }
0x3274   :  { %v7255_v7 = vmul.f32 %v7253_v6, %v7250_v32 }
0x3276   :  { %v9536_v48 = vadd.f32 %v7258_v45, %v7255_v7 }
0x3278   :  { %v7261_v39 = vrot.slane %v9536_v48, 4  ;;  %v7533_v23 = vrot.slane %v9536_v48, 6 }
0x327a   :  { %7262 = vrot.lane.b32.xlu1 %v7261_v39, %s8551_s21 }
0x3293   :  { %v7338_v41 = vpop.permute.xlu0 %7337 }
0x3294   :  { %8309 = vmatmul.mubr.msk.f32.vlgmr.msra.gmra.mxu1 %vm197_vm3, %v7338_v41 }
0x3295   :  { %8317 = vmatpush3.msra.mxu1 %v9301_v4  ;;  %8318 = vmatprep.mubr.msk.f32.mxu1 %vm8567_vm10, %v8566_v33 }
0x32ec   :  { %v7263_v10 = vpop.permute.xlu1 %7262 }
0x32ed   :  { %8304 = vmatmul.mubr.msk.f32.vlgmr.msra.gmra.mxu0 %vm197_vm3, %v7263_v10 }
0x32ee   :  { %8312 = vmatpush3.msra.mxu0 %v9249_v8  ;;  %8313 = vmatprep.mubr.msk.f32.mxu0 %vm8567_vm10, %v8566_v33 }
0x32ef   :  { %8321 = vmatprep.subr.mxu0 %v8566_v33 }
0x32f1   :  { %8314 = vmatmul.mubr.msk.f32.vlgmr.msra.gmra.mxu0 %vm197_vm3, %v7263_v10 }
0x32f2   :  { %8322 = vmatpush3.msra.mxu0 %v9296_v63  ;;  %8323 = vmatprep.mubr.msk.f32.mxu0 %vm8567_vm10, %v8566_v33 }
0x3354   :  { %v7407_v4 = vpop.f32.mrf.mxu1 }
0x3355   :  { %v7408_v15 = vadd.f32 %v9320_v5, %v7407_v4 }
0x3356   :  { %v8310_v40 = vpop.f32.mrf.mxu1 }
0x3357   :  { %7419 = vrot.lane.b32.xlu0 %v7408_v15, %s8552_s22 }
0x33ad   :  { %v7332_v52 = vpop.f32.mrf.mxu0 }
0x33ae   :  { %v7333_v8 = vadd.f32 %v9337_v13, %v7332_v52 }
0x33af   :  { %v8305_v20 = vpop.f32.mrf.mxu0 }
0x33b0   :  { %v7411_v47 = vadd.f32 %v7408_v15, %v7333_v8 }
0x33b1   :  { %v7503_v60 = vpop.f32.mrf.mxu0 }
0x33b2   :  { %v7898_v61 = vmul.f32 -1.442695, %v7411_v47  ;;  %v7504_v0 = vadd.f32 %v9267_v29, %v7503_v60  ;;  %v7905_v47 = vld [vmem:[%s9589_s3 + $0x55] ss:$0 sm:$0xff] }
0x33b3   :  { %v8315_v3 = vpop.f32.mrf.mxu0 }
0x33b4   :  { %8506 = vpow2.f32 %v7898_v61  ;;  %v7508_v63 = vrot.slane %v7504_v0, 2 }
0x33b6   :  { %7517 = vrot.lane.b32.xlu1 %v7508_v63, %s8552_s22  ;;  %v7510_v56 = vadd.f32 %v7508_v63, %v9286_v49 }
0x33b8   :  { %v7900_v54 = vmul.f32 -1.442695, %v7510_v56 }
0x33c1   :  { %v8507_v33 = vpop.eup %8506 }
0x33c2   :  { %v7415_v62 = vadd.f32 1.0, %v8507_v33 }
0x33c4   :  { %8508 = vrcp.f32 %v7415_v62 }
0x33c5   :  { %8510 = vpow2.f32 %v7900_v54 }
0x33c9   :  { %v7420_v2 = vpop.permute.xlu0 %7419 }
0x33d1   :  { %v8509_v59 = vpop.eup %8508 }
0x33d2   :  { %v7422_v57 = vmul.f32 %v8509_v59, %v7420_v2  ;;  %v8511_v1 = vpop.eup %8510  ;;  %v7429_v19 = vsub.f32 1.0, %v8509_v59  ;;  %v7435_v38 = vmul.f32 %v8509_v59, %v9531_v44 }
0x33d3   :  { %v7514_v16 = vadd.f32 1.0, %v8511_v1 }
0x33d4   :  { %7424 = vrot.lane.b32.xlu0 %v7422_v57, %s8550_s15 }
0x33d5   :  { %8512 = vrcp.f32 %v7514_v16 }
0x33e2   :  { %v8513_v29 = vpop.eup %8512 }
0x33e3   :  { %v7527_v22 = vsub.f32 1.0, %v8513_v29  ;;  %v7535_v34 = vmul.f32 %v8513_v29, %v7533_v23 }
0x3428   :  { %v7518_v27 = vpop.permute.xlu1 %7517 }
0x3429   :  { %v7520_v17 = vmul.f32 %v8513_v29, %v7518_v27 }
0x342b   :  { %7522 = vrot.lane.b32.xlu1 %v7520_v17, %s8550_s15 }
0x3446   :  { %v7425_v46 = vpop.permute.xlu0 %7424 }
0x3447   :  { %v7427_v14 = vadd.f32 %v7425_v46, %v7333_v8 }
0x3449   :  { %8514 = vtanh.f32 %v7427_v14 }
0x3456   :  { %v8515_v11 = vpop.eup %8514 }
0x3457   :  { %7431 = vrot.lane.b32.xlu0 %v8515_v11, %s8551_s21 }
0x349d   :  { %v7523_v42 = vpop.permute.xlu1 %7522 }
0x349e   :  { %v7525_v9 = vadd.f32 %v7523_v42, %v9286_v49 }
0x34a0   :  { %8516 = vtanh.f32 %v7525_v9 }
0x34ad   :  { %v8517_v18 = vpop.eup %8516 }
0x34ae   :  { %7529 = vrot.lane.b32.xlu1 %v8517_v18, %s8551_s21 }
0x34c9   :  { %v7432_v21 = vpop.permute.xlu0 %7431 }
0x34ca   :  { %v7434_v24 = vmul.f32 %v7432_v21, %v7429_v19 }
0x34cc   :  { %v7436_v28 = vadd.f32 %v7435_v38, %v7434_v24 }
0x34ce   :  { %7614 = vrot.lane.b32.xlu0 %v7436_v28, %s8551_s21 }
0x3520   :  { %v7530_v35 = vpop.permute.xlu1 %7529 }
0x3521   :  { %v7532_v50 = vmul.f32 %v7530_v35, %v7527_v22 }
0x3523   :  { %v7536_v31 = vadd.f32 %v7535_v34, %v7532_v50 }
0x3525   :  { %v7538_v49 = vrot.slane %v7536_v31, 6 }
0x3527   :  { %7539 = vrot.lane.b32.xlu1 %v7538_v49, %s8551_s21 }
0x3540   :  { %v7615_v55 = vpop.permute.xlu0 %7614 }
0x3541   :  { %8324 = vmatmul.mubr.msk.f32.vlgmr.msra.gmra.mxu0 %vm197_vm3, %v7615_v55 }
0x3599   :  { %v7540_v53 = vpop.permute.xlu1 %7539 }
0x359a   :  { %8319 = vmatmul.mubr.msk.f32.vlgmr.msra.gmra.mxu1 %vm197_vm3, %v7540_v53 }
0x3601   :  { %v7684_v51 = vpop.f32.mrf.mxu0 }
0x3602   :  { %v7685_v36 = vadd.f32 %v9320_v5, %v7684_v51  ;;  %v7904_v5 = vld [vmem:[%s9589_s3 + $0x54] ss:$0 sm:$0xff] }
0x3603   :  { %v8325_v37 = vpop.f32.mrf.mxu0 }
0x3604   :  { %7696 = vrot.lane.b32.xlu0 %v7685_v36, %s8552_s22 }
0x365a   :  { %v7609_v30 = vpop.f32.mrf.mxu1 }
0x365b   :  { %v7610_v25 = vadd.f32 %v9337_v13, %v7609_v30 }
0x365c   :  { %v8320_v58 = vpop.f32.mrf.mxu1 }
0x365d   :  { %v7688_v26 = vadd.f32 %v7685_v36, %v7610_v25 }
0x365f   :  { %v7903_v43 = vmul.f32 -1.442695, %v7688_v26 }
0x3661   :  { %8518 = vpow2.f32 %v7903_v43 }
0x366e   :  { %v8519_v44 = vpop.eup %8518 }
0x366f   :  { %v7692_v12 = vadd.f32 1.0, %v8519_v44 }
0x3671   :  { %8520 = vrcp.f32 %v7692_v12 }
0x3676   :  { %v7697_v6 = vpop.permute.xlu0 %7696 }
0x367e   :  { %v8521_v32 = vpop.eup %8520 }
0x367f   :  { %v7699_v45 = vmul.f32 %v8521_v32, %v7697_v6  ;;  %v7706_v39 = vsub.f32 1.0, %v8521_v32  ;;  %v7712_v4 = vmul.f32 %v8521_v32, %v7436_v28 }
0x3681   :  { %7701 = vrot.lane.b32.xlu1 %v7699_v45, %s8550_s15 }
0x3685   :  { %7721 = vrot.lane.b32.xlu1 %v7904_v5, %s8549_s14 }
0x36f3   :  { %v7702_v7 = vpop.permute.xlu1 %7701 }
0x36f4   :  { %v7704_v13 = vadd.f32 %v7702_v7, %v7610_v25 }
0x36f6   :  { %8522 = vtanh.f32 %v7704_v13 }
0x36f7   :  { %v7722_v15 = vpop.permute.xlu1 %7721 }
0x3703   :  { %v8523_v48 = vpop.eup %8522 }
0x3704   :  { %7708 = vrot.lane.b32.xlu0 %v8523_v48, %s8551_s21 }
0x3776   :  { %v7709_v41 = vpop.permute.xlu0 %7708 }
0x3777   :  { %v7711_v10 = vmul.f32 %v7709_v41, %v7706_v39 }
0x3779   :  { %v7713_v40 = vadd.f32 %v7712_v4, %v7711_v10 }
0x377b   :  { %v7724_v52 = vmul.f32 %v7722_v15, %v7713_v40 }
0x377d   :  { %7726 = vrot.lane.b32.xlu0 %v7724_v52, %s8551_s21 }
0x37ef   :  { %v7727_v8 = vpop.permute.xlu0 %7726 }
0x37f0   :  { %v7730_v20 = vsel %vm7729_vm11, %v7727_v8, 0.0 }
0x37f1   :  { %7731 = vadd.xlane.f32.xlu1 %v7730_v20 }
0x387a   :  { %v7732_v60 = vpop.xlane.xlu1 %7731 }
0x387b   :  { %v7737_v61 = vadd.f32 %v7905_v47, %v7732_v60 }
0x387d   :  { %7739 = vst.msk [vmem:[%s9591_s5] sm:$0x3] %vm7738_vm12, %v7737_v61 }
0x387e   :  { %7744 = vsyncpa [#allocation3], 1 }

</bundles_post_ra>
